<compile_context>
chip_gen: v7x
topology: tpu7x:2x2x1
jax: 0.10.0
libtpu: 0.0.40
codegen_flags: <defaults>
</compile_context>

<pallas_src>
import functools

import jax
import jax.numpy as jnp
from jax.experimental import pallas as pl
from jax.experimental.pallas import tpu as pltpu

DIL = 4  # dilation == padding of the 3x3x3 convs (dilation_val=4)


def _round_up(x, m):
    return ((x + m - 1) // m) * m


def _bam_spatial_kernel(x_ref, w1_ref, b1_ref, wd1_ref, bd1_ref, wd2_ref, bd2_ref,
                        w3_ref, b3_ref, mask_ref, out_ref,
                        pad_ref, taps_ref, *, H, W, pad_l):
    # Per grid step (= one batch sample), all lane-dense with minor dim DHW:
    #   x_ref    (C, DHW)                 VMEM
    #   w1_ref   (Cr, C)                  VMEM  1x1x1 conv, BN1 folded
    #   wd*_ref  (Cr, 27*Cr)              VMEM  dilated convs, columns tap-major, BN folded
    #   w3_ref   (Cr, 1)                  VMEM  final 1x1x1 conv -> 1 channel
    #   b*_ref   (Cr, 1) / (1, 1)         VMEM
    #   mask_ref (27, DHW)                VMEM  per-tap validity mask (conv zero padding)
    #   out_ref  (1, DHW)                 VMEM
    #   pad_ref  (Cr, pad_l+DHW+pad_l)    VMEM scratch (flat zero halo for shifted taps)
    #   taps_ref (27*Cr, DHW)             VMEM scratch (im2col buffer)
    _, DHW = x_ref.shape
    Cr = w1_ref.shape[0]
    HW = H * W

    # Halo must be zero (the mask guards wrapped-but-valid flat positions; flat
    # out-of-range reads must not pull in garbage/NaN).  Written every step so the
    # kernel is correct under megacore grid sharding; interior is rewritten per block.
    zero_halo = jnp.zeros((Cr, pad_l), jnp.float32)
    pad_ref[:, :pad_l] = zero_halo
    pad_ref[:, pad_l + DHW:2 * pad_l + DHW] = zero_halo

    # ---- layer 1: 1x1x1 conv (C -> Cr) + folded BN + ReLU, one MXU matmul ----
    t = jnp.dot(w1_ref[...], x_ref[...], preferred_element_type=jnp.float32)
    t = jnp.maximum(t + b1_ref[...], 0.0)                      # (Cr, DHW)

    # ---- dilated 3x3x3 conv (Cr -> Cr, dilation = padding = DIL): im2col + matmul ----
    def dilated_block(t, w_ref, b_ref):
        pad_ref[:, pad_l:pad_l + DHW] = t
        tap = 0
        for kd in range(3):
            for kh in range(3):
                for kw in range(3):
                    # flat-index shift of tap (kd,kh,kw); boundary handled by mask
                    delta = ((kd - 1) * DIL) * HW + ((kh - 1) * DIL) * W + (kw - 1) * DIL
                    s = pad_l + delta
                    shifted = pad_ref[:, s:s + DHW]                       # (Cr, DHW)
                    taps_ref[tap * Cr:(tap + 1) * Cr, :] = (
                        shifted * mask_ref[tap:tap + 1, :])
                    tap += 1
        y = jnp.dot(w_ref[...], taps_ref[...], preferred_element_type=jnp.float32)
        return jnp.maximum(y + b_ref[...], 0.0)                           # (Cr, DHW)

    t = dilated_block(t, wd1_ref, bd1_ref)
    t = dilated_block(t, wd2_ref, bd2_ref)

    # ---- final 1x1x1 conv (Cr -> 1), no BN / activation ----
    att = jnp.sum(w3_ref[...] * t, axis=0, keepdims=True) + b3_ref[...]   # (1, DHW)
    out_ref[...] = att.astype(out_ref.dtype)


def _tap_masks(D, H, W, dil):
    """(27, D*H*W) float mask: 1 where the dilated tap stays inside the volume."""
    d = jnp.arange(D)[:, None, None]
    h = jnp.arange(H)[None, :, None]
    w = jnp.arange(W)[None, None, :]
    rows = []
    for kd in range(3):
        for kh in range(3):
            for kw in range(3):
                dd, dh, dw = (kd - 1) * dil, (kh - 1) * dil, (kw - 1) * dil
                m = ((d + dd >= 0) & (d + dd < D) &
                     (h + dh >= 0) & (h + dh < H) &
                     (w + dw >= 0) & (w + dw < W))
                rows.append(m.reshape(-1))
    return jnp.stack(rows).astype(jnp.float32)


def bam_spatial_gate(x, params):
    """x: (N, C, D, H, W) float32 (PyTorch NCDHW). Returns att expanded to x.shape."""
    N, C, D, H, W = x.shape
    DHW = D * H * W
    w1, b1 = params["w1"], params["b1"]
    wd1, bd1 = params["wd1"], params["bd1"]
    wd2, bd2 = params["wd2"], params["bd2"]
    w3, b3 = params["w3"], params["b3"]
    Cr = w1.shape[0]

    # flat-index halo large enough for the biggest tap shift, rounded to 128 lanes
    pad_l = _round_up(DIL * (H * W + W + 1), 128)

    x_flat = x.reshape(N, C, DHW)            # free reshape (row-major), lane-dense minor dim
    masks = _tap_masks(D, H, W, DIL)

    def full(a):                              # whole small array resident each step
        return pl.BlockSpec(a.shape, lambda n, nd=a.ndim: (0,) * nd)

    kernel = functools.partial(_bam_spatial_kernel, H=H, W=W, pad_l=pad_l)

    att = pl.pallas_call(
        kernel,
        out_shape=jax.ShapeDtypeStruct((N, 1, DHW), x.dtype),
        grid=(N,),
        in_specs=[
            pl.BlockSpec((None, C, DHW), lambda n: (n, 0, 0)),
            full(w1), full(b1), full(wd1), full(bd1),
            full(wd2), full(bd2), full(w3), full(b3), full(masks),
        ],
        out_specs=pl.BlockSpec((None, 1, DHW), lambda n: (n, 0, 0)),
        scratch_shapes=[
            pltpu.VMEM((Cr, 2 * pad_l + DHW), jnp.float32),    # flat padded slab
            pltpu.VMEM((27 * Cr, DHW), jnp.float32),           # im2col taps
        ],
        compiler_params=pltpu.CompilerParams(dimension_semantics=("parallel",)),
    )(x_flat, w1, b1, wd1, bd1, wd2, bd2, w3, b3, masks)

    att = att.reshape(N, 1, D, H, W)
    # expand_as(x) for spec fidelity; downstream consumers should fuse sigmoid(att)*x
    # instead of materializing the C-fold broadcast.
    return jnp.broadcast_to(att, x.shape)


# ----------------------- parameter setup (glue, plain JAX) -----------------------

def _fold_bn(w, b, bn, eps=1e-5):
    gamma, beta, mean, var = bn
    s = gamma / jnp.sqrt(var + eps)
    w_f = w * s.reshape(-1, 1, 1, 1, 1)
    b_f = (b - mean) * s + beta
    return w_f, b_f


def init_params(key, gate_channel=32, reduction_ratio=16):
    C = gate_channel
    Cr = gate_channel // reduction_ratio
    ks = jax.random.split(key, 8)
    raw = {
        "w1": jax.random.normal(ks[0], (Cr, C, 1, 1, 1), jnp.float32) * 0.2,
        "b1": jax.random.normal(ks[1], (Cr,), jnp.float32) * 0.1,
        "wd1": jax.random.normal(ks[2], (Cr, Cr, 3, 3, 3), jnp.float32) * 0.2,
        "bd1": jax.random.normal(ks[3], (Cr,), jnp.float32) * 0.1,
        "wd2": jax.random.normal(ks[4], (Cr, Cr, 3, 3, 3), jnp.float32) * 0.2,
        "bd2": jax.random.normal(ks[5], (Cr,), jnp.float32) * 0.1,
        "w3": jax.random.normal(ks[6], (1, Cr, 1, 1, 1), jnp.float32) * 0.2,
        "b3": jax.random.normal(ks[7], (1,), jnp.float32) * 0.1,
        "bn1": (jnp.linspace(0.9, 1.1, Cr), jnp.linspace(-0.05, 0.05, Cr),
                jnp.linspace(-0.10, 0.10, Cr), jnp.linspace(0.5, 1.5, Cr)),
        "bn2": (jnp.linspace(0.8, 1.2, Cr), jnp.linspace(-0.02, 0.08, Cr),
                jnp.linspace(-0.05, 0.15, Cr), jnp.linspace(0.7, 1.3, Cr)),
        "bn3": (jnp.linspace(1.0, 1.3, Cr), jnp.linspace(0.00, 0.05, Cr),
                jnp.linspace(-0.15, 0.05, Cr), jnp.linspace(0.6, 1.4, Cr)),
    }
    w1f, b1f = _fold_bn(raw["w1"], raw["b1"], raw["bn1"])
    wd1f, bd1f = _fold_bn(raw["wd1"], raw["bd1"], raw["bn2"])
    wd2f, bd2f = _fold_bn(raw["wd2"], raw["bd2"], raw["bn3"])

    def reorder(wd):  # (O, I, kd, kh, kw) -> (O, 27*I) with tap-major columns
        O, I = wd.shape[:2]
        return jnp.transpose(wd, (0, 2, 3, 4, 1)).reshape(O, 27 * I)

    folded = dict(
        w1=w1f.reshape(Cr, C), b1=b1f.reshape(Cr, 1),
        wd1=reorder(wd1f), bd1=bd1f.reshape(Cr, 1),
        wd2=reorder(wd2f), bd2=bd2f.reshape(Cr, 1),
        w3=raw["w3"].reshape(Cr, 1), b3=raw["b3"].reshape(1, 1),
    )
    return raw, folded


# ----------------------- pure-JAX reference for validation -----------------------

def _conv(inp, w, b, dil, pad):
    y = jax.lax.conv_general_dilated(
        inp, w, window_strides=(1, 1, 1), padding=[(pad, pad)] * 3,
        rhs_dilation=(dil, dil, dil),
        dimension_numbers=("NCDHW", "OIDHW", "NCDHW"))
    return y + b.reshape(1, -1, 1, 1, 1)


def _bn(inp, gamma, beta, mean, var, eps=1e-5):
    s = gamma / jnp.sqrt(var + eps)
    return inp * s.reshape(1, -1, 1, 1, 1) + (beta - mean * s).reshape(1, -1, 1, 1, 1)


def ref_forward(x, raw):
    t = jax.nn.relu(_bn(_conv(x, raw["w1"], raw["b1"], 1, 0), *raw["bn1"]))
    t = jax.nn.relu(_bn(_conv(t, raw["wd1"], raw["bd1"], DIL, DIL), *raw["bn2"]))
    t = jax.nn.relu(_bn(_conv(t, raw["wd2"], raw["bd2"], DIL, DIL), *raw["bn3"]))
    att = _conv(t, raw["w3"], raw["b3"], 1, 0)
    return jnp.broadcast_to(att, x.shape)


if __name__ == "__main__":
    key = jax.random.PRNGKey(0)
    kx, kp = jax.random.split(key)
    N, C, D, H, W = 2, 32, 8, 8, 8  # gate_channel=32, reduction_ratio=16 -> Cr=2
    x = jax.random.normal(kx, (N, C, D, H, W), jnp.float32)
    raw, params = init_params(kp, gate_channel=C, reduction_ratio=16)

    out = bam_spatial_gate(x, params)
    out = jax.block_until_ready(out)

    ref = ref_forward(x, raw)
    assert out.shape == x.shape
    err = float(jnp.max(jnp.abs(out - ref)))
    assert err < 2e-3, f"max abs err {err}"
    print("KERNEL_OK")
</pallas_src>

<mosaic_0001>
module attributes {stable_mosaic.version = 11 : i64} {
  func.func @_bam_spatial_kernel(%arg0: i32, %arg1: memref<1x32x512xf32, #tpu.memory_space<vmem>>, %arg2: memref<2x32xf32, #tpu.memory_space<vmem>>, %arg3: memref<2x1xf32, #tpu.memory_space<vmem>>, %arg4: memref<2x54xf32, #tpu.memory_space<vmem>>, %arg5: memref<2x1xf32, #tpu.memory_space<vmem>>, %arg6: memref<2x54xf32, #tpu.memory_space<vmem>>, %arg7: memref<2x1xf32, #tpu.memory_space<vmem>>, %arg8: memref<2x1xf32, #tpu.memory_space<vmem>>, %arg9: memref<1x1xf32, #tpu.memory_space<vmem>>, %arg10: memref<27x512xf32, #tpu.memory_space<vmem>>, %arg11: memref<1x1x512xf32, #tpu.memory_space<vmem>>, %arg12: memref<2x1280xf32, #tpu.memory_space<vmem>>, %arg13: memref<54x512xf32, #tpu.memory_space<vmem>>) attributes {dimension_semantics = [#tpu.dimension_semantics<parallel>], iteration_bounds = array<i64: 2>, scalar_prefetch = 0 : i64, scratch_operands = 2 : i64, tpu.core_type = #tpu.core_type<tc>, window_params = [{transform_indices = @transform_0, window_bounds = array<i64: 1, 32, 512>}, {pipeline_mode = #tpu.pipeline_mode<synchronous>, transform_indices = @transform_1, window_bounds = array<i64: 2, 32>}, {pipeline_mode = #tpu.pipeline_mode<synchronous>, transform_indices = @transform_2, window_bounds = array<i64: 2, 1>}, {pipeline_mode = #tpu.pipeline_mode<synchronous>, transform_indices = @transform_3, window_bounds = array<i64: 2, 54>}, {pipeline_mode = #tpu.pipeline_mode<synchronous>, transform_indices = @transform_4, window_bounds = array<i64: 2, 1>}, {pipeline_mode = #tpu.pipeline_mode<synchronous>, transform_indices = @transform_5, window_bounds = array<i64: 2, 54>}, {pipeline_mode = #tpu.pipeline_mode<synchronous>, transform_indices = @transform_6, window_bounds = array<i64: 2, 1>}, {pipeline_mode = #tpu.pipeline_mode<synchronous>, transform_indices = @transform_7, window_bounds = array<i64: 2, 1>}, {pipeline_mode = #tpu.pipeline_mode<synchronous>, transform_indices = @transform_8, window_bounds = array<i64: 1, 1>}, {pipeline_mode = #tpu.pipeline_mode<synchronous>, transform_indices = @transform_9, window_bounds = array<i64: 27, 512>}, {transform_indices = @transform_10, window_bounds = array<i64: 1, 1, 512>}]} {
    %cst = arith.constant 0.000000e+00 : f32
    %0 = vector.broadcast %cst : f32 to vector<2x384xf32>
    %c0 = arith.constant 0 : index
    %c0_0 = arith.constant 0 : index
    %1 = vector.load %arg12[%c0, %c0_0] : memref<2x1280xf32, #tpu.memory_space<vmem>>, vector<2x384xf32>
    tpu.vector_store %arg12[%c0, %c0_0], %0 {strides = array<i32>} : memref<2x1280xf32, #tpu.memory_space<vmem>>, vector<2x384xf32>,
    %c0_1 = arith.constant 0 : index
    %c896 = arith.constant 896 : index
    %2 = vector.load %arg12[%c0_1, %c896] : memref<2x1280xf32, #tpu.memory_space<vmem>>, vector<2x384xf32>
    tpu.vector_store %arg12[%c0_1, %c896], %0 {strides = array<i32>} : memref<2x1280xf32, #tpu.memory_space<vmem>>, vector<2x384xf32>,
    %c0_2 = arith.constant 0 : index
    %c0_3 = arith.constant 0 : index
    %3 = vector.load %arg2[%c0_2, %c0_3] : memref<2x32xf32, #tpu.memory_space<vmem>>, vector<2x32xf32>
    %c0_4 = arith.constant 0 : index
    %c0_5 = arith.constant 0 : index
    %c0_6 = arith.constant 0 : index
    %4 = vector.load %arg1[%c0_4, %c0_5, %c0_6] : memref<1x32x512xf32, #tpu.memory_space<vmem>>, vector<1x32x512xf32>
    %5 = vector.shape_cast %4 : vector<1x32x512xf32> to vector<32x512xf32>
    %cst_7 = arith.constant dense<0.000000e+00> : vector<2x512xf32>
    %6 = tpu.matmul %3, %5, %cst_7 {dimension_numbers = #tpu.dot_dimension_numbers<[1], [0], [0], [1], [0, 0, 1, 1], [], []>} : vector<2x32xf32>, vector<32x512xf32>, vector<2x512xf32> -> vector<2x512xf32>
    %c0_8 = arith.constant 0 : index
    %c0_9 = arith.constant 0 : index
    %7 = vector.load %arg3[%c0_8, %c0_9] : memref<2x1xf32, #tpu.memory_space<vmem>>, vector<2x1xf32>
    %8 = vector.broadcast %7 : vector<2x1xf32> to vector<2x512xf32>
    %9 = arith.addf %6, %8 : vector<2x512xf32>
    %cst_10 = arith.constant 0.000000e+00 : f32
    %10 = vector.broadcast %cst_10 : f32 to vector<2x512xf32>
    %11 = arith.maximumf %9, %10 : vector<2x512xf32>
    %c0_11 = arith.constant 0 : index
    %c384 = arith.constant 384 : index
    %12 = vector.load %arg12[%c0_11, %c384] : memref<2x1280xf32, #tpu.memory_space<vmem>>, vector<2x512xf32>
    tpu.vector_store %arg12[%c0_11, %c384], %11 {strides = array<i32>} : memref<2x1280xf32, #tpu.memory_space<vmem>>, vector<2x512xf32>,
    %c0_12 = arith.constant 0 : index
    %c92 = arith.constant 92 : index
    %13 = vector.load %arg12[%c0_12, %c92] : memref<2x1280xf32, #tpu.memory_space<vmem>>, vector<2x512xf32>
    %c0_13 = arith.constant 0 : index
    %c0_14 = arith.constant 0 : index
    %14 = vector.load %arg10[%c0_13, %c0_14] : memref<27x512xf32, #tpu.memory_space<vmem>>, vector<1x512xf32>
    %15 = vector.broadcast %14 : vector<1x512xf32> to vector<2x512xf32>
    %16 = arith.mulf %13, %15 : vector<2x512xf32>
    %c0_15 = arith.constant 0 : index
    %c0_16 = arith.constant 0 : index
    %17 = vector.load %arg13[%c0_15, %c0_16] : memref<54x512xf32, #tpu.memory_space<vmem>>, vector<2x512xf32>
    tpu.vector_store %arg13[%c0_15, %c0_16], %16 {strides = array<i32>} : memref<54x512xf32, #tpu.memory_space<vmem>>, vector<2x512xf32>,
    %c0_17 = arith.constant 0 : index
    %c96 = arith.constant 96 : index
    %18 = vector.load %arg12[%c0_17, %c96] : memref<2x1280xf32, #tpu.memory_space<vmem>>, vector<2x512xf32>
    %c1 = arith.constant 1 : index
    %c0_18 = arith.constant 0 : index
    %19 = vector.load %arg10[%c1, %c0_18] : memref<27x512xf32, #tpu.memory_space<vmem>>, vector<1x512xf32>
    %20 = vector.broadcast %19 : vector<1x512xf32> to vector<2x512xf32>
    %21 = arith.mulf %18, %20 : vector<2x512xf32>
    %c2 = arith.constant 2 : index
    %c0_19 = arith.constant 0 : index
    %22 = vector.load %arg13[%c2, %c0_19] : memref<54x512xf32, #tpu.memory_space<vmem>>, vector<2x512xf32>
    tpu.vector_store %arg13[%c2, %c0_19], %21 {strides = array<i32>} : memref<54x512xf32, #tpu.memory_space<vmem>>, vector<2x512xf32>,
    %c0_20 = arith.constant 0 : index
    %c100 = arith.constant 100 : index
    %23 = vector.load %arg12[%c0_20, %c100] : memref<2x1280xf32, #tpu.memory_space<vmem>>, vector<2x512xf32>
    %c2_21 = arith.constant 2 : index
    %c0_22 = arith.constant 0 : index
    %24 = vector.load %arg10[%c2_21, %c0_22] : memref<27x512xf32, #tpu.memory_space<vmem>>, vector<1x512xf32>
    %25 = vector.broadcast %24 : vector<1x512xf32> to vector<2x512xf32>
    %26 = arith.mulf %23, %25 : vector<2x512xf32>
    %c4 = arith.constant 4 : index
    %c0_23 = arith.constant 0 : index
    %27 = vector.load %arg13[%c4, %c0_23] : memref<54x512xf32, #tpu.memory_space<vmem>>, vector<2x512xf32>
    tpu.vector_store %arg13[%c4, %c0_23], %26 {strides = array<i32>} : memref<54x512xf32, #tpu.memory_space<vmem>>, vector<2x512xf32>,
    %c0_24 = arith.constant 0 : index
    %c124 = arith.constant 124 : index
    %28 = vector.load %arg12[%c0_24, %c124] : memref<2x1280xf32, #tpu.memory_space<vmem>>, vector<2x512xf32>
    %c3 = arith.constant 3 : index
    %c0_25 = arith.constant 0 : index
    %29 = vector.load %arg10[%c3, %c0_25] : memref<27x512xf32, #tpu.memory_space<vmem>>, vector<1x512xf32>
    %30 = vector.broadcast %29 : vector<1x512xf32> to vector<2x512xf32>
    %31 = arith.mulf %28, %30 : vector<2x512xf32>
    %c6 = arith.constant 6 : index
    %c0_26 = arith.constant 0 : index
    %32 = vector.load %arg13[%c6, %c0_26] : memref<54x512xf32, #tpu.memory_space<vmem>>, vector<2x512xf32>
    tpu.vector_store %arg13[%c6, %c0_26], %31 {strides = array<i32>} : memref<54x512xf32, #tpu.memory_space<vmem>>, vector<2x512xf32>,
    %c0_27 = arith.constant 0 : index
    %c128 = arith.constant 128 : index
    %33 = vector.load %arg12[%c0_27, %c128] : memref<2x1280xf32, #tpu.memory_space<vmem>>, vector<2x512xf32>
    %c4_28 = arith.constant 4 : index
    %c0_29 = arith.constant 0 : index
    %34 = vector.load %arg10[%c4_28, %c0_29] : memref<27x512xf32, #tpu.memory_space<vmem>>, vector<1x512xf32>
    %35 = vector.broadcast %34 : vector<1x512xf32> to vector<2x512xf32>
    %36 = arith.mulf %33, %35 : vector<2x512xf32>
    %c8 = arith.constant 8 : index
    %c0_30 = arith.constant 0 : index
    %37 = vector.load %arg13[%c8, %c0_30] : memref<54x512xf32, #tpu.memory_space<vmem>>, vector<2x512xf32>
    tpu.vector_store %arg13[%c8, %c0_30], %36 {strides = array<i32>} : memref<54x512xf32, #tpu.memory_space<vmem>>, vector<2x512xf32>,
    %c0_31 = arith.constant 0 : index
    %c132 = arith.constant 132 : index
    %38 = vector.load %arg12[%c0_31, %c132] : memref<2x1280xf32, #tpu.memory_space<vmem>>, vector<2x512xf32>
    %c5 = arith.constant 5 : index
    %c0_32 = arith.constant 0 : index
    %39 = vector.load %arg10[%c5, %c0_32] : memref<27x512xf32, #tpu.memory_space<vmem>>, vector<1x512xf32>
    %40 = vector.broadcast %39 : vector<1x512xf32> to vector<2x512xf32>
    %41 = arith.mulf %38, %40 : vector<2x512xf32>
    %c10 = arith.constant 10 : index
    %c0_33 = arith.constant 0 : index
    %42 = vector.load %arg13[%c10, %c0_33] : memref<54x512xf32, #tpu.memory_space<vmem>>, vector<2x512xf32>
    tpu.vector_store %arg13[%c10, %c0_33], %41 {strides = array<i32>} : memref<54x512xf32, #tpu.memory_space<vmem>>, vector<2x512xf32>,
    %c0_34 = arith.constant 0 : index
    %c156 = arith.constant 156 : index
    %43 = vector.load %arg12[%c0_34, %c156] : memref<2x1280xf32, #tpu.memory_space<vmem>>, vector<2x512xf32>
    %c6_35 = arith.constant 6 : index
    %c0_36 = arith.constant 0 : index
    %44 = vector.load %arg10[%c6_35, %c0_36] : memref<27x512xf32, #tpu.memory_space<vmem>>, vector<1x512xf32>
    %45 = vector.broadcast %44 : vector<1x512xf32> to vector<2x512xf32>
    %46 = arith.mulf %43, %45 : vector<2x512xf32>
    %c12 = arith.constant 12 : index
    %c0_37 = arith.constant 0 : index
    %47 = vector.load %arg13[%c12, %c0_37] : memref<54x512xf32, #tpu.memory_space<vmem>>, vector<2x512xf32>
    tpu.vector_store %arg13[%c12, %c0_37], %46 {strides = array<i32>} : memref<54x512xf32, #tpu.memory_space<vmem>>, vector<2x512xf32>,
    %c0_38 = arith.constant 0 : index
    %c160 = arith.constant 160 : index
    %48 = vector.load %arg12[%c0_38, %c160] : memref<2x1280xf32, #tpu.memory_space<vmem>>, vector<2x512xf32>
    %c7 = arith.constant 7 : index
    %c0_39 = arith.constant 0 : index
    %49 = vector.load %arg10[%c7, %c0_39] : memref<27x512xf32, #tpu.memory_space<vmem>>, vector<1x512xf32>
    %50 = vector.broadcast %49 : vector<1x512xf32> to vector<2x512xf32>
    %51 = arith.mulf %48, %50 : vector<2x512xf32>
    %c14 = arith.constant 14 : index
    %c0_40 = arith.constant 0 : index
    %52 = vector.load %arg13[%c14, %c0_40] : memref<54x512xf32, #tpu.memory_space<vmem>>, vector<2x512xf32>
    tpu.vector_store %arg13[%c14, %c0_40], %51 {strides = array<i32>} : memref<54x512xf32, #tpu.memory_space<vmem>>, vector<2x512xf32>,
    %c0_41 = arith.constant 0 : index
    %c164 = arith.constant 164 : index
    %53 = vector.load %arg12[%c0_41, %c164] : memref<2x1280xf32, #tpu.memory_space<vmem>>, vector<2x512xf32>
    %c8_42 = arith.constant 8 : index
    %c0_43 = arith.constant 0 : index
    %54 = vector.load %arg10[%c8_42, %c0_43] : memref<27x512xf32, #tpu.memory_space<vmem>>, vector<1x512xf32>
    %55 = vector.broadcast %54 : vector<1x512xf32> to vector<2x512xf32>
    %56 = arith.mulf %53, %55 : vector<2x512xf32>
    %c16 = arith.constant 16 : index
    %c0_44 = arith.constant 0 : index
    %57 = vector.load %arg13[%c16, %c0_44] : memref<54x512xf32, #tpu.memory_space<vmem>>, vector<2x512xf32>
    tpu.vector_store %arg13[%c16, %c0_44], %56 {strides = array<i32>} : memref<54x512xf32, #tpu.memory_space<vmem>>, vector<2x512xf32>,
    %c0_45 = arith.constant 0 : index
    %c348 = arith.constant 348 : index
    %58 = vector.load %arg12[%c0_45, %c348] : memref<2x1280xf32, #tpu.memory_space<vmem>>, vector<2x512xf32>
    %c9 = arith.constant 9 : index
    %c0_46 = arith.constant 0 : index
    %59 = vector.load %arg10[%c9, %c0_46] : memref<27x512xf32, #tpu.memory_space<vmem>>, vector<1x512xf32>
    %60 = vector.broadcast %59 : vector<1x512xf32> to vector<2x512xf32>
    %61 = arith.mulf %58, %60 : vector<2x512xf32>
    %c18 = arith.constant 18 : index
    %c0_47 = arith.constant 0 : index
    %62 = vector.load %arg13[%c18, %c0_47] : memref<54x512xf32, #tpu.memory_space<vmem>>, vector<2x512xf32>
    tpu.vector_store %arg13[%c18, %c0_47], %61 {strides = array<i32>} : memref<54x512xf32, #tpu.memory_space<vmem>>, vector<2x512xf32>,
    %c0_48 = arith.constant 0 : index
    %c352 = arith.constant 352 : index
    %63 = vector.load %arg12[%c0_48, %c352] : memref<2x1280xf32, #tpu.memory_space<vmem>>, vector<2x512xf32>
    %c10_49 = arith.constant 10 : index
    %c0_50 = arith.constant 0 : index
    %64 = vector.load %arg10[%c10_49, %c0_50] : memref<27x512xf32, #tpu.memory_space<vmem>>, vector<1x512xf32>
    %65 = vector.broadcast %64 : vector<1x512xf32> to vector<2x512xf32>
    %66 = arith.mulf %63, %65 : vector<2x512xf32>
    %c20 = arith.constant 20 : index
    %c0_51 = arith.constant 0 : index
    %67 = vector.load %arg13[%c20, %c0_51] : memref<54x512xf32, #tpu.memory_space<vmem>>, vector<2x512xf32>
    tpu.vector_store %arg13[%c20, %c0_51], %66 {strides = array<i32>} : memref<54x512xf32, #tpu.memory_space<vmem>>, vector<2x512xf32>,
    %c0_52 = arith.constant 0 : index
    %c356 = arith.constant 356 : index
    %68 = vector.load %arg12[%c0_52, %c356] : memref<2x1280xf32, #tpu.memory_space<vmem>>, vector<2x512xf32>
    %c11 = arith.constant 11 : index
    %c0_53 = arith.constant 0 : index
    %69 = vector.load %arg10[%c11, %c0_53] : memref<27x512xf32, #tpu.memory_space<vmem>>, vector<1x512xf32>
    %70 = vector.broadcast %69 : vector<1x512xf32> to vector<2x512xf32>
    %71 = arith.mulf %68, %70 : vector<2x512xf32>
    %c22 = arith.constant 22 : index
    %c0_54 = arith.constant 0 : index
    %72 = vector.load %arg13[%c22, %c0_54] : memref<54x512xf32, #tpu.memory_space<vmem>>, vector<2x512xf32>
    tpu.vector_store %arg13[%c22, %c0_54], %71 {strides = array<i32>} : memref<54x512xf32, #tpu.memory_space<vmem>>, vector<2x512xf32>,
    %c0_55 = arith.constant 0 : index
    %c380 = arith.constant 380 : index
    %73 = vector.load %arg12[%c0_55, %c380] : memref<2x1280xf32, #tpu.memory_space<vmem>>, vector<2x512xf32>
    %c12_56 = arith.constant 12 : index
    %c0_57 = arith.constant 0 : index
    %74 = vector.load %arg10[%c12_56, %c0_57] : memref<27x512xf32, #tpu.memory_space<vmem>>, vector<1x512xf32>
    %75 = vector.broadcast %74 : vector<1x512xf32> to vector<2x512xf32>
    %76 = arith.mulf %73, %75 : vector<2x512xf32>
    %c24 = arith.constant 24 : index
    %c0_58 = arith.constant 0 : index
    %77 = vector.load %arg13[%c24, %c0_58] : memref<54x512xf32, #tpu.memory_space<vmem>>, vector<2x512xf32>
    tpu.vector_store %arg13[%c24, %c0_58], %76 {strides = array<i32>} : memref<54x512xf32, #tpu.memory_space<vmem>>, vector<2x512xf32>,
    %c0_59 = arith.constant 0 : index
    %c384_60 = arith.constant 384 : index
    %78 = vector.load %arg12[%c0_59, %c384_60] : memref<2x1280xf32, #tpu.memory_space<vmem>>, vector<2x512xf32>
    %c13 = arith.constant 13 : index
    %c0_61 = arith.constant 0 : index
    %79 = vector.load %arg10[%c13, %c0_61] : memref<27x512xf32, #tpu.memory_space<vmem>>, vector<1x512xf32>
    %80 = vector.broadcast %79 : vector<1x512xf32> to vector<2x512xf32>
    %81 = arith.mulf %78, %80 : vector<2x512xf32>
    %c26 = arith.constant 26 : index
    %c0_62 = arith.constant 0 : index
    %82 = vector.load %arg13[%c26, %c0_62] : memref<54x512xf32, #tpu.memory_space<vmem>>, vector<2x512xf32>
    tpu.vector_store %arg13[%c26, %c0_62], %81 {strides = array<i32>} : memref<54x512xf32, #tpu.memory_space<vmem>>, vector<2x512xf32>,
    %c0_63 = arith.constant 0 : index
    %c388 = arith.constant 388 : index
    %83 = vector.load %arg12[%c0_63, %c388] : memref<2x1280xf32, #tpu.memory_space<vmem>>, vector<2x512xf32>
    %c14_64 = arith.constant 14 : index
    %c0_65 = arith.constant 0 : index
    %84 = vector.load %arg10[%c14_64, %c0_65] : memref<27x512xf32, #tpu.memory_space<vmem>>, vector<1x512xf32>
    %85 = vector.broadcast %84 : vector<1x512xf32> to vector<2x512xf32>
    %86 = arith.mulf %83, %85 : vector<2x512xf32>
    %c28 = arith.constant 28 : index
    %c0_66 = arith.constant 0 : index
    %87 = vector.load %arg13[%c28, %c0_66] : memref<54x512xf32, #tpu.memory_space<vmem>>, vector<2x512xf32>
    tpu.vector_store %arg13[%c28, %c0_66], %86 {strides = array<i32>} : memref<54x512xf32, #tpu.memory_space<vmem>>, vector<2x512xf32>,
    %c0_67 = arith.constant 0 : index
    %c412 = arith.constant 412 : index
    %88 = vector.load %arg12[%c0_67, %c412] : memref<2x1280xf32, #tpu.memory_space<vmem>>, vector<2x512xf32>
    %c15 = arith.constant 15 : index
    %c0_68 = arith.constant 0 : index
    %89 = vector.load %arg10[%c15, %c0_68] : memref<27x512xf32, #tpu.memory_space<vmem>>, vector<1x512xf32>
    %90 = vector.broadcast %89 : vector<1x512xf32> to vector<2x512xf32>
    %91 = arith.mulf %88, %90 : vector<2x512xf32>
    %c30 = arith.constant 30 : index
    %c0_69 = arith.constant 0 : index
    %92 = vector.load %arg13[%c30, %c0_69] : memref<54x512xf32, #tpu.memory_space<vmem>>, vector<2x512xf32>
    tpu.vector_store %arg13[%c30, %c0_69], %91 {strides = array<i32>} : memref<54x512xf32, #tpu.memory_space<vmem>>, vector<2x512xf32>,
    %c0_70 = arith.constant 0 : index
    %c416 = arith.constant 416 : index
    %93 = vector.load %arg12[%c0_70, %c416] : memref<2x1280xf32, #tpu.memory_space<vmem>>, vector<2x512xf32>
    %c16_71 = arith.constant 16 : index
    %c0_72 = arith.constant 0 : index
    %94 = vector.load %arg10[%c16_71, %c0_72] : memref<27x512xf32, #tpu.memory_space<vmem>>, vector<1x512xf32>
    %95 = vector.broadcast %94 : vector<1x512xf32> to vector<2x512xf32>
    %96 = arith.mulf %93, %95 : vector<2x512xf32>
    %c32 = arith.constant 32 : index
    %c0_73 = arith.constant 0 : index
    %97 = vector.load %arg13[%c32, %c0_73] : memref<54x512xf32, #tpu.memory_space<vmem>>, vector<2x512xf32>
    tpu.vector_store %arg13[%c32, %c0_73], %96 {strides = array<i32>} : memref<54x512xf32, #tpu.memory_space<vmem>>, vector<2x512xf32>,
    %c0_74 = arith.constant 0 : index
    %c420 = arith.constant 420 : index
    %98 = vector.load %arg12[%c0_74, %c420] : memref<2x1280xf32, #tpu.memory_space<vmem>>, vector<2x512xf32>
    %c17 = arith.constant 17 : index
    %c0_75 = arith.constant 0 : index
    %99 = vector.load %arg10[%c17, %c0_75] : memref<27x512xf32, #tpu.memory_space<vmem>>, vector<1x512xf32>
    %100 = vector.broadcast %99 : vector<1x512xf32> to vector<2x512xf32>
    %101 = arith.mulf %98, %100 : vector<2x512xf32>
    %c34 = arith.constant 34 : index
    %c0_76 = arith.constant 0 : index
    %102 = vector.load %arg13[%c34, %c0_76] : memref<54x512xf32, #tpu.memory_space<vmem>>, vector<2x512xf32>
    tpu.vector_store %arg13[%c34, %c0_76], %101 {strides = array<i32>} : memref<54x512xf32, #tpu.memory_space<vmem>>, vector<2x512xf32>,
    %c0_77 = arith.constant 0 : index
    %c604 = arith.constant 604 : index
    %103 = vector.load %arg12[%c0_77, %c604] : memref<2x1280xf32, #tpu.memory_space<vmem>>, vector<2x512xf32>
    %c18_78 = arith.constant 18 : index
    %c0_79 = arith.constant 0 : index
    %104 = vector.load %arg10[%c18_78, %c0_79] : memref<27x512xf32, #tpu.memory_space<vmem>>, vector<1x512xf32>
    %105 = vector.broadcast %104 : vector<1x512xf32> to vector<2x512xf32>
    %106 = arith.mulf %103, %105 : vector<2x512xf32>
    %c36 = arith.constant 36 : index
    %c0_80 = arith.constant 0 : index
    %107 = vector.load %arg13[%c36, %c0_80] : memref<54x512xf32, #tpu.memory_space<vmem>>, vector<2x512xf32>
    tpu.vector_store %arg13[%c36, %c0_80], %106 {strides = array<i32>} : memref<54x512xf32, #tpu.memory_space<vmem>>, vector<2x512xf32>,
    %c0_81 = arith.constant 0 : index
    %c608 = arith.constant 608 : index
    %108 = vector.load %arg12[%c0_81, %c608] : memref<2x1280xf32, #tpu.memory_space<vmem>>, vector<2x512xf32>
    %c19 = arith.constant 19 : index
    %c0_82 = arith.constant 0 : index
    %109 = vector.load %arg10[%c19, %c0_82] : memref<27x512xf32, #tpu.memory_space<vmem>>, vector<1x512xf32>
    %110 = vector.broadcast %109 : vector<1x512xf32> to vector<2x512xf32>
    %111 = arith.mulf %108, %110 : vector<2x512xf32>
    %c38 = arith.constant 38 : index
    %c0_83 = arith.constant 0 : index
    %112 = vector.load %arg13[%c38, %c0_83] : memref<54x512xf32, #tpu.memory_space<vmem>>, vector<2x512xf32>
    tpu.vector_store %arg13[%c38, %c0_83], %111 {strides = array<i32>} : memref<54x512xf32, #tpu.memory_space<vmem>>, vector<2x512xf32>,
    %c0_84 = arith.constant 0 : index
    %c612 = arith.constant 612 : index
    %113 = vector.load %arg12[%c0_84, %c612] : memref<2x1280xf32, #tpu.memory_space<vmem>>, vector<2x512xf32>
    %c20_85 = arith.constant 20 : index
    %c0_86 = arith.constant 0 : index
    %114 = vector.load %arg10[%c20_85, %c0_86] : memref<27x512xf32, #tpu.memory_space<vmem>>, vector<1x512xf32>
    %115 = vector.broadcast %114 : vector<1x512xf32> to vector<2x512xf32>
    %116 = arith.mulf %113, %115 : vector<2x512xf32>
    %c40 = arith.constant 40 : index
    %c0_87 = arith.constant 0 : index
    %117 = vector.load %arg13[%c40, %c0_87] : memref<54x512xf32, #tpu.memory_space<vmem>>, vector<2x512xf32>
    tpu.vector_store %arg13[%c40, %c0_87], %116 {strides = array<i32>} : memref<54x512xf32, #tpu.memory_space<vmem>>, vector<2x512xf32>,
    %c0_88 = arith.constant 0 : index
    %c636 = arith.constant 636 : index
    %118 = vector.load %arg12[%c0_88, %c636] : memref<2x1280xf32, #tpu.memory_space<vmem>>, vector<2x512xf32>
    %c21 = arith.constant 21 : index
    %c0_89 = arith.constant 0 : index
    %119 = vector.load %arg10[%c21, %c0_89] : memref<27x512xf32, #tpu.memory_space<vmem>>, vector<1x512xf32>
    %120 = vector.broadcast %119 : vector<1x512xf32> to vector<2x512xf32>
    %121 = arith.mulf %118, %120 : vector<2x512xf32>
    %c42 = arith.constant 42 : index
    %c0_90 = arith.constant 0 : index
    %122 = vector.load %arg13[%c42, %c0_90] : memref<54x512xf32, #tpu.memory_space<vmem>>, vector<2x512xf32>
    tpu.vector_store %arg13[%c42, %c0_90], %121 {strides = array<i32>} : memref<54x512xf32, #tpu.memory_space<vmem>>, vector<2x512xf32>,
    %c0_91 = arith.constant 0 : index
    %c640 = arith.constant 640 : index
    %123 = vector.load %arg12[%c0_91, %c640] : memref<2x1280xf32, #tpu.memory_space<vmem>>, vector<2x512xf32>
    %c22_92 = arith.constant 22 : index
    %c0_93 = arith.constant 0 : index
    %124 = vector.load %arg10[%c22_92, %c0_93] : memref<27x512xf32, #tpu.memory_space<vmem>>, vector<1x512xf32>
    %125 = vector.broadcast %124 : vector<1x512xf32> to vector<2x512xf32>
    %126 = arith.mulf %123, %125 : vector<2x512xf32>
    %c44 = arith.constant 44 : index
    %c0_94 = arith.constant 0 : index
    %127 = vector.load %arg13[%c44, %c0_94] : memref<54x512xf32, #tpu.memory_space<vmem>>, vector<2x512xf32>
    tpu.vector_store %arg13[%c44, %c0_94], %126 {strides = array<i32>} : memref<54x512xf32, #tpu.memory_space<vmem>>, vector<2x512xf32>,
    %c0_95 = arith.constant 0 : index
    %c644 = arith.constant 644 : index
    %128 = vector.load %arg12[%c0_95, %c644] : memref<2x1280xf32, #tpu.memory_space<vmem>>, vector<2x512xf32>
    %c23 = arith.constant 23 : index
    %c0_96 = arith.constant 0 : index
    %129 = vector.load %arg10[%c23, %c0_96] : memref<27x512xf32, #tpu.memory_space<vmem>>, vector<1x512xf32>
    %130 = vector.broadcast %129 : vector<1x512xf32> to vector<2x512xf32>
    %131 = arith.mulf %128, %130 : vector<2x512xf32>
    %c46 = arith.constant 46 : index
    %c0_97 = arith.constant 0 : index
    %132 = vector.load %arg13[%c46, %c0_97] : memref<54x512xf32, #tpu.memory_space<vmem>>, vector<2x512xf32>
    tpu.vector_store %arg13[%c46, %c0_97], %131 {strides = array<i32>} : memref<54x512xf32, #tpu.memory_space<vmem>>, vector<2x512xf32>,
    %c0_98 = arith.constant 0 : index
    %c668 = arith.constant 668 : index
    %133 = vector.load %arg12[%c0_98, %c668] : memref<2x1280xf32, #tpu.memory_space<vmem>>, vector<2x512xf32>
    %c24_99 = arith.constant 24 : index
    %c0_100 = arith.constant 0 : index
    %134 = vector.load %arg10[%c24_99, %c0_100] : memref<27x512xf32, #tpu.memory_space<vmem>>, vector<1x512xf32>
    %135 = vector.broadcast %134 : vector<1x512xf32> to vector<2x512xf32>
    %136 = arith.mulf %133, %135 : vector<2x512xf32>
    %c48 = arith.constant 48 : index
    %c0_101 = arith.constant 0 : index
    %137 = vector.load %arg13[%c48, %c0_101] : memref<54x512xf32, #tpu.memory_space<vmem>>, vector<2x512xf32>
    tpu.vector_store %arg13[%c48, %c0_101], %136 {strides = array<i32>} : memref<54x512xf32, #tpu.memory_space<vmem>>, vector<2x512xf32>,
    %c0_102 = arith.constant 0 : index
    %c672 = arith.constant 672 : index
    %138 = vector.load %arg12[%c0_102, %c672] : memref<2x1280xf32, #tpu.memory_space<vmem>>, vector<2x512xf32>
    %c25 = arith.constant 25 : index
    %c0_103 = arith.constant 0 : index
    %139 = vector.load %arg10[%c25, %c0_103] : memref<27x512xf32, #tpu.memory_space<vmem>>, vector<1x512xf32>
    %140 = vector.broadcast %139 : vector<1x512xf32> to vector<2x512xf32>
    %141 = arith.mulf %138, %140 : vector<2x512xf32>
    %c50 = arith.constant 50 : index
    %c0_104 = arith.constant 0 : index
    %142 = vector.load %arg13[%c50, %c0_104] : memref<54x512xf32, #tpu.memory_space<vmem>>, vector<2x512xf32>
    tpu.vector_store %arg13[%c50, %c0_104], %141 {strides = array<i32>} : memref<54x512xf32, #tpu.memory_space<vmem>>, vector<2x512xf32>,
    %c0_105 = arith.constant 0 : index
    %c676 = arith.constant 676 : index
    %143 = vector.load %arg12[%c0_105, %c676] : memref<2x1280xf32, #tpu.memory_space<vmem>>, vector<2x512xf32>
    %c26_106 = arith.constant 26 : index
    %c0_107 = arith.constant 0 : index
    %144 = vector.load %arg10[%c26_106, %c0_107] : memref<27x512xf32, #tpu.memory_space<vmem>>, vector<1x512xf32>
    %145 = vector.broadcast %144 : vector<1x512xf32> to vector<2x512xf32>
    %146 = arith.mulf %143, %145 : vector<2x512xf32>
    %c52 = arith.constant 52 : index
    %c0_108 = arith.constant 0 : index
    %147 = vector.load %arg13[%c52, %c0_108] : memref<54x512xf32, #tpu.memory_space<vmem>>, vector<2x512xf32>
    tpu.vector_store %arg13[%c52, %c0_108], %146 {strides = array<i32>} : memref<54x512xf32, #tpu.memory_space<vmem>>, vector<2x512xf32>,
    %c0_109 = arith.constant 0 : index
    %c0_110 = arith.constant 0 : index
    %148 = vector.load %arg4[%c0_109, %c0_110] : memref<2x54xf32, #tpu.memory_space<vmem>>, vector<2x54xf32>
    %c0_111 = arith.constant 0 : index
    %c0_112 = arith.constant 0 : index
    %149 = vector.load %arg13[%c0_111, %c0_112] : memref<54x512xf32, #tpu.memory_space<vmem>>, vector<54x512xf32>
    %cst_113 = arith.constant dense<0.000000e+00> : vector<2x512xf32>
    %150 = tpu.matmul %148, %149, %cst_113 {dimension_numbers = #tpu.dot_dimension_numbers<[1], [0], [0], [1], [0, 0, 1, 1], [], []>} : vector<2x54xf32>, vector<54x512xf32>, vector<2x512xf32> -> vector<2x512xf32>
    %c0_114 = arith.constant 0 : index
    %c0_115 = arith.constant 0 : index
    %151 = vector.load %arg5[%c0_114, %c0_115] : memref<2x1xf32, #tpu.memory_space<vmem>>, vector<2x1xf32>
    %152 = vector.broadcast %151 : vector<2x1xf32> to vector<2x512xf32>
    %153 = arith.addf %150, %152 : vector<2x512xf32>
    %cst_116 = arith.constant 0.000000e+00 : f32
    %154 = vector.broadcast %cst_116 : f32 to vector<2x512xf32>
    %155 = arith.maximumf %153, %154 : vector<2x512xf32>
    %c0_117 = arith.constant 0 : index
    %c384_118 = arith.constant 384 : index
    %156 = vector.load %arg12[%c0_117, %c384_118] : memref<2x1280xf32, #tpu.memory_space<vmem>>, vector<2x512xf32>
    tpu.vector_store %arg12[%c0_117, %c384_118], %155 {strides = array<i32>} : memref<2x1280xf32, #tpu.memory_space<vmem>>, vector<2x512xf32>,
    %c0_119 = arith.constant 0 : index
    %c92_120 = arith.constant 92 : index
    %157 = vector.load %arg12[%c0_119, %c92_120] : memref<2x1280xf32, #tpu.memory_space<vmem>>, vector<2x512xf32>
    %c0_121 = arith.constant 0 : index
    %c0_122 = arith.constant 0 : index
    %158 = vector.load %arg10[%c0_121, %c0_122] : memref<27x512xf32, #tpu.memory_space<vmem>>, vector<1x512xf32>
    %159 = vector.broadcast %158 : vector<1x512xf32> to vector<2x512xf32>
    %160 = arith.mulf %157, %159 : vector<2x512xf32>
    %c0_123 = arith.constant 0 : index
    %c0_124 = arith.constant 0 : index
    %161 = vector.load %arg13[%c0_123, %c0_124] : memref<54x512xf32, #tpu.memory_space<vmem>>, vector<2x512xf32>
    tpu.vector_store %arg13[%c0_123, %c0_124], %160 {strides = array<i32>} : memref<54x512xf32, #tpu.memory_space<vmem>>, vector<2x512xf32>,
    %c0_125 = arith.constant 0 : index
    %c96_126 = arith.constant 96 : index
    %162 = vector.load %arg12[%c0_125, %c96_126] : memref<2x1280xf32, #tpu.memory_space<vmem>>, vector<2x512xf32>
    %c1_127 = arith.constant 1 : index
    %c0_128 = arith.constant 0 : index
    %163 = vector.load %arg10[%c1_127, %c0_128] : memref<27x512xf32, #tpu.memory_space<vmem>>, vector<1x512xf32>
    %164 = vector.broadcast %163 : vector<1x512xf32> to vector<2x512xf32>
    %165 = arith.mulf %162, %164 : vector<2x512xf32>
    %c2_129 = arith.constant 2 : index
    %c0_130 = arith.constant 0 : index
    %166 = vector.load %arg13[%c2_129, %c0_130] : memref<54x512xf32, #tpu.memory_space<vmem>>, vector<2x512xf32>
    tpu.vector_store %arg13[%c2_129, %c0_130], %165 {strides = array<i32>} : memref<54x512xf32, #tpu.memory_space<vmem>>, vector<2x512xf32>,
    %c0_131 = arith.constant 0 : index
    %c100_132 = arith.constant 100 : index
    %167 = vector.load %arg12[%c0_131, %c100_132] : memref<2x1280xf32, #tpu.memory_space<vmem>>, vector<2x512xf32>
    %c2_133 = arith.constant 2 : index
    %c0_134 = arith.constant 0 : index
    %168 = vector.load %arg10[%c2_133, %c0_134] : memref<27x512xf32, #tpu.memory_space<vmem>>, vector<1x512xf32>
    %169 = vector.broadcast %168 : vector<1x512xf32> to vector<2x512xf32>
    %170 = arith.mulf %167, %169 : vector<2x512xf32>
    %c4_135 = arith.constant 4 : index
    %c0_136 = arith.constant 0 : index
    %171 = vector.load %arg13[%c4_135, %c0_136] : memref<54x512xf32, #tpu.memory_space<vmem>>, vector<2x512xf32>
    tpu.vector_store %arg13[%c4_135, %c0_136], %170 {strides = array<i32>} : memref<54x512xf32, #tpu.memory_space<vmem>>, vector<2x512xf32>,
    %c0_137 = arith.constant 0 : index
    %c124_138 = arith.constant 124 : index
    %172 = vector.load %arg12[%c0_137, %c124_138] : memref<2x1280xf32, #tpu.memory_space<vmem>>, vector<2x512xf32>
    %c3_139 = arith.constant 3 : index
    %c0_140 = arith.constant 0 : index
    %173 = vector.load %arg10[%c3_139, %c0_140] : memref<27x512xf32, #tpu.memory_space<vmem>>, vector<1x512xf32>
    %174 = vector.broadcast %173 : vector<1x512xf32> to vector<2x512xf32>
    %175 = arith.mulf %172, %174 : vector<2x512xf32>
    %c6_141 = arith.constant 6 : index
    %c0_142 = arith.constant 0 : index
    %176 = vector.load %arg13[%c6_141, %c0_142] : memref<54x512xf32, #tpu.memory_space<vmem>>, vector<2x512xf32>
    tpu.vector_store %arg13[%c6_141, %c0_142], %175 {strides = array<i32>} : memref<54x512xf32, #tpu.memory_space<vmem>>, vector<2x512xf32>,
    %c0_143 = arith.constant 0 : index
    %c128_144 = arith.constant 128 : index
    %177 = vector.load %arg12[%c0_143, %c128_144] : memref<2x1280xf32, #tpu.memory_space<vmem>>, vector<2x512xf32>
    %c4_145 = arith.constant 4 : index
    %c0_146 = arith.constant 0 : index
    %178 = vector.load %arg10[%c4_145, %c0_146] : memref<27x512xf32, #tpu.memory_space<vmem>>, vector<1x512xf32>
    %179 = vector.broadcast %178 : vector<1x512xf32> to vector<2x512xf32>
    %180 = arith.mulf %177, %179 : vector<2x512xf32>
    %c8_147 = arith.constant 8 : index
    %c0_148 = arith.constant 0 : index
    %181 = vector.load %arg13[%c8_147, %c0_148] : memref<54x512xf32, #tpu.memory_space<vmem>>, vector<2x512xf32>
    tpu.vector_store %arg13[%c8_147, %c0_148], %180 {strides = array<i32>} : memref<54x512xf32, #tpu.memory_space<vmem>>, vector<2x512xf32>,
    %c0_149 = arith.constant 0 : index
    %c132_150 = arith.constant 132 : index
    %182 = vector.load %arg12[%c0_149, %c132_150] : memref<2x1280xf32, #tpu.memory_space<vmem>>, vector<2x512xf32>
    %c5_151 = arith.constant 5 : index
    %c0_152 = arith.constant 0 : index
    %183 = vector.load %arg10[%c5_151, %c0_152] : memref<27x512xf32, #tpu.memory_space<vmem>>, vector<1x512xf32>
    %184 = vector.broadcast %183 : vector<1x512xf32> to vector<2x512xf32>
    %185 = arith.mulf %182, %184 : vector<2x512xf32>
    %c10_153 = arith.constant 10 : index
    %c0_154 = arith.constant 0 : index
    %186 = vector.load %arg13[%c10_153, %c0_154] : memref<54x512xf32, #tpu.memory_space<vmem>>, vector<2x512xf32>
    tpu.vector_store %arg13[%c10_153, %c0_154], %185 {strides = array<i32>} : memref<54x512xf32, #tpu.memory_space<vmem>>, vector<2x512xf32>,
    %c0_155 = arith.constant 0 : index
    %c156_156 = arith.constant 156 : index
    %187 = vector.load %arg12[%c0_155, %c156_156] : memref<2x1280xf32, #tpu.memory_space<vmem>>, vector<2x512xf32>
    %c6_157 = arith.constant 6 : index
    %c0_158 = arith.constant 0 : index
    %188 = vector.load %arg10[%c6_157, %c0_158] : memref<27x512xf32, #tpu.memory_space<vmem>>, vector<1x512xf32>
    %189 = vector.broadcast %188 : vector<1x512xf32> to vector<2x512xf32>
    %190 = arith.mulf %187, %189 : vector<2x512xf32>
    %c12_159 = arith.constant 12 : index
    %c0_160 = arith.constant 0 : index
    %191 = vector.load %arg13[%c12_159, %c0_160] : memref<54x512xf32, #tpu.memory_space<vmem>>, vector<2x512xf32>
    tpu.vector_store %arg13[%c12_159, %c0_160], %190 {strides = array<i32>} : memref<54x512xf32, #tpu.memory_space<vmem>>, vector<2x512xf32>,
    %c0_161 = arith.constant 0 : index
    %c160_162 = arith.constant 160 : index
    %192 = vector.load %arg12[%c0_161, %c160_162] : memref<2x1280xf32, #tpu.memory_space<vmem>>, vector<2x512xf32>
    %c7_163 = arith.constant 7 : index
    %c0_164 = arith.constant 0 : index
    %193 = vector.load %arg10[%c7_163, %c0_164] : memref<27x512xf32, #tpu.memory_space<vmem>>, vector<1x512xf32>
    %194 = vector.broadcast %193 : vector<1x512xf32> to vector<2x512xf32>
    %195 = arith.mulf %192, %194 : vector<2x512xf32>
    %c14_165 = arith.constant 14 : index
    %c0_166 = arith.constant 0 : index
    %196 = vector.load %arg13[%c14_165, %c0_166] : memref<54x512xf32, #tpu.memory_space<vmem>>, vector<2x512xf32>
    tpu.vector_store %arg13[%c14_165, %c0_166], %195 {strides = array<i32>} : memref<54x512xf32, #tpu.memory_space<vmem>>, vector<2x512xf32>,
    %c0_167 = arith.constant 0 : index
    %c164_168 = arith.constant 164 : index
    %197 = vector.load %arg12[%c0_167, %c164_168] : memref<2x1280xf32, #tpu.memory_space<vmem>>, vector<2x512xf32>
    %c8_169 = arith.constant 8 : index
    %c0_170 = arith.constant 0 : index
    %198 = vector.load %arg10[%c8_169, %c0_170] : memref<27x512xf32, #tpu.memory_space<vmem>>, vector<1x512xf32>
    %199 = vector.broadcast %198 : vector<1x512xf32> to vector<2x512xf32>
    %200 = arith.mulf %197, %199 : vector<2x512xf32>
    %c16_171 = arith.constant 16 : index
    %c0_172 = arith.constant 0 : index
    %201 = vector.load %arg13[%c16_171, %c0_172] : memref<54x512xf32, #tpu.memory_space<vmem>>, vector<2x512xf32>
    tpu.vector_store %arg13[%c16_171, %c0_172], %200 {strides = array<i32>} : memref<54x512xf32, #tpu.memory_space<vmem>>, vector<2x512xf32>,
    %c0_173 = arith.constant 0 : index
    %c348_174 = arith.constant 348 : index
    %202 = vector.load %arg12[%c0_173, %c348_174] : memref<2x1280xf32, #tpu.memory_space<vmem>>, vector<2x512xf32>
    %c9_175 = arith.constant 9 : index
    %c0_176 = arith.constant 0 : index
    %203 = vector.load %arg10[%c9_175, %c0_176] : memref<27x512xf32, #tpu.memory_space<vmem>>, vector<1x512xf32>
    %204 = vector.broadcast %203 : vector<1x512xf32> to vector<2x512xf32>
    %205 = arith.mulf %202, %204 : vector<2x512xf32>
    %c18_177 = arith.constant 18 : index
    %c0_178 = arith.constant 0 : index
    %206 = vector.load %arg13[%c18_177, %c0_178] : memref<54x512xf32, #tpu.memory_space<vmem>>, vector<2x512xf32>
    tpu.vector_store %arg13[%c18_177, %c0_178], %205 {strides = array<i32>} : memref<54x512xf32, #tpu.memory_space<vmem>>, vector<2x512xf32>,
    %c0_179 = arith.constant 0 : index
    %c352_180 = arith.constant 352 : index
    %207 = vector.load %arg12[%c0_179, %c352_180] : memref<2x1280xf32, #tpu.memory_space<vmem>>, vector<2x512xf32>
    %c10_181 = arith.constant 10 : index
    %c0_182 = arith.constant 0 : index
    %208 = vector.load %arg10[%c10_181, %c0_182] : memref<27x512xf32, #tpu.memory_space<vmem>>, vector<1x512xf32>
    %209 = vector.broadcast %208 : vector<1x512xf32> to vector<2x512xf32>
    %210 = arith.mulf %207, %209 : vector<2x512xf32>
    %c20_183 = arith.constant 20 : index
    %c0_184 = arith.constant 0 : index
    %211 = vector.load %arg13[%c20_183, %c0_184] : memref<54x512xf32, #tpu.memory_space<vmem>>, vector<2x512xf32>
    tpu.vector_store %arg13[%c20_183, %c0_184], %210 {strides = array<i32>} : memref<54x512xf32, #tpu.memory_space<vmem>>, vector<2x512xf32>,
    %c0_185 = arith.constant 0 : index
    %c356_186 = arith.constant 356 : index
    %212 = vector.load %arg12[%c0_185, %c356_186] : memref<2x1280xf32, #tpu.memory_space<vmem>>, vector<2x512xf32>
    %c11_187 = arith.constant 11 : index
    %c0_188 = arith.constant 0 : index
    %213 = vector.load %arg10[%c11_187, %c0_188] : memref<27x512xf32, #tpu.memory_space<vmem>>, vector<1x512xf32>
    %214 = vector.broadcast %213 : vector<1x512xf32> to vector<2x512xf32>
    %215 = arith.mulf %212, %214 : vector<2x512xf32>
    %c22_189 = arith.constant 22 : index
    %c0_190 = arith.constant 0 : index
    %216 = vector.load %arg13[%c22_189, %c0_190] : memref<54x512xf32, #tpu.memory_space<vmem>>, vector<2x512xf32>
    tpu.vector_store %arg13[%c22_189, %c0_190], %215 {strides = array<i32>} : memref<54x512xf32, #tpu.memory_space<vmem>>, vector<2x512xf32>,
    %c0_191 = arith.constant 0 : index
    %c380_192 = arith.constant 380 : index
    %217 = vector.load %arg12[%c0_191, %c380_192] : memref<2x1280xf32, #tpu.memory_space<vmem>>, vector<2x512xf32>
    %c12_193 = arith.constant 12 : index
    %c0_194 = arith.constant 0 : index
    %218 = vector.load %arg10[%c12_193, %c0_194] : memref<27x512xf32, #tpu.memory_space<vmem>>, vector<1x512xf32>
    %219 = vector.broadcast %218 : vector<1x512xf32> to vector<2x512xf32>
    %220 = arith.mulf %217, %219 : vector<2x512xf32>
    %c24_195 = arith.constant 24 : index
    %c0_196 = arith.constant 0 : index
    %221 = vector.load %arg13[%c24_195, %c0_196] : memref<54x512xf32, #tpu.memory_space<vmem>>, vector<2x512xf32>
    tpu.vector_store %arg13[%c24_195, %c0_196], %220 {strides = array<i32>} : memref<54x512xf32, #tpu.memory_space<vmem>>, vector<2x512xf32>,
    %c0_197 = arith.constant 0 : index
    %c384_198 = arith.constant 384 : index
    %222 = vector.load %arg12[%c0_197, %c384_198] : memref<2x1280xf32, #tpu.memory_space<vmem>>, vector<2x512xf32>
    %c13_199 = arith.constant 13 : index
    %c0_200 = arith.constant 0 : index
    %223 = vector.load %arg10[%c13_199, %c0_200] : memref<27x512xf32, #tpu.memory_space<vmem>>, vector<1x512xf32>
    %224 = vector.broadcast %223 : vector<1x512xf32> to vector<2x512xf32>
    %225 = arith.mulf %222, %224 : vector<2x512xf32>
    %c26_201 = arith.constant 26 : index
    %c0_202 = arith.constant 0 : index
    %226 = vector.load %arg13[%c26_201, %c0_202] : memref<54x512xf32, #tpu.memory_space<vmem>>, vector<2x512xf32>
    tpu.vector_store %arg13[%c26_201, %c0_202], %225 {strides = array<i32>} : memref<54x512xf32, #tpu.memory_space<vmem>>, vector<2x512xf32>,
    %c0_203 = arith.constant 0 : index
    %c388_204 = arith.constant 388 : index
    %227 = vector.load %arg12[%c0_203, %c388_204] : memref<2x1280xf32, #tpu.memory_space<vmem>>, vector<2x512xf32>
    %c14_205 = arith.constant 14 : index
    %c0_206 = arith.constant 0 : index
    %228 = vector.load %arg10[%c14_205, %c0_206] : memref<27x512xf32, #tpu.memory_space<vmem>>, vector<1x512xf32>
    %229 = vector.broadcast %228 : vector<1x512xf32> to vector<2x512xf32>
    %230 = arith.mulf %227, %229 : vector<2x512xf32>
    %c28_207 = arith.constant 28 : index
    %c0_208 = arith.constant 0 : index
    %231 = vector.load %arg13[%c28_207, %c0_208] : memref<54x512xf32, #tpu.memory_space<vmem>>, vector<2x512xf32>
    tpu.vector_store %arg13[%c28_207, %c0_208], %230 {strides = array<i32>} : memref<54x512xf32, #tpu.memory_space<vmem>>, vector<2x512xf32>,
    %c0_209 = arith.constant 0 : index
    %c412_210 = arith.constant 412 : index
    %232 = vector.load %arg12[%c0_209, %c412_210] : memref<2x1280xf32, #tpu.memory_space<vmem>>, vector<2x512xf32>
    %c15_211 = arith.constant 15 : index
    %c0_212 = arith.constant 0 : index
    %233 = vector.load %arg10[%c15_211, %c0_212] : memref<27x512xf32, #tpu.memory_space<vmem>>, vector<1x512xf32>
    %234 = vector.broadcast %233 : vector<1x512xf32> to vector<2x512xf32>
    %235 = arith.mulf %232, %234 : vector<2x512xf32>
    %c30_213 = arith.constant 30 : index
    %c0_214 = arith.constant 0 : index
    %236 = vector.load %arg13[%c30_213, %c0_214] : memref<54x512xf32, #tpu.memory_space<vmem>>, vector<2x512xf32>
    tpu.vector_store %arg13[%c30_213, %c0_214], %235 {strides = array<i32>} : memref<54x512xf32, #tpu.memory_space<vmem>>, vector<2x512xf32>,
    %c0_215 = arith.constant 0 : index
    %c416_216 = arith.constant 416 : index
    %237 = vector.load %arg12[%c0_215, %c416_216] : memref<2x1280xf32, #tpu.memory_space<vmem>>, vector<2x512xf32>
    %c16_217 = arith.constant 16 : index
    %c0_218 = arith.constant 0 : index
    %238 = vector.load %arg10[%c16_217, %c0_218] : memref<27x512xf32, #tpu.memory_space<vmem>>, vector<1x512xf32>
    %239 = vector.broadcast %238 : vector<1x512xf32> to vector<2x512xf32>
    %240 = arith.mulf %237, %239 : vector<2x512xf32>
    %c32_219 = arith.constant 32 : index
    %c0_220 = arith.constant 0 : index
    %241 = vector.load %arg13[%c32_219, %c0_220] : memref<54x512xf32, #tpu.memory_space<vmem>>, vector<2x512xf32>
    tpu.vector_store %arg13[%c32_219, %c0_220], %240 {strides = array<i32>} : memref<54x512xf32, #tpu.memory_space<vmem>>, vector<2x512xf32>,
    %c0_221 = arith.constant 0 : index
    %c420_222 = arith.constant 420 : index
    %242 = vector.load %arg12[%c0_221, %c420_222] : memref<2x1280xf32, #tpu.memory_space<vmem>>, vector<2x512xf32>
    %c17_223 = arith.constant 17 : index
    %c0_224 = arith.constant 0 : index
    %243 = vector.load %arg10[%c17_223, %c0_224] : memref<27x512xf32, #tpu.memory_space<vmem>>, vector<1x512xf32>
    %244 = vector.broadcast %243 : vector<1x512xf32> to vector<2x512xf32>
    %245 = arith.mulf %242, %244 : vector<2x512xf32>
    %c34_225 = arith.constant 34 : index
    %c0_226 = arith.constant 0 : index
    %246 = vector.load %arg13[%c34_225, %c0_226] : memref<54x512xf32, #tpu.memory_space<vmem>>, vector<2x512xf32>
    tpu.vector_store %arg13[%c34_225, %c0_226], %245 {strides = array<i32>} : memref<54x512xf32, #tpu.memory_space<vmem>>, vector<2x512xf32>,
    %c0_227 = arith.constant 0 : index
    %c604_228 = arith.constant 604 : index
    %247 = vector.load %arg12[%c0_227, %c604_228] : memref<2x1280xf32, #tpu.memory_space<vmem>>, vector<2x512xf32>
    %c18_229 = arith.constant 18 : index
    %c0_230 = arith.constant 0 : index
    %248 = vector.load %arg10[%c18_229, %c0_230] : memref<27x512xf32, #tpu.memory_space<vmem>>, vector<1x512xf32>
    %249 = vector.broadcast %248 : vector<1x512xf32> to vector<2x512xf32>
    %250 = arith.mulf %247, %249 : vector<2x512xf32>
    %c36_231 = arith.constant 36 : index
    %c0_232 = arith.constant 0 : index
    %251 = vector.load %arg13[%c36_231, %c0_232] : memref<54x512xf32, #tpu.memory_space<vmem>>, vector<2x512xf32>
    tpu.vector_store %arg13[%c36_231, %c0_232], %250 {strides = array<i32>} : memref<54x512xf32, #tpu.memory_space<vmem>>, vector<2x512xf32>,
    %c0_233 = arith.constant 0 : index
    %c608_234 = arith.constant 608 : index
    %252 = vector.load %arg12[%c0_233, %c608_234] : memref<2x1280xf32, #tpu.memory_space<vmem>>, vector<2x512xf32>
    %c19_235 = arith.constant 19 : index
    %c0_236 = arith.constant 0 : index
    %253 = vector.load %arg10[%c19_235, %c0_236] : memref<27x512xf32, #tpu.memory_space<vmem>>, vector<1x512xf32>
    %254 = vector.broadcast %253 : vector<1x512xf32> to vector<2x512xf32>
    %255 = arith.mulf %252, %254 : vector<2x512xf32>
    %c38_237 = arith.constant 38 : index
    %c0_238 = arith.constant 0 : index
    %256 = vector.load %arg13[%c38_237, %c0_238] : memref<54x512xf32, #tpu.memory_space<vmem>>, vector<2x512xf32>
    tpu.vector_store %arg13[%c38_237, %c0_238], %255 {strides = array<i32>} : memref<54x512xf32, #tpu.memory_space<vmem>>, vector<2x512xf32>,
    %c0_239 = arith.constant 0 : index
    %c612_240 = arith.constant 612 : index
    %257 = vector.load %arg12[%c0_239, %c612_240] : memref<2x1280xf32, #tpu.memory_space<vmem>>, vector<2x512xf32>
    %c20_241 = arith.constant 20 : index
    %c0_242 = arith.constant 0 : index
    %258 = vector.load %arg10[%c20_241, %c0_242] : memref<27x512xf32, #tpu.memory_space<vmem>>, vector<1x512xf32>
    %259 = vector.broadcast %258 : vector<1x512xf32> to vector<2x512xf32>
    %260 = arith.mulf %257, %259 : vector<2x512xf32>
    %c40_243 = arith.constant 40 : index
    %c0_244 = arith.constant 0 : index
    %261 = vector.load %arg13[%c40_243, %c0_244] : memref<54x512xf32, #tpu.memory_space<vmem>>, vector<2x512xf32>
    tpu.vector_store %arg13[%c40_243, %c0_244], %260 {strides = array<i32>} : memref<54x512xf32, #tpu.memory_space<vmem>>, vector<2x512xf32>,
    %c0_245 = arith.constant 0 : index
    %c636_246 = arith.constant 636 : index
    %262 = vector.load %arg12[%c0_245, %c636_246] : memref<2x1280xf32, #tpu.memory_space<vmem>>, vector<2x512xf32>
    %c21_247 = arith.constant 21 : index
    %c0_248 = arith.constant 0 : index
    %263 = vector.load %arg10[%c21_247, %c0_248] : memref<27x512xf32, #tpu.memory_space<vmem>>, vector<1x512xf32>
    %264 = vector.broadcast %263 : vector<1x512xf32> to vector<2x512xf32>
    %265 = arith.mulf %262, %264 : vector<2x512xf32>
    %c42_249 = arith.constant 42 : index
    %c0_250 = arith.constant 0 : index
    %266 = vector.load %arg13[%c42_249, %c0_250] : memref<54x512xf32, #tpu.memory_space<vmem>>, vector<2x512xf32>
    tpu.vector_store %arg13[%c42_249, %c0_250], %265 {strides = array<i32>} : memref<54x512xf32, #tpu.memory_space<vmem>>, vector<2x512xf32>,
    %c0_251 = arith.constant 0 : index
    %c640_252 = arith.constant 640 : index
    %267 = vector.load %arg12[%c0_251, %c640_252] : memref<2x1280xf32, #tpu.memory_space<vmem>>, vector<2x512xf32>
    %c22_253 = arith.constant 22 : index
    %c0_254 = arith.constant 0 : index
    %268 = vector.load %arg10[%c22_253, %c0_254] : memref<27x512xf32, #tpu.memory_space<vmem>>, vector<1x512xf32>
    %269 = vector.broadcast %268 : vector<1x512xf32> to vector<2x512xf32>
    %270 = arith.mulf %267, %269 : vector<2x512xf32>
    %c44_255 = arith.constant 44 : index
    %c0_256 = arith.constant 0 : index
    %271 = vector.load %arg13[%c44_255, %c0_256] : memref<54x512xf32, #tpu.memory_space<vmem>>, vector<2x512xf32>
    tpu.vector_store %arg13[%c44_255, %c0_256], %270 {strides = array<i32>} : memref<54x512xf32, #tpu.memory_space<vmem>>, vector<2x512xf32>,
    %c0_257 = arith.constant 0 : index
    %c644_258 = arith.constant 644 : index
    %272 = vector.load %arg12[%c0_257, %c644_258] : memref<2x1280xf32, #tpu.memory_space<vmem>>, vector<2x512xf32>
    %c23_259 = arith.constant 23 : index
    %c0_260 = arith.constant 0 : index
    %273 = vector.load %arg10[%c23_259, %c0_260] : memref<27x512xf32, #tpu.memory_space<vmem>>, vector<1x512xf32>
    %274 = vector.broadcast %273 : vector<1x512xf32> to vector<2x512xf32>
    %275 = arith.mulf %272, %274 : vector<2x512xf32>
    %c46_261 = arith.constant 46 : index
    %c0_262 = arith.constant 0 : index
    %276 = vector.load %arg13[%c46_261, %c0_262] : memref<54x512xf32, #tpu.memory_space<vmem>>, vector<2x512xf32>
    tpu.vector_store %arg13[%c46_261, %c0_262], %275 {strides = array<i32>} : memref<54x512xf32, #tpu.memory_space<vmem>>, vector<2x512xf32>,
    %c0_263 = arith.constant 0 : index
    %c668_264 = arith.constant 668 : index
    %277 = vector.load %arg12[%c0_263, %c668_264] : memref<2x1280xf32, #tpu.memory_space<vmem>>, vector<2x512xf32>
    %c24_265 = arith.constant 24 : index
    %c0_266 = arith.constant 0 : index
    %278 = vector.load %arg10[%c24_265, %c0_266] : memref<27x512xf32, #tpu.memory_space<vmem>>, vector<1x512xf32>
    %279 = vector.broadcast %278 : vector<1x512xf32> to vector<2x512xf32>
    %280 = arith.mulf %277, %279 : vector<2x512xf32>
    %c48_267 = arith.constant 48 : index
    %c0_268 = arith.constant 0 : index
    %281 = vector.load %arg13[%c48_267, %c0_268] : memref<54x512xf32, #tpu.memory_space<vmem>>, vector<2x512xf32>
    tpu.vector_store %arg13[%c48_267, %c0_268], %280 {strides = array<i32>} : memref<54x512xf32, #tpu.memory_space<vmem>>, vector<2x512xf32>,
    %c0_269 = arith.constant 0 : index
    %c672_270 = arith.constant 672 : index
    %282 = vector.load %arg12[%c0_269, %c672_270] : memref<2x1280xf32, #tpu.memory_space<vmem>>, vector<2x512xf32>
    %c25_271 = arith.constant 25 : index
    %c0_272 = arith.constant 0 : index
    %283 = vector.load %arg10[%c25_271, %c0_272] : memref<27x512xf32, #tpu.memory_space<vmem>>, vector<1x512xf32>
    %284 = vector.broadcast %283 : vector<1x512xf32> to vector<2x512xf32>
    %285 = arith.mulf %282, %284 : vector<2x512xf32>
    %c50_273 = arith.constant 50 : index
    %c0_274 = arith.constant 0 : index
    %286 = vector.load %arg13[%c50_273, %c0_274] : memref<54x512xf32, #tpu.memory_space<vmem>>, vector<2x512xf32>
    tpu.vector_store %arg13[%c50_273, %c0_274], %285 {strides = array<i32>} : memref<54x512xf32, #tpu.memory_space<vmem>>, vector<2x512xf32>,
    %c0_275 = arith.constant 0 : index
    %c676_276 = arith.constant 676 : index
    %287 = vector.load %arg12[%c0_275, %c676_276] : memref<2x1280xf32, #tpu.memory_space<vmem>>, vector<2x512xf32>
    %c26_277 = arith.constant 26 : index
    %c0_278 = arith.constant 0 : index
    %288 = vector.load %arg10[%c26_277, %c0_278] : memref<27x512xf32, #tpu.memory_space<vmem>>, vector<1x512xf32>
    %289 = vector.broadcast %288 : vector<1x512xf32> to vector<2x512xf32>
    %290 = arith.mulf %287, %289 : vector<2x512xf32>
    %c52_279 = arith.constant 52 : index
    %c0_280 = arith.constant 0 : index
    %291 = vector.load %arg13[%c52_279, %c0_280] : memref<54x512xf32, #tpu.memory_space<vmem>>, vector<2x512xf32>
    tpu.vector_store %arg13[%c52_279, %c0_280], %290 {strides = array<i32>} : memref<54x512xf32, #tpu.memory_space<vmem>>, vector<2x512xf32>,
    %c0_281 = arith.constant 0 : index
    %c0_282 = arith.constant 0 : index
    %292 = vector.load %arg6[%c0_281, %c0_282] : memref<2x54xf32, #tpu.memory_space<vmem>>, vector<2x54xf32>
    %c0_283 = arith.constant 0 : index
    %c0_284 = arith.constant 0 : index
    %293 = vector.load %arg13[%c0_283, %c0_284] : memref<54x512xf32, #tpu.memory_space<vmem>>, vector<54x512xf32>
    %cst_285 = arith.constant dense<0.000000e+00> : vector<2x512xf32>
    %294 = tpu.matmul %292, %293, %cst_285 {dimension_numbers = #tpu.dot_dimension_numbers<[1], [0], [0], [1], [0, 0, 1, 1], [], []>} : vector<2x54xf32>, vector<54x512xf32>, vector<2x512xf32> -> vector<2x512xf32>
    %c0_286 = arith.constant 0 : index
    %c0_287 = arith.constant 0 : index
    %295 = vector.load %arg7[%c0_286, %c0_287] : memref<2x1xf32, #tpu.memory_space<vmem>>, vector<2x1xf32>
    %296 = vector.broadcast %295 : vector<2x1xf32> to vector<2x512xf32>
    %297 = arith.addf %294, %296 : vector<2x512xf32>
    %cst_288 = arith.constant 0.000000e+00 : f32
    %298 = vector.broadcast %cst_288 : f32 to vector<2x512xf32>
    %299 = arith.maximumf %297, %298 : vector<2x512xf32>
    %c0_289 = arith.constant 0 : index
    %c0_290 = arith.constant 0 : index
    %300 = vector.load %arg8[%c0_289, %c0_290] : memref<2x1xf32, #tpu.memory_space<vmem>>, vector<2x1xf32>
    %301 = vector.broadcast %300 : vector<2x1xf32> to vector<2x512xf32>
    %302 = arith.mulf %301, %299 : vector<2x512xf32>
    %cst_291 = arith.constant dense<0.000000e+00> : vector<512xf32>
    %303 = vector.multi_reduction <add>, %302, %cst_291 [0] : vector<2x512xf32> to vector<512xf32>
    %304 = vector.shape_cast %303 : vector<512xf32> to vector<1x512xf32>
    %c0_292 = arith.constant 0 : index
    %c0_293 = arith.constant 0 : index
    %305 = vector.load %arg9[%c0_292, %c0_293] : memref<1x1xf32, #tpu.memory_space<vmem>>, vector<1x1xf32>
    %306 = vector.broadcast %305 : vector<1x1xf32> to vector<1x512xf32>
    %307 = arith.addf %304, %306 : vector<1x512xf32>
    %c0_294 = arith.constant 0 : index
    %c0_295 = arith.constant 0 : index
    %c0_296 = arith.constant 0 : index
    %308 = vector.load %arg11[%c0_294, %c0_295, %c0_296] : memref<1x1x512xf32, #tpu.memory_space<vmem>>, vector<1x1x512xf32>
    %309 = vector.shape_cast %308 : vector<1x1x512xf32> to vector<1x512xf32>
    %310 = vector.shape_cast %307 : vector<1x512xf32> to vector<1x1x512xf32>
    tpu.vector_store %arg11[%c0_294, %c0_295, %c0_296], %310 {strides = array<i32>} : memref<1x1x512xf32, #tpu.memory_space<vmem>>, vector<1x1x512xf32>,
    return
  }
  func.func @transform_0(%arg0: i32) -> (i32, i32, i32) {
    %c0_i32 = arith.constant 0 : i32
    %c0_i32_0 = arith.constant 0 : i32
    %c0_i32_1 = arith.constant 0 : i32
    return %arg0, %c0_i32, %c0_i32_0 : i32, i32, i32
  }
  func.func @transform_1(%arg0: i32) -> (i32, i32) {
    %c0_i32 = arith.constant 0 : i32
    %c0_i32_0 = arith.constant 0 : i32
    %c0_i32_1 = arith.constant 0 : i32
    return %c0_i32, %c0_i32_0 : i32, i32
  }
  func.func @transform_2(%arg0: i32) -> (i32, i32) {
    %c0_i32 = arith.constant 0 : i32
    %c0_i32_0 = arith.constant 0 : i32
    %c0_i32_1 = arith.constant 0 : i32
    return %c0_i32, %c0_i32_0 : i32, i32
  }
  func.func @transform_3(%arg0: i32) -> (i32, i32) {
    %c0_i32 = arith.constant 0 : i32
    %c0_i32_0 = arith.constant 0 : i32
    %c0_i32_1 = arith.constant 0 : i32
    return %c0_i32, %c0_i32_0 : i32, i32
  }
  func.func @transform_4(%arg0: i32) -> (i32, i32) {
    %c0_i32 = arith.constant 0 : i32
    %c0_i32_0 = arith.constant 0 : i32
    %c0_i32_1 = arith.constant 0 : i32
    return %c0_i32, %c0_i32_0 : i32, i32
  }
  func.func @transform_5(%arg0: i32) -> (i32, i32) {
    %c0_i32 = arith.constant 0 : i32
    %c0_i32_0 = arith.constant 0 : i32
    %c0_i32_1 = arith.constant 0 : i32
    return %c0_i32, %c0_i32_0 : i32, i32
  }
  func.func @transform_6(%arg0: i32) -> (i32, i32) {
    %c0_i32 = arith.constant 0 : i32
    %c0_i32_0 = arith.constant 0 : i32
    %c0_i32_1 = arith.constant 0 : i32
    return %c0_i32, %c0_i32_0 : i32, i32
  }
  func.func @transform_7(%arg0: i32) -> (i32, i32) {
    %c0_i32 = arith.constant 0 : i32
    %c0_i32_0 = arith.constant 0 : i32
    %c0_i32_1 = arith.constant 0 : i32
    return %c0_i32, %c0_i32_0 : i32, i32
  }
  func.func @transform_8(%arg0: i32) -> (i32, i32) {
    %c0_i32 = arith.constant 0 : i32
    %c0_i32_0 = arith.constant 0 : i32
    %c0_i32_1 = arith.constant 0 : i32
    return %c0_i32, %c0_i32_0 : i32, i32
  }
  func.func @transform_9(%arg0: i32) -> (i32, i32) {
    %c0_i32 = arith.constant 0 : i32
    %c0_i32_0 = arith.constant 0 : i32
    %c0_i32_1 = arith.constant 0 : i32
    return %c0_i32, %c0_i32_0 : i32, i32
  }
  func.func @transform_10(%arg0: i32) -> (i32, i32, i32) {
    %c0_i32 = arith.constant 0 : i32
    %c0_i32_0 = arith.constant 0 : i32
    %c0_i32_1 = arith.constant 0 : i32
    return %arg0, %c0_i32, %c0_i32_0 : i32, i32, i32
  }
}

</mosaic_0001>

<bundles_post_ra>
// kernel: tpu_custom_call.1
= control target key start
LH: loop header
LB: loop body
LE: loop exit
PB: predicated region body
PF: predicated region fallthrough
CT: control target
= control target key end

     0   :  { %s9350_s0 = inlined_call_operand.hbm [shape: f32[2,32,512], index: 0, kind: input, shape index: {}]   ;;  %s9351_s1 = inlined_call_operand.vmem [shape: f32[2,32], index: 1, kind: input, shape index: {}]   ;;  %s9352_s2 = inlined_call_operand.vmem [shape: f32[2,1], index: 2, kind: input, shape index: {}]   ;;  %s9353_s3 = inlined_call_operand.vmem [shape: f32[2,54], index: 3, kind: input, shape index: {}]   ;;  %s9354_s4 = inlined_call_operand.vmem [shape: f32[2,1], index: 4, kind: input, shape index: {}]   ;;  %s9355_s5 = inlined_call_operand.vmem [shape: f32[2,54], index: 5, kind: input, shape index: {}]   ;;  %s9356_s6 = inlined_call_operand.vmem [shape: f32[2,1], index: 6, kind: input, shape index: {}]   ;;  %s9357_s7 = inlined_call_operand.vmem [shape: f32[2,1], index: 7, kind: input, shape index: {}]   ;;  %s9358_s8 = inlined_call_operand.<no memory space> [shape: f32[1,1], index: 8, kind: input, shape index: {}]   ;;  %s9359_s9 = inlined_call_operand.hbm [shape: f32[27,512], index: 9, kind: input, shape index: {}]   ;;  %s9360_s10 = inlined_call_operand.hbm [shape: f32[2,1,512], index: 10, kind: output, shape index: {}]  }
   0x1   :  { %v15_v0 = vstv %s9358_s8 }
   0x2   :  { %16 = vst [vmem:[#allocation4] sm:$0x1] %v15_v0 }
   0x3   :  { %17 = vsyncpa [#allocation6], 0 }
   0x4   :  { %19 = vsyncpa [#allocation6 + $0x1], 0 }
   0x5   :  { %20 = vsyncpa [#allocation9], 0 }
   0x6   :  { %21 = vsyncpa [#allocation7], 0 }
   0x7   :  { %23 = vsyncpa [#allocation7 + $0x1], 0  ;;  %s6507_s15 = smov 0   ;;  %s6509_s16 = smov 0  }
   0x8   :  { %s6511_s17 = smov 0   ;;  %s6513_s18 = smov 0  }
   0x9 LB: > { %s6528_s8 = sadd.s32 4294967295, %s6430_s18   ;;  %s6121_s19 = sadd.s32 4294967294, %s6430_s18   ;;  %s6430_s18 = sphi %s6513_s18, %s9495_s18   ;;  %s6426_s17 = sphi %s6511_s17, %s9498_s17   ;;  %s6422_s16 = sphi %s6509_s16, %s9497_s16   ;;  %s6418_s15 = sphi %s6507_s15, %s9496_s15  }
   0xa   : > { %p49_p0 = scmp.ne.s32.totalorder %s6422_s16, %s6418_s15  ;;  %p9361_p1 = scmp.eq.s32.totalorder %s6528_s8, 0 }
   0xb   : > { %p268_p3 = scmp.eq.s32.totalorder %s6121_s19, 1  ;;  %p6122_p5 = scmp.ge.s32.totalorder %s6430_s18, 1 }
   0xc   : > { %p6537_p4 = por %p9361_p1, %p49_p0  ;;  %p275_p7 = scmp.lt.s32.totalorder %s6430_s18, 3 }
   0xd   : > { %p6542_p6 = por %p268_p3, %p49_p0  ;;  %s6432_s23 = smov [#allocation8]  }
   0xe   : > { %s9412_s20 = scalar_select %p6537_p4, 1, 0 }
   0xf   : > { %s9413_s21 = scalar_select %p6542_p6, 1, 0 }
  0x10   : > { %p6547_p8 = pnand %p6122_p5, %p275_p7  ;;  %s311_s24 = sshll.u32 %s6432_s23, 4  ;;  %s6551_s24 = int_to_ptr.vmem [resolvable:$true] %s311_s24 }
  0x11   : > { %9414 = sst [smem:[#allocation14_spill]] %s9413_s21  ;;  %s6563_s26 = sadd.s32 1, %s6430_s18  }
  0x12   : > { %s9415_s22 = scalar_select %p6547_p8, 1, 0 }
  0x13   : > { %p6237_p9 = pneg %p6547_p8  ;;  %9417 = sst [smem:[#allocation15_spill]] %s6563_s26 }
  0x14   : > { %s36_s27 = sadd.s32 1, %s6426_s17  ;;  %s33_s28 = ssub.s32 %s6430_s18, %s6563_s26 }
  0x15   : > { %p6558_p11 = pnand %p6237_p9, %p9361_p1  ;;  %s6302_s11 = scalar_lea.hbm %s9359_s9, 2048 }
  0x16   : > { %p6303_p12 = scmp.ne.s32.totalorder %s9359_s9, %s6302_s11  ;;  %p6309_p5 = scmp.lt.u32.totalorder %s6302_s11, %s9359_s9 }
  0x17   : > { %p6304_p13 = pneg %p6558_p11 }
  0x19   : > { %p6305_p0 = pnand %p6304_p13, %p6303_p12 }
  0x1b   : > { %p6306_p3 = pneg %p6305_p0 }
  0x1d   : > { %p6311_p7 = pnand %p6309_p5, %p6306_p3 }
  0x1f   : > { %6314 = shalt.err (!%p6311_p7)
}
  0x20   : > { %s6315_s23 = scalar_lea.vmem %s6551_s24, 2048  ;;  %p6323_p2 = scmp.lt.s32.totalorder %s6551_s24, %s6551_s24 }
  0x21   : > { %p6316_p9 = scmp.ne.s32.totalorder %s6551_s24, %s6315_s23  ;;  %p6324_p6 = scmp.lt.s32.totalorder %s6315_s23, %s6315_s23 }
  0x23   : > { %p6318_p10 = pnand %p6316_p9, %p6304_p13  ;;  %p6325_p4 = por %p6324_p6, %p6323_p2 }
  0x25   : > { %p6319_p1 = pneg %p6318_p10 }
  0x27   : > { %p6326_p8 = pnand %p6325_p4, %p6319_p1 }
  0x29   : > { %6329 = shalt.err (!%p6326_p8)
}
  0x2a   : > { %s9367_s29 = smov 512   ;;  %s6434_s30 = smov 32  }
  0x2b   : > { %6240 = dma.hbm_to_vmem [thread:$0]  (!%p6558_p11), %s9359_s9, 2048, %s6551_s24, [#allocation9], %s9367_s29, %s9367_s29, %s6434_s30  }
  0x2c   : > { %p34_p1 = scmp.eq.s32.totalorder %s33_s28, 0  ;;  %p43_p2 = scmp.ne.s32.totalorder %s6426_s17, %s6422_s16 }
  0x2d   : > { %p44_p4 = scmp.eq.s32.totalorder %s6430_s18, 0  ;;  %p6250_p6 = scmp.lt.s32.totalorder %s6430_s18, 2 }
  0x2e   : > { %s6597_s13 = scalar_select %p34_p1, %s6426_s17, %s36_s27  }
  0x2f   : > { %p45_p8 = por %p44_p4, %p43_p2  ;;  %p9418_p10 = scmp.eq.s32.totalorder %s6528_s8, 1 }
  0x30   : > { %s325_s25 = sand.u32 1, %s6426_s17   ;;  %s6163_s19 = sshll.u32 %s6430_s18, 11 }
  0x31   : > { %p6601_p12 = por %p9418_p10, %p43_p2  ;;  %s6125_s23 = sshll.u32 %s325_s25, 7 }
  0x32   : > { %s6610_s11 = scalar_lea.hbm %s9350_s0, %s6163_s19  ;;  %s329_s24 = scalar_lea.vmem [#allocation5], %s6125_s23 }
  0x33   : > { %s336_s27 = sshll.u32 %s329_s24, 4  ;;  %p6612_p11 = pnand %p6250_p6, %p45_p8  ;;  %s6616_s27 = int_to_ptr.vmem [resolvable:$true] %s336_s27 }
  0x34   : > { %s6618_s12 = scalar_lea.sflag [#allocation6], %s325_s25  ;;  %s6330_s29 = scalar_lea.hbm %s6610_s11, 2048 }
  0x35   : > { %p6331_p13 = scmp.ne.s32.totalorder %s6610_s11, %s6330_s29  ;;  %p6332_p0 = pneg %p6612_p11 }
  0x36   : > { %s6335_s19 = scalar_lea.hbm %s9350_s0, 4096  ;;  %p6336_p7 = scmp.lt.u32.totalorder %s6610_s11, %s9350_s0 }
  0x37   : > { %p6333_p3 = pnand %p6332_p0, %p6331_p13  ;;  %p6337_p9 = scmp.lt.u32.totalorder %s6335_s19, %s6330_s29 }
  0x38   : > { %p6339_p2 = scmp.lt.u32.totalorder %s6330_s29, %s6610_s11 }
  0x39   : > { %p6334_p5 = pneg %p6333_p3  ;;  %p6338_p1 = por %p6337_p9, %p6336_p7 }
  0x3b   : > { %p6340_p4 = por %p6339_p2, %p6338_p1 }
  0x3d   : > { %p6341_p6 = pnand %p6340_p4, %p6334_p5 }
  0x3f   : > { %6344 = shalt.err (!%p6341_p6)
}
  0x40   : > { %s6345_s25 = scalar_lea.vmem %s6616_s27, 2048  ;;  %s6435_s21 = smov [#allocation5]  }
  0x41   : > { %p6346_p8 = scmp.ne.s32.totalorder %s6616_s27, %s6345_s25  ;;  %s6350_s26 = sshll.u32 %s6435_s21, 4  ;;  %s6351_s26 = int_to_ptr.vmem [resolvable:$false] %s6350_s26 }
  0x42   : > { %s6352_s23 = scalar_lea.vmem %s6351_s26, 4096  ;;  %p6353_p3 = scmp.lt.s32.totalorder %s6616_s27, %s6351_s26 }
  0x43   : > { %p6348_p10 = pnand %p6346_p8, %p6332_p0  ;;  %p6354_p7 = scmp.lt.s32.totalorder %s6352_s23, %s6345_s25 }
  0x45   : > { %p6349_p13 = pneg %p6348_p10  ;;  %p6355_p9 = por %p6354_p7, %p6353_p3 }
  0x47   : > { %p6356_p1 = pnand %p6355_p9, %p6349_p13 }
  0x49   : > { %6359 = shalt.err (!%p6356_p1)
}
  0x4a   : > { %s9421_s29 = smov 512   ;;  %p9422_p0 = scmp.ne.s32.totalorder %s9415_s22, 0 }
  0x4b   : > { %6244 = dma.hbm_to_vmem [thread:$0]  (!%p6612_p11), %s6610_s11, 2048, %s6616_s27, %s6618_s12, %s9421_s29, %s9421_s29, %s6434_s30  }
  0x4c   : > { %348 = sbr.rel (%p9422_p0) target bundleno = 1524 (0x5f4), region = 60 }
  0x53   : > { %s6652_s19 = sand.u32 1, %s6422_s16   ;;  %p9423_p5 = scmp.ne.s32.totalorder %s9412_s20, 0 }
  0x54   : > { %s6129_s24 = sshll.u32 %s6652_s19, 7  ;;  %s351_s25 = scalar_lea.sflag [#allocation6], %s6652_s19 }
  0x55   : > { %s6656_s21 = scalar_lea.vmem [#allocation5], %s6129_s24 }
  0x56   : > { %6405 = dma.done.wait (%p9423_p5), %s351_s25, 2048  }
  0x57   : > { %6407 = vsyncadd (%p9423_p5), %s351_s25, 4294965248  ;;  %p9424_p11 = scmp.eq.s32.totalorder %s6528_s8, 0 }
  0x59   : > { %6409 = dma.done.wait (%p9424_p11), [#allocation9], 2048   ;;  %p9425_p2 = pmov %p9424_p11 }
  0x5a   : > { %v9369_v1 = vmov 0.0   ;;  %v9368_v2 = vlaneseq  ;;  %v6437_v3 = vmov 0   ;;  %v6438_v4 = vmov 1983009808   ;;  %v399_v7 = vld [vmem:[%s6656_s21 + $0x8] sm:$0xff]  ;;  %v401_v9 = vld [vmem:[%s6656_s21 + $0x18] sm:$0xff] }
  0x5b   : > { %6411 = vsyncadd (%p9425_p2), [#allocation9], 4294965248  ;;  %395 = vst [vmem:[#allocation2] sm:$0x3f] %v9369_v1  ;;  %488 = vmatprep.mubr.f32.mxu0 %v9369_v1  ;;  %559 = vmatprep.mubr.f32.mxu1 %v9369_v1  ;;  %v577_v5 = vunpack.c.l.s4 %v6438_v4  ;;  %v403_v8 = vld [vmem:[%s6656_s21 + $0x28] sm:$0xff]  ;;  %v405_v11 = vld [vmem:[%s6656_s21 + $0x38] sm:$0xff] }
  0x5c   : > { %396 = vst [vmem:[#allocation2 + $0xe] sm:$0x3f] %v9369_v1  ;;  %6300 = vset.pattern.permute.xlu0 %v6437_v3  ;;  %6301 = vset.pattern.permute.xlu1 %v6437_v3  ;;  %v6671_v6 = vshrl.u32 %v9368_v2, 7  ;;  %v6165_v10 = vpack.c.bf16 %v403_v8, %v399_v7  ;;  %v398_v12 = vld [vmem:[%s6656_s21] sm:$0xff]  ;;  %v6173_v14 = vpack.c.bf16 %v405_v11, %v401_v9  ;;  %v400_v16 = vld [vmem:[%s6656_s21 + $0x10] sm:$0xff]  ;;  %v407_v18 = vld [vmem:[%s6656_s21 + $0x48] sm:$0xff] }
  0x5d   : > { %v402_v13 = vld [vmem:[%s6656_s21 + $0x20] sm:$0xff]  ;;  %v404_v17 = vld [vmem:[%s6656_s21 + $0x30] sm:$0xff]  ;;  %v578_v19 = vunpack.c.0.s8 %v577_v5  ;;  %v411_v22 = vld [vmem:[%s6656_s21 + $0x68] sm:$0xff]  ;;  %vm420_vm0 = vcmask 261120   ;;  %s6439_s27 = smov 96   ;;  %s6440_s28 = smov 92  }
  0x5e   : > { %9426 = vst [vmem:[#allocation16_spill] sm:$0xff] %v6671_v6  ;;  %v6167_v15 = vpack.c.bf16 %v402_v13, %v398_v12  ;;  %v6683_v20 = vsub.s32 0, %v6671_v6  ;;  %6166 = vmatprep.subr.bf16.mxu0 %v6165_v10  ;;  %v6175_v21 = vpack.c.bf16 %v404_v17, %v400_v16  ;;  %v409_v23 = vld [vmem:[%s6656_s21 + $0x58] sm:$0xff]  ;;  %v6689_v25 = vsub.s32 1, %v6671_v6  ;;  %6174 = vmatprep.subr.bf16.mxu1 %v6173_v14  ;;  %v406_v30 = vld [vmem:[%s6656_s21 + $0x40] sm:$0xff]  ;;  %v408_v32 = vld [vmem:[%s6656_s21 + $0x50] sm:$0xff] }
  0x5f   : > { %v413_v24 = vld [vmem:[%s6656_s21 + $0x78] sm:$0xff]  ;;  %v6692_v26 = vsub.s32 2, %v6671_v6  ;;  %v6695_v27 = vsub.s32 3, %v6671_v6  ;;  %v6169_v28 = vpack.c.bf16 %v411_v22, %v407_v18  ;;  %v410_v31 = vld [vmem:[%s6656_s21 + $0x60] sm:$0xff]  ;;  %v412_v34 = vld [vmem:[%s6656_s21 + $0x70] sm:$0xff]  ;;  %v6705_v37 = vsub.s32 %v578_v19, %v6671_v6  ;;  %s6441_s12 = smov 100  }
  0x60   : > { %9427 = vst [vmem:[#allocation17_spill] sm:$0xff] %v6683_v20  ;;  %9428 = vst [vmem:[#allocation18_spill] sm:$0xff] %v6689_v25  ;;  %6168 = vmatpush1.bf16.msra.mxu0 %v6167_v15  ;;  %v6177_v29 = vpack.c.bf16 %v413_v24, %v409_v23  ;;  %6176 = vmatpush1.bf16.msra.mxu1 %v6175_v21  ;;  %v6171_v33 = vpack.c.bf16 %v410_v31, %v406_v30  ;;  %v414_v35 = vld [vmem:[%s9352_s2] sm:$0x3]  ;;  %s6442_s26 = smov 4   ;;  %s6443_s23 = smov 28  }
  0x61   : > { %9429 = vst [vmem:[#allocation19_spill] sm:$0xff] %v6692_v26  ;;  %9430 = vst [vmem:[#allocation20_spill] sm:$0xff] %v6695_v27  ;;  %6170 = vmatprep.subr.bf16.mxu0 %v6169_v28  ;;  %v6179_v36 = vpack.c.bf16 %v412_v34, %v408_v32  ;;  %v691_v38 = vld [vmem:[#allocation8 + $0x1] ss:$8 sm:$0xf]  ;;  %417 = vperm.xlu0 %6300, %v414_v35   ;;  %s6444_s29 = smov 124  }
  0x62   : > { %6178 = vmatprep.subr.bf16.mxu1 %v6177_v29  ;;  %v595_v39 = vld [vmem:[#allocation8] ss:$8 sm:$0xf]  ;;  %v696_v40 = vrot.slane %v691_v38, %v6683_v20  ;;  %v700_v41 = vrot.slane %v691_v38, %v6689_v25  ;;  %v704_v42 = vrot.slane %v691_v38, %v6692_v26  ;;  %v708_v43 = vrot.slane %v691_v38, %v6695_v27  ;;  %v787_v44 = vld [vmem:[#allocation8 + $0x2] ss:$8 sm:$0xf] }
  0x63   : > { %v397_v45 = vld [vmem:[%s9351_s1] sm:$0x3]  ;;  %v600_v46 = vrot.slane %v595_v39, %v6683_v20  ;;  %v604_v47 = vrot.slane %v595_v39, %v6689_v25  ;;  %v608_v48 = vrot.slane %v595_v39, %v6692_v26  ;;  %v612_v49 = vrot.slane %v595_v39, %v6695_v27  ;;  %v1047_v50 = vld [vmem:[#allocation8 + $0x5] ss:$8 sm:$0xf]  ;;  %s6445_s24 = smov 32  }
  0x64   : > { %6172 = vmatpush1.bf16.msra.mxu0 %v6171_v33  ;;  %6180 = vmatpush1.bf16.msra.mxu1 %v6179_v36  ;;  %v709_v51 = vcombine.low %v696_v40, %v700_v41  ;;  %v710_v52 = vcombine.low %v704_v42, %v708_v43  ;;  %v792_v53 = vrot.slane %v787_v44, %v6683_v20  ;;  %v1142_v63 = vld [vmem:[#allocation8 + $0x6] ss:$8 sm:$0xf]  ;;  %v884_v11 = vld [vmem:[#allocation8 + $0x3] ss:$8 sm:$0xf] }
  0x65   : > { %v796_v54 = vrot.slane %v787_v44, %v6689_v25  ;;  %v613_v55 = vcombine.low %v600_v46, %v604_v47  ;;  %v614_v56 = vcombine.low %v608_v48, %v612_v49  ;;  %v800_v57 = vrot.slane %v787_v44, %v6692_v26  ;;  %v1237_v21 = vld [vmem:[#allocation8 + $0x7] ss:$8 sm:$0xf]  ;;  %v1333_v38 = vld [vmem:[#allocation8 + $0x20] ss:$8 sm:$0xf] }
  0x66   : > { %v804_v58 = vrot.slane %v787_v44, %v6695_v27  ;;  %v717_v59 = vrot.slane %v709_v51, %v6705_v37  ;;  %v724_v60 = vrot.slane %v710_v52, %v6705_v37  ;;  %v1052_v62 = vrot.slane %v1047_v50, %v6683_v20  ;;  %v1427_v47 = vld [vmem:[#allocation8 + $0x21] ss:$8 sm:$0xf]  ;;  %s6446_s25 = smov 36   ;;  %s6027_s11 = scalar_lea.sflag [#allocation7], %s6652_s19 }
  0x67   : > { %6132 = vmatmul.mubr.msk.f32.vlgmr.msra.gmra.mrb[0].mxu0 %vm420_vm0, %v397_v45  ;;  %v805_v61 = vcombine.low %v792_v53, %v796_v54  ;;  %6133 = vmatmul.mubr.msk.f32.vlgmr.msra.gmra.mrb[0].mxu1 %vm420_vm0, %v397_v45  ;;  %v621_v0 = vrot.slane %v613_v55, %v6705_v37  ;;  %v628_v3 = vrot.slane %v614_v56, %v6705_v37  ;;  %v1522_v56 = vld [vmem:[#allocation8 + $0x22] ss:$8 sm:$0xf]  ;;  %vm675_vm1 = vcmask 293888  }
  0x68   : > { %v806_v4 = vcombine.low %v800_v57, %v804_v58  ;;  %v1056_v5 = vrot.slane %v1047_v50, %v6689_v25  ;;  %v725_v7 = vcombine.low %v717_v59, %v724_v60  ;;  %v1060_v9 = vrot.slane %v1047_v50, %v6692_v26  ;;  %3261 = vmatprep.mubr.f32.mxu1 %v9369_v1 }
  0x69   : > { %v813_v8 = vrot.slane %v805_v61, %v6705_v37  ;;  %v1064_v10 = vrot.slane %v1047_v50, %v6695_v27  ;;  %v629_v12 = vcombine.low %v621_v0, %v628_v3  ;;  %v1147_v15 = vrot.slane %v1142_v63, %v6683_v20  ;;  %3190 = vmatprep.mubr.f32.mxu0 %v9369_v1  ;;  %v1713_v3 = vld [vmem:[#allocation8 + $0x24] ss:$8 sm:$0xf]  ;;  %v1806_v1 = vld [vmem:[#allocation8 + $0x25] ss:$8 sm:$0xf] }
  0x6a   : > { %v820_v13 = vrot.slane %v806_v4, %v6705_v37  ;;  %v1065_v14 = vcombine.low %v1052_v62, %v1056_v5  ;;  %726 = vrot.lane.b32.xlu1 %v725_v7, %s6439_s27  ;;  %v1151_v17 = vrot.slane %v1142_v63, %v6689_v25  ;;  %v1155_v18 = vrot.slane %v1142_v63, %v6692_v26 }
  0x6b   : > { %v1066_v16 = vcombine.low %v1060_v9, %v1064_v10  ;;  %v1159_v19 = vrot.slane %v1142_v63, %v6695_v27  ;;  %630 = vrot.lane.b32.xlu0 %v629_v12, %s6440_s28  ;;  %v889_v24 = vrot.slane %v884_v11, %v6683_v20  ;;  %v893_v28 = vrot.slane %v884_v11, %v6689_v25 }
  0x6c   : > { %v821_v22 = vcombine.low %v813_v8, %v820_v13  ;;  %v1073_v23 = vrot.slane %v1065_v14, %v6705_v37  ;;  %v1160_v30 = vcombine.low %v1147_v15, %v1151_v17  ;;  %v897_v32 = vrot.slane %v884_v11, %v6692_v26  ;;  %v1872_v13 = vld [vmem:[#allocation8 + $0x26] ss:$8 sm:$0xf] }
  0x6d   : > { %v1080_v29 = vrot.slane %v1066_v16, %v6705_v37  ;;  %v1161_v31 = vcombine.low %v1155_v18, %v1159_v19  ;;  %v901_v33 = vrot.slane %v884_v11, %v6695_v27  ;;  %v902_v34 = vcombine.low %v889_v24, %v893_v28 }
  0x6e   : > { %v1242_v35 = vrot.slane %v1237_v21, %v6683_v20  ;;  %v1246_v36 = vrot.slane %v1237_v21, %v6689_v25  ;;  %822 = vrot.lane.b32.xlu1 %v821_v22, %s6441_s12  ;;  %v1168_v40 = vrot.slane %v1160_v30, %v6705_v37  ;;  %v1250_v42 = vrot.slane %v1237_v21, %v6692_v26 }
  0x6f   : > { %v1081_v39 = vcombine.low %v1073_v23, %v1080_v29  ;;  %v1175_v41 = vrot.slane %v1161_v31, %v6705_v37  ;;  %v903_v43 = vcombine.low %v897_v32, %v901_v33  ;;  %v910_v44 = vrot.slane %v902_v34, %v6705_v37  ;;  %v1617_v23 = vld [vmem:[#allocation8 + $0x23] ss:$8 sm:$0xf] }
  0x70   : > { %v1254_v45 = vrot.slane %v1237_v21, %v6695_v27  ;;  %v1255_v46 = vcombine.low %v1242_v35, %v1246_v36  ;;  %v1338_v49 = vrot.slane %v1333_v38, %v6683_v20  ;;  %v1342_v50 = vrot.slane %v1333_v38, %v6689_v25 }
  0x71   : > { %1082 = vrot.lane.b32.xlu0 %v1081_v39, %s6442_s26  ;;  %v1176_v48 = vcombine.low %v1168_v40, %v1175_v41  ;;  %v1346_v51 = vrot.slane %v1333_v38, %v6692_v26  ;;  %v917_v52 = vrot.slane %v903_v43, %v6705_v37  ;;  %v1350_v55 = vrot.slane %v1333_v38, %v6695_v27  ;;  %v1967_v40 = vld [vmem:[#allocation8 + $0x27] ss:$8 sm:$0xf] }
  0x72   : > { %v1256_v53 = vcombine.low %v1250_v42, %v1254_v45  ;;  %v1263_v54 = vrot.slane %v1255_v46, %v6705_v37  ;;  %v1351_v57 = vcombine.low %v1338_v49, %v1342_v50  ;;  %v1432_v58 = vrot.slane %v1427_v47, %v6683_v20  ;;  %v2063_v49 = vld [vmem:[#allocation8 + $0x40] ss:$8 sm:$0xf] }
  0x73   : > { %1177 = vrot.lane.b32.xlu1 %v1176_v48, %s6443_s23  ;;  %v1436_v59 = vrot.slane %v1427_v47, %v6689_v25  ;;  %v1440_v60 = vrot.slane %v1427_v47, %v6692_v26  ;;  %v918_v61 = vcombine.low %v910_v44, %v917_v52  ;;  %v1352_v63 = vcombine.low %v1346_v51, %v1350_v55 }
  0x74   : > { %v1270_v62 = vrot.slane %v1256_v53, %v6705_v37  ;;  %v1444_v0 = vrot.slane %v1427_v47, %v6695_v27  ;;  %v1359_v4 = vrot.slane %v1351_v57, %v6705_v37  ;;  %v1527_v7 = vrot.slane %v1522_v56, %v6683_v20 }
  0x75   : > { %v1445_v5 = vcombine.low %v1432_v58, %v1436_v59  ;;  %v1531_v8 = vrot.slane %v1522_v56, %v6689_v25  ;;  %919 = vrot.lane.b32.xlu0 %v918_v61, %s6444_s29  ;;  %v1366_v10 = vrot.slane %v1352_v63, %v6705_v37  ;;  %v1535_v12 = vrot.slane %v1522_v56, %v6692_v26  ;;  %v2157_v58 = vld [vmem:[#allocation8 + $0x41] ss:$8 sm:$0xf] }
  0x76   : > { %v1271_v9 = vcombine.low %v1263_v54, %v1270_v62  ;;  %v1446_v11 = vcombine.low %v1440_v60, %v1444_v0  ;;  %v1539_v15 = vrot.slane %v1522_v56, %v6695_v27  ;;  %v1718_v17 = vrot.slane %v1713_v3, %v6683_v20 }
  0x77   : > { %v1453_v14 = vrot.slane %v1445_v5, %v6705_v37  ;;  %v1540_v16 = vcombine.low %v1527_v7, %v1531_v8  ;;  %v1367_v18 = vcombine.low %v1359_v4, %v1366_v10  ;;  %v1722_v21 = vrot.slane %v1713_v3, %v6689_v25  ;;  %v2443_v5 = vld [vmem:[#allocation8 + $0x44] ss:$8 sm:$0xf] }
  0x78   : > { %1272 = vrot.lane.b32.xlu1 %v1271_v9, %s6445_s24  ;;  %v1460_v19 = vrot.slane %v1446_v11, %v6705_v37  ;;  %v1726_v22 = vrot.slane %v1713_v3, %v6692_v26  ;;  %v1541_v24 = vcombine.low %v1535_v12, %v1539_v15  ;;  %v1730_v29 = vrot.slane %v1713_v3, %v6695_v27 }
  0x79   : > { %v1548_v28 = vrot.slane %v1540_v16, %v6705_v37  ;;  %v1877_v30 = vrot.slane %v1872_v13, %v6683_v20  ;;  %1368 = vrot.lane.b32.xlu0 %v1367_v18, %s6446_s25  ;;  %v1731_v32 = vcombine.low %v1718_v17, %v1722_v21  ;;  %v1881_v33 = vrot.slane %v1872_v13, %v6689_v25 }
  0x7a   : > { %v1461_v31 = vcombine.low %v1453_v14, %v1460_v19  ;;  %v1885_v34 = vrot.slane %v1872_v13, %v6692_v26  ;;  %v1555_v35 = vrot.slane %v1541_v24, %v6705_v37  ;;  %v1732_v36 = vcombine.low %v1726_v22, %v1730_v29  ;;  %v2252_v19 = vld [vmem:[#allocation8 + $0x42] ss:$8 sm:$0xf] }
  0x7b   : > { %v1889_v38 = vrot.slane %v1872_v13, %v6695_v27  ;;  %v1622_v39 = vrot.slane %v1617_v23, %v6683_v20  ;;  %v1739_v41 = vrot.slane %v1731_v32, %v6705_v37  ;;  %v1890_v42 = vcombine.low %v1877_v30, %v1881_v33  ;;  %v2537_v32 = vld [vmem:[#allocation8 + $0x45] ss:$8 sm:$0xf] }
  0x7c   : > { %1462 = vrot.lane.b32.xlu1 %v1461_v31, %s6440_s28  ;;  %v1626_v43 = vrot.slane %v1617_v23, %v6689_v25  ;;  %v1630_v44 = vrot.slane %v1617_v23, %v6692_v26  ;;  %v1556_v45 = vcombine.low %v1548_v28, %v1555_v35  ;;  %v1746_v46 = vrot.slane %v1732_v36, %v6705_v37 }
  0x7d   : > { %v1891_v47 = vcombine.low %v1885_v34, %v1889_v38  ;;  %v1634_v48 = vrot.slane %v1617_v23, %v6695_v27  ;;  %v1898_v50 = vrot.slane %v1890_v42, %v6705_v37  ;;  %v1972_v52 = vrot.slane %v1967_v40, %v6683_v20  ;;  %v2347_v42 = vld [vmem:[#allocation8 + $0x43] ss:$8 sm:$0xf] }
  0x7e   : > { %v1635_v51 = vcombine.low %v1622_v39, %v1626_v43  ;;  %v1976_v53 = vrot.slane %v1967_v40, %v6689_v25  ;;  %1557 = vrot.lane.b32.xlu0 %v1556_v45, %s6439_s27  ;;  %v1747_v54 = vcombine.low %v1739_v41, %v1746_v46  ;;  %v1980_v57 = vrot.slane %v1967_v40, %v6692_v26 }
  0x7f   : > { %v1905_v55 = vrot.slane %v1891_v47, %v6705_v37  ;;  %v1636_v56 = vcombine.low %v1630_v44, %v1634_v48  ;;  %v1984_v60 = vrot.slane %v1967_v40, %v6695_v27  ;;  %v2068_v62 = vrot.slane %v2063_v49, %v6683_v20 }
  0x80   : > { %v1643_v59 = vrot.slane %v1635_v51, %v6705_v37  ;;  %v1985_v61 = vcombine.low %v1972_v52, %v1976_v53  ;;  %1748 = vrot.lane.b32.xlu1 %v1747_v54, %s6444_s29  ;;  %v2072_v3 = vrot.slane %v2063_v49, %v6689_v25  ;;  %v2076_v4 = vrot.slane %v2063_v49, %v6692_v26  ;;  %v2697_v51 = vld [vmem:[#allocation8 + $0x47] ss:$8 sm:$0xf] }
  0x81   : > { %v1906_v63 = vcombine.low %v1898_v50, %v1905_v55  ;;  %v1650_v0 = vrot.slane %v1636_v56, %v6705_v37  ;;  %v1986_v7 = vcombine.low %v1980_v57, %v1984_v60  ;;  %v2080_v9 = vrot.slane %v2063_v49, %v6695_v27 }
  0x82   : > { %v1993_v8 = vrot.slane %v1985_v61, %v6705_v37  ;;  %v2162_v10 = vrot.slane %v2157_v58, %v6683_v20  ;;  %v2081_v12 = vcombine.low %v2068_v62, %v2072_v3  ;;  %v2166_v13 = vrot.slane %v2157_v58, %v6689_v25 }
  0x83   : > { %1907 = vrot.lane.b32.xlu0 %v1906_v63, %s6442_s26  ;;  %v1651_v11 = vcombine.low %v1643_v59, %v1650_v0  ;;  %v2170_v14 = vrot.slane %v2157_v58, %v6692_v26  ;;  %v2000_v15 = vrot.slane %v1986_v7, %v6705_v37  ;;  %v2082_v16 = vcombine.low %v2076_v4, %v2080_v9  ;;  %v2793_v0 = vld [vmem:[#allocation8 + $0x60] ss:$8 sm:$0xf] }
  0x84   : > { %v2174_v17 = vrot.slane %v2157_v58, %v6695_v27  ;;  %v2448_v18 = vrot.slane %v2443_v5, %v6683_v20  ;;  %v2089_v21 = vrot.slane %v2081_v12, %v6705_v37  ;;  %v2175_v22 = vcombine.low %v2162_v10, %v2166_v13  ;;  %v2887_v12 = vld [vmem:[#allocation8 + $0x61] ss:$8 sm:$0xf] }
  0x85   : > { %1652 = vrot.lane.b32.xlu1 %v1651_v11, %s6441_s12  ;;  %v2452_v23 = vrot.slane %v2443_v5, %v6689_v25  ;;  %v2456_v24 = vrot.slane %v2443_v5, %v6692_v26  ;;  %v2001_v28 = vcombine.low %v1993_v8, %v2000_v15  ;;  %v2096_v29 = vrot.slane %v2082_v16, %v6705_v37 }
  0x86   : > { %v2176_v30 = vcombine.low %v2170_v14, %v2174_v17  ;;  %v2460_v31 = vrot.slane %v2443_v5, %v6695_v27  ;;  %v2183_v33 = vrot.slane %v2175_v22, %v6705_v37  ;;  %v2257_v35 = vrot.slane %v2252_v19, %v6683_v20  ;;  %v2982_v22 = vld [vmem:[#allocation8 + $0x62] ss:$8 sm:$0xf] }
  0x87   : > { %v2461_v34 = vcombine.low %v2448_v18, %v2452_v23  ;;  %v2261_v36 = vrot.slane %v2252_v19, %v6689_v25  ;;  %2002 = vrot.lane.b32.xlu0 %v2001_v28, %s6443_s23  ;;  %v2097_v38 = vcombine.low %v2089_v21, %v2096_v29  ;;  %v2265_v41 = vrot.slane %v2252_v19, %v6692_v26 }
  0x88   : > { %v2190_v39 = vrot.slane %v2176_v30, %v6705_v37  ;;  %v2462_v40 = vcombine.low %v2456_v24, %v2460_v31  ;;  %v2269_v44 = vrot.slane %v2252_v19, %v6695_v27  ;;  %v2542_v46 = vrot.slane %v2537_v32, %v6683_v20 }
  0x89   : > { %v2469_v43 = vrot.slane %v2461_v34, %v6705_v37  ;;  %v2270_v45 = vcombine.low %v2257_v35, %v2261_v36  ;;  %2098 = vrot.lane.b32.xlu1 %v2097_v38, %s6445_s24  ;;  %v2546_v49 = vrot.slane %v2537_v32, %v6689_v25  ;;  %v2550_v50 = vrot.slane %v2537_v32, %v6692_v26 }
  0x8a   : > { %v2191_v47 = vcombine.low %v2183_v33, %v2190_v39  ;;  %v2476_v48 = vrot.slane %v2462_v40, %v6705_v37  ;;  %v2271_v52 = vcombine.low %v2265_v41, %v2269_v44  ;;  %v2554_v54 = vrot.slane %v2537_v32, %v6695_v27 }
  0x8b   : > { %v2278_v53 = vrot.slane %v2270_v45, %v6705_v37  ;;  %v2352_v55 = vrot.slane %v2347_v42, %v6683_v20  ;;  %v2555_v57 = vcombine.low %v2542_v46, %v2546_v49  ;;  %v2356_v58 = vrot.slane %v2347_v42, %v6689_v25 }
  0x8c   : > { %2192 = vrot.lane.b32.xlu0 %v2191_v47, %s6446_s25  ;;  %v2477_v56 = vcombine.low %v2469_v43, %v2476_v48  ;;  %v2360_v59 = vrot.slane %v2347_v42, %v6692_v26  ;;  %v2285_v60 = vrot.slane %v2271_v52, %v6705_v37  ;;  %v2556_v61 = vcombine.low %v2550_v50, %v2554_v54 }
  0x8d   : > { %v2364_v62 = vrot.slane %v2347_v42, %v6695_v27  ;;  %v2702_v63 = vrot.slane %v2697_v51, %v6683_v20  ;;  %v2563_v3 = vrot.slane %v2555_v57, %v6705_v37  ;;  %v2365_v4 = vcombine.low %v2352_v55, %v2356_v58 }
  0x8e   : > { %v2706_v5 = vrot.slane %v2697_v51, %v6689_v25  ;;  %v2710_v7 = vrot.slane %v2697_v51, %v6692_v26  ;;  %v2286_v8 = vcombine.low %v2278_v53, %v2285_v60  ;;  %v2570_v9 = vrot.slane %v2556_v61, %v6705_v37 }
  0x8f   : > { %v2366_v10 = vcombine.low %v2360_v59, %v2364_v62  ;;  %v2714_v11 = vrot.slane %v2697_v51, %v6695_v27  ;;  %v2373_v13 = vrot.slane %v2365_v4, %v6705_v37  ;;  %v2798_v15 = vrot.slane %v2793_v0, %v6683_v20 }
  0x90   : > { %2478 = vrot.lane.b32.xlu0 %v2477_v56, %s6441_s12  ;;  %v2715_v14 = vcombine.low %v2702_v63, %v2706_v5  ;;  %v2802_v16 = vrot.slane %v2793_v0, %v6689_v25  ;;  %2287 = vrot.lane.b32.xlu1 %v2286_v8, %s6440_s28  ;;  %v2571_v17 = vcombine.low %v2563_v3, %v2570_v9  ;;  %v1870_v8 = vld [vmem:[#allocation2 + $0xe] sm:$0x3]  ;;  %vm966_vm2 = vcmask 31744  }
  0x91   : > { %v2380_v18 = vrot.slane %v2366_v10, %v6705_v37  ;;  %v2716_v19 = vcombine.low %v2710_v7, %v2714_v11  ;;  %v2806_v21 = vrot.slane %v2793_v0, %v6692_v26  ;;  %v2810_v24 = vrot.slane %v2793_v0, %v6695_v27  ;;  %v2061_v11 = vld [vmem:[#allocation2 + $0xe] sm:$0x3] }
  0x92   : > { %v2723_v23 = vrot.slane %v2715_v14, %v6705_v37  ;;  %v2811_v28 = vcombine.low %v2798_v15, %v2802_v16  ;;  %v2892_v29 = vrot.slane %v2887_v12, %v6683_v20  ;;  %v2896_v32 = vrot.slane %v2887_v12, %v6689_v25  ;;  %v1965_v15 = vld [vmem:[#allocation2 + $0xe] sm:$0x3] }
  0x93   : > { %v2381_v30 = vcombine.low %v2373_v13, %v2380_v18  ;;  %v2730_v31 = vrot.slane %v2716_v19, %v6705_v37  ;;  %v2900_v33 = vrot.slane %v2887_v12, %v6692_v26  ;;  %v2812_v34 = vcombine.low %v2806_v21, %v2810_v24  ;;  %v2155_v24 = vld [vmem:[#allocation2 + $0xe] sm:$0x3] }
  0x94   : > { %v2819_v35 = vrot.slane %v2811_v28, %v6705_v37  ;;  %v2904_v36 = vrot.slane %v2887_v12, %v6695_v27  ;;  %v2987_v38 = vrot.slane %v2982_v22, %v6683_v20  ;;  %2572 = vrot.lane.b32.xlu1 %v2571_v17, %s6444_s29  ;;  %v2905_v40 = vcombine.low %v2892_v29, %v2896_v32 }
  0x95   : > { %2382 = vrot.lane.b32.xlu0 %v2381_v30, %s6439_s27  ;;  %v2731_v39 = vcombine.low %v2723_v23, %v2730_v31  ;;  %v2991_v41 = vrot.slane %v2982_v22, %v6689_v25  ;;  %v2826_v42 = vrot.slane %v2812_v34, %v6705_v37  ;;  %v2995_v44 = vrot.slane %v2982_v22, %v6692_v26 }
  0x96   : > { %v2906_v43 = vcombine.low %v2900_v33, %v2904_v36  ;;  %v2999_v45 = vrot.slane %v2982_v22, %v6695_v27  ;;  %v2913_v46 = vrot.slane %v2905_v40, %v6705_v37  ;;  %v2250_v33 = vld [vmem:[#allocation2 + $0x10] sm:$0x3]  ;;  %vm868_vm3 = vcmask 228352  }
  0x97   : > { %v3000_v47 = vcombine.low %v2987_v38, %v2991_v41  ;;  %v2827_v48 = vcombine.low %v2819_v35, %v2826_v42  ;;  %v2441_v36 = vld [vmem:[#allocation2 + $0x10] sm:$0x3]  ;;  %vm825_vm4 = vcmask 818176   ;;  %vm729_vm5 = vcmask 785408  }
  0x98   : > { %v2920_v49 = vrot.slane %v2906_v43, %v6705_v37  ;;  %v3001_v50 = vcombine.low %v2995_v44, %v2999_v45  ;;  %2732 = vrot.lane.b32.xlu1 %v2731_v39, %s6442_s26  ;;  %v2535_v45 = vld [vmem:[#allocation2 + $0x10] sm:$0x3]  ;;  %vm922_vm6 = vcmask 1014784   ;;  %vm633_vm7 = vcmask 752640  }
  0x99   : > { %v3008_v51 = vrot.slane %v3000_v47, %v6705_v37  ;;  %2828 = vrot.lane.b32.xlu0 %v2827_v48, %s6443_s23  ;;  %v2345_v47 = vld [vmem:[#allocation2 + $0x10] sm:$0x3]  ;;  %vm3113_vm8 = vcmask 1045504   ;;  %vm3109_vm9 = vcmask 441344   ;;  %vm5949_vm10 = vcmask 1041408  }
  0x9a   : > { %v2921_v52 = vcombine.low %v2913_v46, %v2920_v49  ;;  %v3015_v53 = vrot.slane %v3001_v50, %v6705_v37 }
  0x9c   : > { %v3016_v54 = vcombine.low %v3008_v51, %v3015_v53  ;;  %2922 = vrot.lane.b32.xlu1 %v2921_v52, %s6445_s24 }
  0x9e   : > { %3017 = vrot.lane.b32.xlu0 %v3016_v54, %s6446_s25 }
  0xdc   : > { %v6882_v55 = vpop.permute.xlu1 %726 }
  0xe0   : > { %v6884_v56 = vpop.permute.xlu1 %822  ;;  %v6886_v57 = vpop.permute.xlu0 %417 }
  0xe4   : > { %v6890_v59 = vpop.permute.xlu0 %630 }
  0xe5   : > { %v6888_v58 = vpop.permute.xlu1 %1177 }
  0xe8   : > { %v6892_v60 = vpop.permute.xlu0 %1082 }
  0xea   : > { %v6894_v61 = vpop.permute.xlu1 %1272 }
  0xeb   : > { %9431 = vst [vmem:[#allocation21_spill] sm:$0xff] %v6894_v61 }
  0xec   : > { %v6896_v62 = vpop.permute.xlu0 %919 }
  0xee   : > { %v6898_v63 = vpop.permute.xlu1 %1462 }
  0xf0   : > { %v6900_v0 = vpop.permute.xlu0 %1368 }
  0xf2   : > { %v6902_v3 = vpop.permute.xlu1 %1748 }
  0xf4   : > { %v6904_v4 = vpop.permute.xlu0 %1557 }
  0xf7   : > { %v6906_v5 = vpop.permute.xlu1 %1652 }
  0xf8   : > { %9432 = vst [vmem:[#allocation22_spill] sm:$0xff] %v6906_v5  ;;  %v6908_v7 = vpop.permute.xlu0 %1907 }
  0xf9   : > { %v1909_v9 = vrot.slane %v6908_v7, 6 }
  0xfb   : > { %v6911_v10 = vpop.permute.xlu1 %2098  ;;  %v1914_v12 = vmul.f32 %v1909_v9, %v1870_v8 }
  0xfc   : > { %v2100_v13 = vrot.slane %v6911_v10, 6  ;;  %v6916_v14 = vpop.permute.xlu0 %2002 }
  0xfd   : > { %v2004_v16 = vrot.slane %v6916_v14, 6  ;;  %v1940_v18 = vrot.slane %v1914_v12, %v6705_v37 }
  0xfe   : > { %v2105_v17 = vmul.f32 %v2100_v13, %v2061_v11  ;;  %v2695_v11 = vld [vmem:[#allocation2 + $0x12] sm:$0x3] }
  0xff   : > { %v2009_v19 = vmul.f32 %v2004_v16, %v1965_v15  ;;  %v1941_v22 = vcombine.low %v1940_v18, %v1940_v18 }
 0x100   : > { %v2131_v21 = vrot.slane %v2105_v17, %v6705_v37  ;;  %v6925_v23 = vpop.permute.xlu0 %2192 }
 0x101   : > { %v2029_v28 = vcombine.low %v2009_v19, %v2009_v19  ;;  %v2194_v29 = vrot.slane %v6925_v23, 6  ;;  %1950 = vrot.lane.b32.xlu1 %v1941_v22, %s6444_s29 }
 0x102   : > { %2140 = vrot.lane.b32.xlu0 %v2131_v21, %s6439_s27  ;;  %v6929_v30 = vpop.permute.xlu1 %2287 }
 0x103   : > { %v9383_v31 = vrot.slane %v6929_v30, 6  ;;  %v2199_v32 = vmul.f32 %v2194_v29, %v2155_v24  ;;  %v2036_v34 = vrot.slane %v2029_v28, %v6705_v37 }
 0x104   : > { %v6936_v35 = vpop.permute.xlu0 %2478 }
 0x105   : > { %v9378_v38 = vrot.slane %v6936_v35, 6  ;;  %v2037_v40 = vcombine.low %v2036_v34, %v2036_v34  ;;  %v2294_v41 = vmul.f32 %v9383_v31, %v2250_v33  ;;  %v2219_v44 = vcombine.low %v2199_v32, %v2199_v32 }
 0x106   : > { %v6939_v39 = vpop.permute.xlu1 %2572 }
 0x107   : > { %v2485_v42 = vmul.f32 %v9378_v38, %v2441_v36  ;;  %v9381_v43 = vrot.slane %v6939_v39, 6  ;;  %2046 = vrot.lane.b32.xlu1 %v2037_v40, %s6441_s12  ;;  %v2320_v51 = vrot.slane %v2294_v41, %v6705_v37  ;;  %v2226_v53 = vrot.slane %v2219_v44, %v6705_v37 }
 0x108   : > { %v6947_v46 = vpop.permute.xlu0 %2382 }
 0x109   : > { %v2511_v48 = vrot.slane %v2485_v42, %v6705_v37  ;;  %v9382_v49 = vrot.slane %v6947_v46, 6  ;;  %v2579_v52 = vmul.f32 %v9381_v43, %v2535_v45  ;;  %v2321_v15 = vcombine.low %v2320_v51, %v2320_v51 }
 0x10a   : > { %v6951_v50 = vpop.permute.xlu1 %2732 }
 0x10b   : > { %2520 = vrot.lane.b32.xlu0 %v2511_v48, %s6443_s23  ;;  %v2389_v54 = vmul.f32 %v9382_v49, %v2345_v47  ;;  %v9380_v8 = vrot.slane %v6951_v50, 6  ;;  %v2599_v18 = vcombine.low %v2579_v52, %v2579_v52 }
 0x10d   : > { %v2409_v12 = vcombine.low %v2389_v54, %v2389_v54  ;;  %v2739_v17 = vmul.f32 %v9380_v8, %v2695_v11  ;;  %v2606_v21 = vrot.slane %v2599_v18, %v6705_v37  ;;  %v1910_v18 = vsel %vm966_vm2, %v1909_v9, %v6908_v7 }
 0x10e   : > { %v632_v7 = vrot.slane %v6890_v59, 6  ;;  %v9379_v9 = vrot.slane %v6882_v55, 6 }
 0x10f   : > { %2235 = vrot.lane.b32.xlu0 %v2226_v53, %s6440_s28  ;;  %v2759_v19 = vcombine.low %v2739_v17, %v2739_v17  ;;  %v2416_v22 = vrot.slane %v2409_v12, %v6705_v37 }
 0x111   : > { %v2417_v24 = vcombine.low %v2416_v22, %v2416_v22  ;;  %v2766_v28 = vrot.slane %v2759_v19, %v6705_v37  ;;  %v2005_v19 = vsel %vm868_vm3, %v2004_v16, %v6916_v14  ;;  %v9373_v16 = vrot.slane %v6896_v62, 6 }
 0x113   : > { %2330 = vrot.lane.b32.xlu0 %v2321_v15, %s6446_s25  ;;  %v2767_v32 = vcombine.low %v2766_v28, %v2766_v28  ;;  %v2101_v15 = vsel %vm420_vm0, %v2100_v13, %v6911_v10 }
 0x117   : > { %2615 = vrot.lane.b32.xlu0 %v2606_v21, %s6442_s26 }
 0x11b   : > { %2426 = vrot.lane.b32.xlu0 %v2417_v24, %s6445_s24 }
 0x11f   : > { %2776 = vrot.lane.b32.xlu0 %v2767_v32, %s6444_s29 }
 0x13a   : > { %v490_v33 = vpop.f32.mrb[0].mxu0  ;;  %v561_v36 = vpop.f32.mrb[0].mxu1 }
 0x13b   : > { %v491_v34 = vadd.f32 %v490_v33, %v6886_v57  ;;  %v492_v40 = vpop.f32.mrb[1].mxu0  ;;  %v562_v41 = vadd.f32 %v561_v36, %v6886_v57  ;;  %v563_v44 = vpop.f32.mrb[1].mxu1  ;;  %v730_v33 = vsel %vm729_vm5, %v9379_v9, %v6882_v55  ;;  %v9375_v36 = vrot.slane %v6888_v58, 6 }
 0x13c   : > { %v493_v42 = vadd.f32 %v492_v40, %v6886_v57  ;;  %v564_v47 = vadd.f32 %v563_v44, %v6886_v57  ;;  %v2195_v57 = vsel %vm675_vm1, %v2194_v29, %v6925_v23  ;;  %v9377_v29 = vrot.slane %v6884_v56, 6 }
 0x13d   : > { %v566_v45 = vmax.f32 %v491_v34, 0.0  ;;  %v568_v48 = vmax.f32 %v562_v41, 0.0  ;;  %v9376_v34 = vrot.slane %v6892_v60, 6  ;;  %v923_v40 = vsel %vm922_vm6, %v9373_v16, %v6896_v62  ;;  %v2631_v16 = vld [vmem:[#allocation8 + $0x46] ss:$8 sm:$0xf] }
 0x13e   : > { %v567_v51 = vmax.f32 %v493_v42, 0.0  ;;  %v569_v52 = vmax.f32 %v564_v47, 0.0  ;;  %v826_v14 = vsel %vm825_vm4, %v9377_v29, %v6884_v56  ;;  %v1823_v29 = vrot.slane %v1806_v1, %v6695_v27 }
 0x13f   : > { %v2640_v43 = vrot.slane %v2631_v16, %v6689_v25  ;;  %v2644_v49 = vrot.slane %v2631_v16, %v6692_v26  ;;  %v2648_v31 = vrot.slane %v2631_v16, %v6695_v27 }
 0x140   : > { %v574_v53 = vcombine.low %v566_v45, %v567_v51  ;;  %v575_v54 = vcombine.low %v568_v48, %v569_v52  ;;  %v1085_v48 = vsel %vm966_vm2, %v9376_v34, %v6892_v60  ;;  %v1180_v51 = vsel %vm868_vm3, %v9375_v36, %v6888_v58 }
 0x141   : > { %v9371_v52 = vrot.slane %v6894_v61, 6  ;;  %v1815_v36 = vrot.slane %v1806_v1, %v6689_v25  ;;  %v1819_v34 = vrot.slane %v1806_v1, %v6692_v26 }
 0x142   : > { %v582_v11 = vrot.slane %v574_v53, %v6705_v37  ;;  %v589_v12 = vrot.slane %v575_v54, %v6705_v37  ;;  %v9374_v53 = vrot.slane %v6904_v4, 6 }
 0x144   : > { %v590_v17 = vcombine.low %v582_v11, %v589_v12 }
 0x146   : > { %592 = vst [vmem:[#allocation2 + $0x6] sm:$0xff] %v590_v17  ;;  %v6993_v10 = vmul.f32 %v1910_v18, %v590_v17  ;;  %v6995_v13 = vmul.f32 %v2005_v19, %v590_v17  ;;  %v6997_v21 = vmul.f32 %v2101_v15, %v590_v17  ;;  %v6999_v23 = vmul.f32 %v2195_v57, %v590_v17 }
 0x147   : > { %v1275_v17 = vsel %vm420_vm0, %v9371_v52, %v6894_v61  ;;  %v1560_v18 = vsel %vm729_vm5, %v9374_v53, %v6904_v4  ;;  %v9372_v19 = vrot.slane %v6906_v5, 6  ;;  %v1811_v53 = vrot.slane %v1806_v1, %v6683_v20 }
 0x14d   : > { %v593_v22 = vld [vmem:[#allocation2] sm:$0xff]  ;;  %v594_v24 = vld [vmem:[#allocation2 + $0x8] sm:$0x3] }
 0x14e   : > { %v638_v28 = vmul.f32 %v632_v7, %v594_v24  ;;  %v7009_v32 = vmul.f32 %v826_v14, %v593_v22  ;;  %v7021_v41 = vmul.f32 %v730_v33, %v593_v22  ;;  %v7023_v42 = vmul.f32 %v923_v40, %v593_v22  ;;  %v7030_v47 = vld [vmem:[#allocation2 + $0x2] sm:$0xff] }
 0x14f   : > { %v7046_v54 = vmul.f32 %v1085_v48, %v7030_v47  ;;  %v7049_v11 = vmul.f32 %v1180_v51, %v7030_v47  ;;  %v7059_v57 = vld [vmem:[#allocation2 + $0x4] sm:$0xff]  ;;  %v7075_v24 = vmul.f32 %v1275_v17, %v7030_v47  ;;  %v1655_v48 = vsel %vm825_vm4, %v9372_v19, %v6906_v5 }
 0x150   : > { %v664_v44 = vrot.slane %v638_v28, %v6705_v37  ;;  %v7028_v45 = vrot.slane %v7009_v32, %v6705_v37  ;;  %v7053_v12 = vrot.slane %v7023_v42, %v6705_v37  ;;  %v7057_v15 = vrot.slane %v7021_v41, %v6705_v37  ;;  %v981_v40 = vld [vmem:[#allocation8 + $0x4] ss:$8 sm:$0xf] }
 0x151   : > { %v7078_v14 = vmul.f32 %v1560_v18, %v7059_v57  ;;  %v7082_v28 = vrot.slane %v7049_v11, %v6705_v37  ;;  %v7086_v33 = vrot.slane %v7046_v54, %v6705_v37  ;;  %v7101_v17 = vmul.f32 %v1655_v48, %v7059_v57 }
 0x152   : > { %673 = vrot.lane.b32.xlu0 %v664_v44, %s6446_s25  ;;  %860 = vrot.lane.b32.xlu1 %v7028_v45, %s6443_s23  ;;  %v634_v44 = vsel %vm633_vm7, %v632_v7, %v6890_v59  ;;  %v7105_v18 = vrot.slane %v7075_v24, %v6705_v37  ;;  %v1331_v59 = vld [vmem:[#allocation2 + $0xa] sm:$0x3]  ;;  %v986_v7 = vrot.slane %v981_v40, %v6683_v20 }
 0x153   : > { %v7098_v51 = vmul.f32 %v634_v44, %v593_v22  ;;  %v7109_v2 = vrot.slane %v7078_v14, %v6705_v37  ;;  %v990_v52 = vrot.slane %v981_v40, %v6689_v25  ;;  %v1370_v22 = vrot.slane %v6900_v0, 6 }
 0x154   : > { %v1464_v44 = vrot.slane %v6898_v63, 6  ;;  %v994_v48 = vrot.slane %v981_v40, %v6692_v26  ;;  %v998_v19 = vrot.slane %v981_v40, %v6695_v27  ;;  %v7127_v9 = vrot.slane %v7101_v17, %v6705_v37  ;;  %v1711_v26 = vld [vmem:[#allocation2 + $0xc] sm:$0x3] }
 0x155   : > { %v1375_v38 = vmul.f32 %v1370_v22, %v1331_v59  ;;  %v7131_v8 = vrot.slane %v7098_v51, %v6705_v37  ;;  %v2636_v40 = vrot.slane %v2631_v16, %v6683_v20  ;;  %v999_v1 = vcombine.low %v986_v7, %v990_v52 }
 0x156   : > { %962 = vrot.lane.b32.xlu1 %v7053_v12, %s6442_s26  ;;  %766 = vrot.lane.b32.xlu0 %v7057_v15, %s6445_s24  ;;  %v1465_v59 = vsel %vm633_vm7, %v1464_v44, %v6898_v63  ;;  %v1000_v6 = vcombine.low %v994_v48, %v998_v19  ;;  %v1824_v20 = vcombine.low %v1811_v53, %v1815_v36  ;;  %v1750_v7 = vrot.slane %v6902_v3, 6 }
 0x157   : > { %v1825_v5 = vcombine.low %v1819_v34, %v1823_v29  ;;  %v7146_v25 = vmul.f32 %v1465_v59, %v7059_v57  ;;  %v7150_v16 = vrot.slane %v6993_v10, %v6705_v37  ;;  %v1401_v27 = vrot.slane %v1375_v38, %v6705_v37 }
 0x158   : > { %v2649_v61 = vcombine.low %v2636_v40, %v2640_v43  ;;  %v2650_v52 = vcombine.low %v2644_v49, %v2648_v31  ;;  %v1007_v29 = vrot.slane %v999_v1, %v6705_v37  ;;  %v1371_v34 = vsel %vm675_vm1, %v1370_v22, %v6900_v0 }
 0x159   : > { %v1014_v36 = vrot.slane %v1000_v6, %v6705_v37  ;;  %v1832_v53 = vrot.slane %v1824_v20, %v6705_v37  ;;  %v1839_v38 = vrot.slane %v1825_v5, %v6705_v37  ;;  %v7164_v31 = vmul.f32 %v1371_v34, %v7030_v47  ;;  %v7178_v20 = vld [vmem:[#allocation2 + $0x8] sm:$0xff] }
 0x15a   : > { %1214 = vrot.lane.b32.xlu1 %v7082_v28, %s6441_s12  ;;  %1121 = vrot.lane.b32.xlu0 %v7086_v33, %s6444_s29  ;;  %v1755_v43 = vmul.f32 %v1750_v7, %v1711_v26  ;;  %v7168_v49 = vrot.slane %v6995_v13, %v6705_v37  ;;  %v9433_v0 = vrot.slane %v6929_v30, 6  ;;  %v2657_v5 = vrot.slane %v2649_v61, %v6705_v37 }
 0x15b   : > { %v2664_v47 = vrot.slane %v2650_v52, %v6705_v37  ;;  %v1751_v26 = vsel %vm922_vm6, %v1750_v7, %v6902_v3  ;;  %v9434_v19 = vrot.slane %v6947_v46, 6  ;;  %v1015_v22 = vcombine.low %v1007_v29, %v1014_v36  ;;  %v979_v3 = vld [vmem:[#allocation2 + $0x2] sm:$0xff] }
 0x15c   : > { %v2290_v6 = vsel %vm633_vm7, %v9433_v0, %v6929_v30  ;;  %v1840_v48 = vcombine.low %v1832_v53, %v1839_v38  ;;  %v7193_v61 = vmul.f32 %v1751_v26, %v7059_v57  ;;  %v7200_v1 = vrot.slane %v7164_v31, %v6705_v37  ;;  %v1804_v52 = vld [vmem:[#allocation2 + $0x6] sm:$0xff] }
 0x15d   : > { %v2385_v30 = vsel %vm729_vm5, %v9434_v19, %v6947_v46  ;;  %v7196_v40 = vmul.f32 %v2290_v6, %v7178_v20  ;;  %v1781_v59 = vrot.slane %v1755_v43, %v6705_v37  ;;  %v2665_v7 = vcombine.low %v2657_v5, %v2664_v47  ;;  %v2629_v57 = vld [vmem:[#allocation2 + $0xa] sm:$0xff] }
 0x15e   : > { %1314 = vrot.lane.b32.xlu1 %v7105_v18, %s6439_s27  ;;  %1594 = vrot.lane.b32.xlu0 %v7109_v2, %s6445_s24  ;;  %v9435_v46 = vrot.slane %v6939_v39, 6  ;;  %v7211_v34 = vmul.f32 %v2385_v30, %v7178_v20  ;;  %v9436_v36 = vrot.slane %v6951_v50, 6  ;;  %v7217_v38 = vld [vmem:[#allocation2 + $0xa] sm:$0xff]  ;;  %v7221_v43 = vrot.slane %v7193_v61, %v6705_v37 }
 0x15f   : > { %v1017_v0 = vmul.f32 %v1015_v22, %v979_v3  ;;  %v1842_v6 = vmul.f32 %v1840_v48, %v1804_v52  ;;  %v7232_v47 = vrot.slane %v6999_v23, %v6705_v37 }
 0x160   : > { %v2575_v29 = vsel %vm922_vm6, %v9435_v46, %v6939_v39  ;;  %v2735_v53 = vsel %vm966_vm2, %v9436_v36, %v6951_v50  ;;  %v7225_v39 = vrot.slane %v7196_v40, %v6705_v37  ;;  %v2667_v50 = vmul.f32 %v2665_v7, %v2629_v57  ;;  %v689_v57 = vld [vmem:[#allocation2 + $0x8] sm:$0x3] }
 0x161   : > { %v7228_v5 = vmul.f32 %v2575_v29, %v7178_v20  ;;  %v1019_v26 = vcombine.high %v1017_v0, %v1017_v0  ;;  %6134 = vst.sshfl [vmem:[#allocation3 + $0x20] sm:$0x3 pattern:$0x76325410] %v1017_v0  ;;  %v1026_v19 = vrot.slane %v1017_v0, %v6705_v37  ;;  %v1858_v30 = vrot.slane %v1842_v6, %v6705_v37 }
 0x162   : > { %1694 = vrot.lane.b32.xlu0 %v7127_v9, %s6443_s23  ;;  %665 = vrot.lane.b32.xlu1 %v7131_v8, %s6446_s25  ;;  %6137 = vst.sshfl [vmem:[#allocation3 + $0x70] sm:$0x30 pattern:$0x76325410] %v1842_v6  ;;  %v7241_v22 = vmul.f32 %v2735_v53, %v7217_v38  ;;  %v1844_v48 = vcombine.low %v1842_v6, %v1842_v6 }
 0x163   : > { %6138 = vst.sshfl [vmem:[#allocation3 + $0xa8] sm:$0xc pattern:$0x76325410] %v2667_v50  ;;  %v2676_v3 = vrot.slane %v2667_v50, %v6705_v37  ;;  %v7246_v52 = vrot.slane %v7211_v34, %v6705_v37  ;;  %v1033_v7 = vrot.slane %v1019_v26, %v6705_v37  ;;  %v1034_v46 = vcombine.high %v1026_v19, %v1026_v19 }
 0x164   : > { %6135 = vst.sshfl [vmem:[#allocation3 + $0x30] sm:$0x3 pattern:$0x76325410] %v1019_v26  ;;  %v1860_v29 = vcombine.high %v1858_v30, %v1858_v30  ;;  %v1851_v36 = vrot.slane %v1844_v48, %v6705_v37  ;;  %v9437_v19 = vrot.slane %v6882_v55, 6  ;;  %v9438_v55 = vrot.slane %v6936_v35, 6 }
 0x165   : > { %6136 = vst.sshfl [vmem:[#allocation3 + $0x60] sm:$0x30 pattern:$0x76325410] %v1844_v48  ;;  %v2684_v0 = vcombine.low %v2676_v3, %v2676_v3  ;;  %v1035_v6 = vcombine.high %v1033_v7, %v1033_v7  ;;  %1041 = vst [vmem:[#allocation3 + $0x28] sm:$0x3] %v1034_v46  ;;  %v7259_v48 = vrot.slane %v7228_v5, %v6705_v37 }
 0x166   : > { %1944 = vrot.lane.b32.xlu0 %v7150_v16, %s6444_s29  ;;  %1410 = vrot.lane.b32.xlu1 %v1401_v27, %s6440_s28  ;;  %v7172_v27 = vrot.slane %v7146_v25, %v6705_v37  ;;  %1868 = vst [vmem:[#allocation3 + $0x78] sm:$0xc] %v1860_v29  ;;  %v734_v30 = vmul.f32 %v9437_v19, %v689_v57  ;;  %v785_v7 = vld [vmem:[#allocation2 + $0x8] sm:$0x3] }
 0x167   : > { %2690 = vst [vmem:[#allocation3 + $0xa0] sm:$0x30] %v2684_v0  ;;  %v641_v3 = vcombine.high %v7098_v51, %v7098_v51  ;;  %1043 = vst [vmem:[#allocation3 + $0x38] sm:$0x3] %v1035_v6  ;;  %v2481_v46 = vsel %vm825_vm4, %v9438_v55, %v6936_v35  ;;  %v7277_v29 = vrot.slane %v6997_v21, %v6705_v37  ;;  %v9439_v51 = vrot.slane %v6884_v56, 6 }
 0x168   : > { %v754_v0 = vcombine.low %v734_v30, %v734_v30  ;;  %v656_v30 = vcombine.high %v7131_v8, %v7131_v8 }
 0x169   : > { %v830_v57 = vmul.f32 %v9439_v51, %v785_v7  ;;  %v9441_v7 = vrot.slane %v6888_v58, 6  ;;  %v946_v51 = vcombine.low %v7053_v12, %v7053_v12 }
 0x16a   : > { %2044 = vrot.lane.b32.xlu0 %v7168_v49, %s6441_s12  ;;  %1501 = vrot.lane.b32.xlu1 %v7172_v27, %s6446_s25  ;;  %v761_v56 = vrot.slane %v754_v0, %v6705_v37  ;;  %v930_v0 = vcombine.low %v7023_v42, %v7023_v42  ;;  %v1108_v42 = vcombine.high %v7086_v33, %v7086_v33 }
 0x16b   : > { %v856_v6 = vrot.slane %v830_v57, %v6705_v37 }
 0x16c   : > { %v7329_v12 = vrot.slane %v930_v0, %v6705_v37 }
 0x16e   : > { %1402 = vrot.lane.b32.xlu0 %v7200_v1, %s6440_s28  ;;  %1790 = vrot.lane.b32.xlu1 %v1781_v59, %s6442_s26  ;;  %v2669_v59 = vcombine.high %v2667_v50, %v2667_v50  ;;  %v1859_v50 = vcombine.high %v1851_v36, %v1851_v36  ;;  %v7282_v36 = vmul.f32 %v2481_v46, %v7178_v20  ;;  %v1045_v20 = vld [vmem:[#allocation2 + $0xa] sm:$0x3] }
 0x16f   : > { %v753_v46 = vcombine.high %v7057_v15, %v7057_v15 }
 0x170   : > { %v2683_v53 = vrot.slane %v2669_v59, %v6705_v37  ;;  %6139 = vst.sshfl [vmem:[#allocation3 + $0xb8] sm:$0xc pattern:$0x76325410] %v2669_v59  ;;  %v7263_v59 = vrot.slane %v7241_v22, %v6705_v37  ;;  %1866 = vst [vmem:[#allocation3 + $0x68] sm:$0xc] %v1859_v50  ;;  %v7293_v35 = vrot.slane %v7282_v36, %v6705_v37 }
 0x171   : > { %v1140_v50 = vld [vmem:[#allocation2 + $0xa] sm:$0x3] }
 0x172   : > { %1782 = vrot.lane.b32.xlu0 %v7221_v43, %s6442_s26  ;;  %2324 = vrot.lane.b32.xlu1 %v7225_v39, %s6446_s25  ;;  %v2685_v26 = vcombine.low %v2683_v53, %v2683_v53  ;;  %v7285_v53 = vrot.slane %v641_v3, %v6705_v37  ;;  %v857_v3 = vcombine.low %v856_v6, %v856_v6 }
 0x173   : > { %v1184_v55 = vmul.f32 %v9441_v7, %v1140_v50  ;;  %v1298_v6 = vcombine.low %v7105_v18, %v7105_v18  ;;  %v737_v50 = vcombine.low %v7021_v41, %v7021_v41  ;;  %v1282_v18 = vcombine.low %v7075_v24, %v7075_v24  ;;  %v1425_v24 = vld [vmem:[#allocation2 + $0xc] sm:$0x3] }
 0x174   : > { %2692 = vst [vmem:[#allocation3 + $0xb0] sm:$0x30] %v2685_v26  ;;  %v9440_v26 = vrot.slane %v6892_v60, 6  ;;  %v833_v60 = vcombine.high %v7009_v32, %v7009_v32  ;;  %v7326_v32 = vpop.permute.xlu0 %2828  ;;  %v1393_v7 = vcombine.high %v7200_v1, %v7200_v1  ;;  %v1378_v1 = vcombine.high %v7164_v31, %v7164_v31 }
 0x175   : > { %v1210_v15 = vrot.slane %v1184_v55, %v6705_v37  ;;  %v7350_v33 = vrot.slane %v737_v50, %v6705_v37  ;;  %v1092_v55 = vcombine.low %v7046_v54, %v7046_v54  ;;  %v1567_v54 = vcombine.high %v7078_v14, %v7078_v14 }
 0x176   : > { %2231 = vrot.lane.b32.xlu0 %v7232_v47, %s6440_s28  ;;  %2424 = vrot.lane.b32.xlu1 %v7246_v52, %s6445_s24  ;;  %v1089_v19 = vmul.f32 %v9440_v26, %v1045_v20  ;;  %v7317_v8 = vrot.slane %v833_v60, %v6705_v37  ;;  %v1187_v20 = vcombine.high %v7049_v11, %v7049_v11 }
 0x177   : > { %v7361_v11 = vrot.slane %v1282_v18, %v6705_v37  ;;  %v7381_v60 = vrot.slane %v1092_v55, %v6705_v37  ;;  %v1662_v14 = vcombine.low %v7101_v17, %v7101_v17  ;;  %v1678_v50 = vcombine.low %v7127_v9, %v7127_v9 }
 0x178   : > { %v1109_v57 = vcombine.low %v1089_v19, %v1089_v19  ;;  %v7342_v26 = vpop.permute.xlu0 %3017  ;;  %v7347_v19 = vrot.slane %v1187_v20, %v6705_v37  ;;  %v1472_v55 = vcombine.low %v7146_v25, %v7146_v25  ;;  %v2408_v25 = vcombine.low %v7246_v52, %v7246_v52 }
 0x17a   : > { %2611 = vrot.lane.b32.xlu0 %v7259_v48, %s6442_s26  ;;  %2774 = vrot.lane.b32.xlu1 %v7263_v59, %s6444_s29  ;;  %v1116_v58 = vrot.slane %v1109_v57, %v6705_v37 }
 0x17c   : > { %v7358_v41 = vpop.permute.xlu0 %2140 }
 0x17d   : > { %9442 = vst [vmem:[#allocation23_spill] sm:$0xff] %v7358_v41 }
 0x17e   : > { %2132 = vrot.lane.b32.xlu1 %v7277_v29, %s6439_s27  ;;  %669 = vrot.lane.b32.xlu0 %v7285_v53, %s6446_s25 }
 0x182   : > { %2512 = vrot.lane.b32.xlu1 %v7293_v35, %s6443_s23  ;;  %770 = vrot.lane.b32.xlu0 %v761_v56, %s6445_s24  ;;  %v1211_v56 = vcombine.low %v1210_v15, %v1210_v15 }
 0x186   : > { %667 = vrot.lane.b32.xlu1 %v656_v30, %s6446_s25  ;;  %866 = vrot.lane.b32.xlu0 %v857_v3, %s6443_s23  ;;  %v1202_v30 = vcombine.low %v7082_v28, %v7082_v28  ;;  %v848_v3 = vcombine.low %v7028_v45, %v7028_v45  ;;  %v1469_v28 = vmul.f32 %v1464_v44, %v1425_v24  ;;  %v9444_v44 = vrot.slane %v6904_v4, 6 }
 0x187   : > { %v1488_v45 = vcombine.high %v7172_v27, %v7172_v27  ;;  %v7400_v27 = vrot.slane %v1567_v54, %v6705_v37  ;;  %v7410_v4 = vrot.slane %v1662_v14, %v6705_v37  ;;  %v2758_v14 = vcombine.low %v7263_v59, %v7263_v59 }
 0x188   : > { %v1489_v31 = vcombine.low %v1469_v28, %v1469_v28  ;;  %v2108_v28 = vcombine.high %v6997_v21, %v6997_v21  ;;  %v2582_v59 = vcombine.low %v7228_v5, %v7228_v5 }
 0x18a   : > { %768 = vrot.lane.b32.xlu1 %v753_v46, %s6445_s24  ;;  %960 = vrot.lane.b32.xlu0 %v946_v51, %s6442_s26  ;;  %v7374_v46 = vpop.permute.xlu0 %2520  ;;  %v1520_v51 = vld [vmem:[#allocation2 + $0xc] sm:$0x3]  ;;  %v1496_v0 = vrot.slane %v1489_v31, %v6705_v37 }
 0x18b   : > { %9443 = vst [vmem:[#allocation24_spill] sm:$0xff] %v7374_v46  ;;  %v1564_v57 = vmul.f32 %v9444_v44, %v1520_v51  ;;  %v1932_v44 = vcombine.low %v7150_v16, %v7150_v16  ;;  %v2202_v16 = vcombine.low %v6999_v23, %v6999_v23 }
 0x18d   : > { %v1590_v15 = vrot.slane %v1564_v57, %v6705_v37  ;;  %v7515_v23 = vrot.slane %v2202_v16, %v6705_v37 }
 0x18e   : > { %864 = vrot.lane.b32.xlu1 %v7317_v8, %s6443_s23  ;;  %1125 = vrot.lane.b32.xlu0 %v1116_v58, %s6444_s29  ;;  %v7392_v63 = vpop.permute.xlu0 %2235  ;;  %v7397_v58 = vrot.slane %v1378_v1, %v6705_v37  ;;  %v7467_v1 = vrot.slane %v1472_v55, %v6705_v37  ;;  %v7542_v55 = vrot.slane %v2582_v59, %v6705_v37 }
 0x18f   : > { %v1591_v17 = vcombine.low %v1590_v15, %v1590_v15 }
 0x192   : > { %958 = vrot.lane.b32.xlu1 %v7329_v12, %s6442_s26  ;;  %1220 = vrot.lane.b32.xlu0 %v1211_v56, %s6441_s12  ;;  %v7413_v56 = vpop.permute.xlu0 %2330 }
 0x196   : > { %1123 = vrot.lane.b32.xlu1 %v1108_v42, %s6444_s29  ;;  %1312 = vrot.lane.b32.xlu0 %v1298_v6, %s6439_s27  ;;  %v1773_v42 = vcombine.high %v7221_v43, %v7221_v43  ;;  %v1917_v6 = vcombine.high %v6993_v10, %v6993_v10  ;;  %v7424_v20 = vpop.permute.xlu0 %2615  ;;  %v2012_v43 = vcombine.low %v6995_v13, %v6995_v13  ;;  %v7438_v10 = vpop.permute.xlu1 %2922 }
 0x198   : > { %v7429_v18 = vrot.slane %v1917_v6, %v6705_v37  ;;  %v7444_v9 = vrot.slane %v2012_v43, %v6705_v37  ;;  %v9445_v6 = vrot.slane %v6896_v62, 6  ;;  %v2392_v43 = vcombine.low %v7211_v34, %v7211_v34  ;;  %v9447_v34 = vld [vmem:[#allocation21_spill] sm:$0xff] }
 0x19a   : > { %1218 = vrot.lane.b32.xlu1 %v7347_v19, %s6441_s12  ;;  %762 = vrot.lane.b32.xlu0 %v7350_v33, %s6445_s24  ;;  %v7452_v13 = vpop.permute.xlu1 %1950 }
 0x19e   : > { %1310 = vrot.lane.b32.xlu1 %v7361_v11, %s6439_s27  ;;  %1212 = vrot.lane.b32.xlu0 %v1202_v30, %s6441_s12  ;;  %v1758_v30 = vcombine.high %v7193_v61, %v7193_v61  ;;  %v2028_v61 = vcombine.low %v7168_v49, %v7168_v49  ;;  %v7470_v49 = vrot.slane %v2108_v28, %v6705_v37  ;;  %v1235_v28 = vld [vmem:[#allocation2 + $0xa] sm:$0x3] }
 0x1a0   : > { %v7441_v24 = vrot.slane %v1758_v30, %v6705_v37 }
 0x1a2   : > { %858 = vrot.lane.b32.xlu1 %v848_v3, %s6443_s23  ;;  %1404 = vrot.lane.b32.xlu0 %v1393_v7, %s6440_s28  ;;  %v7446_v3 = vpop.permute.xlu0 %2426  ;;  %v1582_v7 = vcombine.low %v7109_v2, %v7109_v2  ;;  %v2488_v2 = vcombine.high %v7282_v36, %v7282_v36  ;;  %v2123_v36 = vcombine.high %v7277_v29, %v7277_v29 }
 0x1a3   : > { %v2218_v29 = vcombine.high %v7232_v47, %v7232_v47 }
 0x1a4   : > { %v7495_v52 = vrot.slane %v2488_v2, %v6705_v37  ;;  %v9448_v2 = vrot.slane %v9447_v34, 6 }
 0x1a6   : > { %1117 = vrot.lane.b32.xlu1 %v7381_v60, %s6444_s29  ;;  %1503 = vrot.lane.b32.xlu0 %v1488_v45, %s6446_s25  ;;  %v7464_v51 = vpop.permute.xlu0 %2776  ;;  %v2047_v45 = vpop.permute.xlu1 %2046 }
 0x1aa   : > { %1406 = vrot.lane.b32.xlu1 %v7397_v58, %s6440_s28  ;;  %1598 = vrot.lane.b32.xlu0 %v7400_v27, %s6445_s24 }
 0x1ae   : > { %1505 = vrot.lane.b32.xlu1 %v1496_v0, %s6446_s25  ;;  %1690 = vrot.lane.b32.xlu0 %v7410_v4, %s6443_s23 }
 0x1b2   : > { %1600 = vrot.lane.b32.xlu1 %v1591_v17, %s6445_s24  ;;  %1784 = vrot.lane.b32.xlu0 %v1773_v42, %s6442_s26  ;;  %v2297_v17 = vcombine.high %v7196_v40, %v7196_v40  ;;  %v882_v42 = vld [vmem:[#allocation2 + $0x8] sm:$0x3] }
 0x1b4   : > { %v7526_v40 = vrot.slane %v2297_v17, %v6705_v37 }
 0x1b6   : > { %1692 = vrot.lane.b32.xlu1 %v1678_v50, %s6443_s23  ;;  %1948 = vrot.lane.b32.xlu0 %v7429_v18, %s6444_s29  ;;  %v927_v50 = vmul.f32 %v9445_v6, %v882_v42  ;;  %v2742_v42 = vcombine.low %v7241_v22, %v7241_v22 }
 0x1b8   : > { %v947_v5 = vcombine.low %v927_v50, %v927_v50 }
 0x1ba   : > { %1786 = vrot.lane.b32.xlu1 %v7441_v24, %s6442_s26  ;;  %2040 = vrot.lane.b32.xlu0 %v7444_v9, %s6441_s12 }
 0x1be   : > { %2042 = vrot.lane.b32.xlu1 %v2028_v61, %s6441_s12  ;;  %1592 = vrot.lane.b32.xlu0 %v1582_v7, %s6445_s24  ;;  %v7539_v7 = vrot.slane %v2392_v43, %v6705_v37  ;;  %v1203_v43 = vcombine.low %v7347_v19, %v7347_v19 }
 0x1c2   : > { %1497 = vrot.lane.b32.xlu1 %v7467_v1, %s6446_s25  ;;  %2136 = vrot.lane.b32.xlu0 %v7470_v49, %s6439_s27 }
 0x1c4   : > { %v7480_v21 = vpop.permute.xlu0 %673  ;;  %v7482_v54 = vpop.permute.xlu1 %860 }
 0x1c6   : > { %1942 = vrot.lane.b32.xlu1 %v1932_v44, %s6444_s29  ;;  %2422 = vrot.lane.b32.xlu0 %v2408_v25, %s6445_s24  ;;  %v1279_v25 = vmul.f32 %v9448_v2, %v1235_v28  ;;  %v849_v44 = vcombine.low %v7317_v8, %v7317_v8  ;;  %v2598_v8 = vcombine.high %v7259_v48, %v7259_v48 }
 0x1c7   : > { %v7580_v48 = vrot.slane %v2742_v42, %v6705_v37 }
 0x1c8   : > { %v7488_v57 = vpop.permute.xlu1 %962  ;;  %v7490_v31 = vpop.permute.xlu0 %766  ;;  %v1299_v17 = vcombine.low %v1279_v25, %v1279_v25  ;;  %v657_v25 = vcombine.high %v7285_v53, %v7285_v53  ;;  %v1394_v53 = vcombine.high %v7397_v58, %v7397_v58  ;;  %v1107_v58 = vcombine.high %v7381_v60, %v7381_v60 }
 0x1ca   : > { %2134 = vrot.lane.b32.xlu1 %v2123_v36, %s6439_s27  ;;  %2516 = vrot.lane.b32.xlu0 %v7495_v52, %s6443_s23  ;;  %v1306_v28 = vrot.slane %v1299_v17, %v6705_v37  ;;  %v752_v17 = vcombine.high %v7350_v33, %v7350_v33 }
 0x1cc   : > { %v7504_v0 = vpop.permute.xlu1 %1214  ;;  %v7506_v15 = vpop.permute.xlu0 %1121  ;;  %v1307_v2 = vcombine.low %v1306_v28, %v1306_v28 }
 0x1ce   : > { %2233 = vrot.lane.b32.xlu1 %v2218_v29, %s6440_s28  ;;  %2772 = vrot.lane.b32.xlu0 %v2758_v14, %s6444_s29  ;;  %v2503_v14 = vcombine.high %v7293_v35, %v7293_v35  ;;  %v954_v29 = vrot.slane %v947_v5, %v6705_v37 }
 0x1d0   : > { %v7521_v30 = vpop.permute.xlu1 %1314  ;;  %v7523_v47 = vpop.permute.xlu0 %1594  ;;  %v955_v50 = vcombine.low %v954_v29, %v954_v29 }
 0x1d2   : > { %2328 = vrot.lane.b32.xlu1 %v7526_v40, %s6446_s25  ;;  %2227 = vrot.lane.b32.xlu0 %v7515_v23, %s6440_s28 }
 0x1d4   : > { %v7534_v61 = vpop.permute.xlu0 %1694  ;;  %v7536_v62 = vpop.permute.xlu1 %665 }
 0x1d5   : > { %9446 = vst [vmem:[#allocation25_spill] sm:$0xff] %v7534_v61 }
 0x1d6   : > { %2420 = vrot.lane.b32.xlu1 %v7539_v7, %s6445_s24  ;;  %2607 = vrot.lane.b32.xlu0 %v7542_v55, %s6442_s26 }
 0x1d8   : > { %v7552_v36 = vpop.permute.xlu0 %1944  ;;  %v7554_v16 = vpop.permute.xlu1 %1410 }
 0x1d9   : > { %9449 = vst [vmem:[#allocation21_spill] sm:$0xff] %v7552_v36 }
 0x1da   : > { %2514 = vrot.lane.b32.xlu1 %v2503_v14, %s6443_s23  ;;  %862 = vrot.lane.b32.xlu0 %v849_v44, %s6443_s23  ;;  %v945_v44 = vcombine.low %v7329_v12, %v7329_v12 }
 0x1dc   : > { %v7565_v59 = vpop.permute.xlu0 %2044  ;;  %v7567_v6 = vpop.permute.xlu1 %1501 }
 0x1dd   : > { %v2051_v35 = vsel %vm825_vm4, %v7565_v59, %v2047_v45  ;;  %v2312_v45 = vcombine.low %v7225_v39, %v7225_v39 }
 0x1de   : > { %2059 = vst [vmem:[#allocation3 + $0x78] sm:$0xc0] %v2051_v35  ;;  %2613 = vrot.lane.b32.xlu1 %v2598_v8, %s6442_s26  ;;  %964 = vrot.lane.b32.xlu0 %v955_v50, %s6442_s26  ;;  %v1615_v8 = vld [vmem:[#allocation2 + $0xc] sm:$0x3] }
 0x1df   : > { %v9450_v50 = vld [vmem:[#allocation22_spill] sm:$0xff] }
 0x1e0   : > { %v7575_v22 = vpop.permute.xlu0 %1402  ;;  %v7577_v5 = vpop.permute.xlu1 %1790  ;;  %v9451_v35 = vrot.slane %v9450_v50, 6 }
 0x1e2   : > { %2770 = vrot.lane.b32.xlu1 %v7580_v48, %s6444_s29  ;;  %1216 = vrot.lane.b32.xlu0 %v1203_v43, %s6441_s12  ;;  %v1659_v33 = vmul.f32 %v9451_v35, %v1615_v8  ;;  %v1487_v43 = vcombine.high %v7467_v1, %v7467_v1  ;;  %v2830_v1 = vrot.slane %v7326_v32, 6  ;;  %v2313_v35 = vcombine.low %v7526_v40, %v7526_v40 }
 0x1e3   : > { %v1933_v40 = vcombine.low %v7429_v18, %v7429_v18 }
 0x1e4   : > { %v7588_v34 = vpop.permute.xlu0 %1782  ;;  %v7590_v19 = vpop.permute.xlu1 %2324 }
 0x1e6   : > { %2322 = vrot.lane.b32.xlu1 %v2312_v45, %s6446_s25  ;;  %1316 = vrot.lane.b32.xlu0 %v1307_v2, %s6439_s27  ;;  %v1297_v2 = vcombine.low %v7361_v11, %v7361_v11 }
 0x1e8   : > { %v7598_v14 = vpop.permute.xlu0 %2231  ;;  %v7600_v29 = vpop.permute.xlu1 %2424 }
 0x1e9   : > { %v2431_v39 = vsel %vm420_vm0, %v7600_v29, %v7446_v3 }
 0x1ea   : > { %2439 = vst [vmem:[#allocation3 + $0x98] sm:$0xc0] %v2431_v39  ;;  %956 = vrot.lane.b32.xlu0 %v945_v44, %s6442_s26  ;;  %671 = vrot.lane.b32.xlu1 %v657_v25, %s6446_s25  ;;  %v1774_v25 = vcombine.high %v7441_v24, %v7441_v24  ;;  %v1583_v39 = vcombine.low %v7400_v27, %v7400_v27 }
 0x1eb   : > { %v2831_v24 = vsel %vm868_vm3, %v2830_v1, %v7326_v32 }
 0x1ec   : > { %v7611_v12 = vpop.permute.xlu0 %2611  ;;  %v7613_v42 = vpop.permute.xlu1 %2774 }
 0x1ed   : > { %v2781_v3 = vsel %vm922_vm6, %v7613_v42, %v7464_v51  ;;  %v1679_v51 = vcombine.low %v1659_v33, %v1659_v33 }
 0x1ee   : > { %2789 = vst [vmem:[#allocation3 + $0xb8] sm:$0xc0] %v2781_v3  ;;  %1408 = vrot.lane.b32.xlu0 %v1394_v53, %s6440_s28  ;;  %764 = vrot.lane.b32.xlu1 %v752_v17, %s6445_s24  ;;  %v2027_v17 = vcombine.low %v7444_v9, %v7444_v9  ;;  %v2924_v3 = vrot.slane %v7438_v10, 6  ;;  %v2834_v9 = vmul.f32 %v2831_v24, %v7217_v38 }
 0x1ef   : > { %v1686_v8 = vrot.slane %v1679_v51, %v6705_v37 }
 0x1f0   : > { %v7626_v28 = vpop.permute.xlu1 %2132  ;;  %v7628_v45 = vpop.permute.xlu0 %669 }
 0x1f2   : > { %1499 = vrot.lane.b32.xlu0 %v1487_v43, %s6446_s25  ;;  %1119 = vrot.lane.b32.xlu1 %v1107_v58, %s6444_s29  ;;  %v1687_v43 = vcombine.low %v1686_v8, %v1686_v8 }
 0x1f4   : > { %v7636_v44 = vpop.permute.xlu1 %2512  ;;  %v771_v60 = vpop.permute.xlu0 %770 }
 0x1f6   : > { %1788 = vrot.lane.b32.xlu0 %v1774_v25, %s6442_s26  ;;  %1308 = vrot.lane.b32.xlu1 %v1297_v2, %s6439_s27 }
 0x1f8   : > { %v668_v53 = vpop.permute.xlu1 %667  ;;  %v867_v11 = vpop.permute.xlu0 %866 }
 0x1f9   : > { %v676_v50 = vsel %vm675_vm1, %v7536_v62, %v668_v53  ;;  %v677_v27 = vsel %vm675_vm1, %v668_v53, %v7628_v45  ;;  %v2925_v62 = vsel %vm420_vm0, %v2924_v3, %v7438_v10 }
 0x1fa   : > { %684 = vst [vmem:[#allocation3] sm:$0x3] %v676_v50  ;;  %685 = vst [vmem:[#allocation3 + $0x8] sm:$0x3] %v677_v27  ;;  %2038 = vrot.lane.b32.xlu0 %v2027_v17, %s6441_s12  ;;  %1596 = vrot.lane.b32.xlu1 %v1583_v39, %s6445_s24  ;;  %v2838_v39 = vcombine.high %v2834_v9, %v2834_v9  ;;  %v7674_v17 = vrot.slane %v2834_v9, %v6705_v37 }
 0x1fb   : > { %v2928_v53 = vmul.f32 %v2925_v62, %v7217_v38  ;;  %v1677_v9 = vcombine.low %v7410_v4, %v7410_v4  ;;  %v2124_v4 = vcombine.high %v7470_v49, %v7470_v49 }
 0x1fc   : > { %v769_v33 = vpop.permute.xlu1 %768  ;;  %v961_v58 = vpop.permute.xlu0 %960  ;;  %v7686_v18 = vrot.slane %v2838_v39, %v6705_v37 }
 0x1fd   : > { %v774_v51 = vsel %vm420_vm0, %v7490_v31, %v769_v33  ;;  %v775_v2 = vsel %vm420_vm0, %v769_v33, %v771_v60  ;;  %v969_v25 = vsel %vm966_vm2, %v961_v58, %v7488_v57  ;;  %v2407_v60 = vcombine.low %v7539_v7, %v7539_v7 }
 0x1fe   : > { %782 = vst [vmem:[#allocation3 + $0x10] sm:$0xc] %v774_v51  ;;  %783 = vst [vmem:[#allocation3 + $0x18] sm:$0xc] %v775_v2  ;;  %2326 = vrot.lane.b32.xlu0 %v2313_v35, %s6446_s25  ;;  %1696 = vrot.lane.b32.xlu1 %v1687_v43, %s6443_s23  ;;  %v2932_v27 = vcombine.low %v2928_v53, %v2928_v53  ;;  %v2853_v33 = vcombine.high %v7674_v17, %v7674_v17 }
 0x1ff   : > { %977 = vst [vmem:[#allocation3 + $0x10] sm:$0xc0] %v969_v25  ;;  %v2854_v2 = vcombine.high %v7686_v18, %v7686_v18  ;;  %v3019_v25 = vrot.slane %v7342_v26, 6  ;;  %v7714_v49 = vrot.slane %v2928_v53, %v6705_v37 }
 0x200   : > { %v7679_v8 = vpop.permute.xlu1 %864  ;;  %v1126_v24 = vpop.permute.xlu0 %1125  ;;  %v7699_v43 = vrot.slane %v2932_v27, %v6705_v37  ;;  %v2217_v27 = vcombine.high %v7515_v23, %v7515_v23 }
 0x201   : > { %v872_v50 = vsel %vm868_vm3, %v7679_v8, %v867_v11  ;;  %v2948_v23 = vcombine.high %v7714_v49, %v7714_v49 }
 0x202   : > { %880 = vst [vmem:[#allocation3 + $0x18] sm:$0x30] %v872_v50  ;;  %2418 = vrot.lane.b32.xlu0 %v2407_v60, %s6445_s24  ;;  %1946 = vrot.lane.b32.xlu1 %v1933_v40, %s6444_s29 }
 0x204   : > { %v7690_v35 = vpop.permute.xlu1 %958  ;;  %v1221_v7 = vpop.permute.xlu0 %1220 }
 0x205   : > { %v968_v11 = vsel %vm966_vm2, %v7690_v35, %v961_v58 }
 0x206   : > { %976 = vst [vmem:[#allocation3 + $0x8] sm:$0xc0] %v968_v11  ;;  %2864 = vrot.lane.b32.xlu0 %v2853_v33, %s6441_s12  ;;  %1688 = vrot.lane.b32.xlu1 %v1677_v9, %s6443_s23  ;;  %v3020_v9 = vsel %vm675_vm1, %v3019_v25, %v7342_v26 }
 0x207   : > { %v3023_v53 = vmul.f32 %v3020_v9, %v7217_v38 }
 0x208   : > { %v1124_v62 = vpop.permute.xlu1 %1123  ;;  %v1313_v51 = vpop.permute.xlu0 %1312 }
 0x209   : > { %v1129_v58 = vsel %vm922_vm6, %v7506_v15, %v1124_v62  ;;  %v1130_v40 = vsel %vm922_vm6, %v1124_v62, %v1126_v24  ;;  %v1320_v39 = vsel %vm729_vm5, %v1313_v51, %v7521_v30  ;;  %v2947_v24 = vcombine.high %v7699_v43, %v7699_v43 }
 0x20a   : > { %1137 = vst [vmem:[#allocation3 + $0x30] sm:$0xc] %v1129_v58  ;;  %1138 = vst [vmem:[#allocation3 + $0x38] sm:$0xc] %v1130_v40  ;;  %2868 = vrot.lane.b32.xlu0 %v2854_v2, %s6441_s12  ;;  %2138 = vrot.lane.b32.xlu1 %v2124_v4, %s6439_s27  ;;  %v2504_v62 = vcombine.high %v7495_v52, %v7495_v52  ;;  %v3027_v38 = vcombine.high %v3023_v53, %v3023_v53 }
 0x20b   : > { %1328 = vst [vmem:[#allocation3 + $0x30] sm:$0xc0] %v1320_v39  ;;  %v3034_v58 = vrot.slane %v3023_v53, %v6705_v37  ;;  %v2597_v52 = vcombine.high %v7542_v55, %v7542_v55  ;;  %v2757_v55 = vcombine.low %v7580_v48, %v7580_v48  ;;  %v2791_v53 = vld [vmem:[#allocation2 + $0x12] sm:$0x3] }
 0x20c   : > { %v7716_v60 = vpop.permute.xlu1 %1218  ;;  %v7718_v50 = vpop.permute.xlu0 %762 }
 0x20d   : > { %v1225_v33 = vsel %vm825_vm4, %v7716_v60, %v1221_v7 }
 0x20e   : > { %1233 = vst [vmem:[#allocation3 + $0x38] sm:$0x30] %v1225_v33  ;;  %2959 = vrot.lane.b32.xlu0 %v2947_v24, %s6439_s27  ;;  %2229 = vrot.lane.b32.xlu1 %v2217_v27, %s6440_s28  ;;  %v3041_v33 = vrot.slane %v3027_v38, %v6705_v37  ;;  %v3042_v38 = vcombine.low %v3034_v58, %v3034_v58 }
 0x210   : > { %v7733_v11 = vpop.permute.xlu1 %1310  ;;  %v1213_v4 = vpop.permute.xlu0 %1212 }
 0x211   : > { %v1319_v2 = vsel %vm729_vm5, %v7733_v11, %v1313_v51  ;;  %v1222_v7 = vsel %vm825_vm4, %v1213_v4, %v7504_v0 }
 0x212   : > { %1327 = vst [vmem:[#allocation3 + $0x28] sm:$0xc0] %v1319_v2  ;;  %1230 = vst [vmem:[#allocation3 + $0x20] sm:$0x30] %v1222_v7  ;;  %2963 = vrot.lane.b32.xlu0 %v2948_v23, %s6439_s27  ;;  %2518 = vrot.lane.b32.xlu1 %v2504_v62, %s6443_s23  ;;  %v2885_v2 = vld [vmem:[#allocation2 + $0x12] sm:$0x3] }
 0x213   : > { %v2929_v7 = vmul.f32 %v2924_v3, %v2885_v2 }
 0x214   : > { %v859_v40 = vpop.permute.xlu1 %858  ;;  %v1405_v39 = vpop.permute.xlu0 %1404 }
 0x215   : > { %v869_v51 = vsel %vm868_vm3, %v859_v40, %v7482_v54  ;;  %v1412_v24 = vsel %vm633_vm7, %v7575_v22, %v1405_v39  ;;  %v2835_v22 = vmul.f32 %v2830_v1, %v2791_v53 }
 0x216   : > { %877 = vst [vmem:[#allocation3] sm:$0x30] %v869_v51  ;;  %1420 = vst [vmem:[#allocation3 + $0x40] sm:$0x3] %v1412_v24  ;;  %3054 = vrot.lane.b32.xlu0 %v3034_v58, %s6440_s28  ;;  %2609 = vrot.lane.b32.xlu1 %v2597_v52, %s6442_s26 }
 0x217   : > { %v2861_v40 = vrot.slane %v2835_v22, %v6705_v37  ;;  %v3043_v22 = vcombine.low %v3041_v33, %v3041_v33 }
 0x218   : > { %v7754_v27 = vpop.permute.xlu1 %1117  ;;  %v1504_v9 = vpop.permute.xlu0 %1503 }
 0x219   : > { %v1509_v4 = vsel %vm675_vm1, %v7567_v6, %v1504_v9 }
 0x21a   : > { %1517 = vst [vmem:[#allocation3 + $0x50] sm:$0xc] %v1509_v4  ;;  %3058 = vrot.lane.b32.xlu0 %v3041_v33, %s6440_s28  ;;  %2768 = vrot.lane.b32.xlu1 %v2757_v55, %s6444_s29  ;;  %v3297_v33 = vld [vmem:[#allocation8] ss:$8 sm:$0xf] }
 0x21c   : > { %v7765_v23 = vpop.permute.xlu1 %1406  ;;  %v7767_v62 = vpop.permute.xlu0 %1598 }
 0x21d   : > { %v1413_v48 = vsel %vm633_vm7, %v1405_v39, %v7765_v23 }
 0x21e   : > { %1421 = vst [vmem:[#allocation3 + $0x48] sm:$0x3] %v1413_v48  ;;  %2862 = vrot.lane.b32.xlu0 %v7674_v17, %s6441_s12  ;;  %2866 = vrot.lane.b32.xlu1 %v7686_v18, %s6441_s12  ;;  %v2949_v17 = vcombine.low %v2929_v7, %v2929_v7  ;;  %v2980_v18 = vld [vmem:[#allocation2 + $0x12] sm:$0x3] }
 0x21f   : > { %v3024_v58 = vmul.f32 %v3019_v25, %v2980_v18  ;;  %v9455_v18 = vld [vmem:[#allocation18_spill] sm:$0xff] }
 0x220   : > { %v1506_v32 = vpop.permute.xlu1 %1505  ;;  %v7777_v1 = vpop.permute.xlu0 %1690  ;;  %v2956_v55 = vrot.slane %v2949_v17, %v6705_v37 }
 0x221   : > { %9452 = vst [vmem:[#allocation22_spill] sm:$0xff] %v7777_v1  ;;  %v1510_v52 = vsel %vm675_vm1, %v1504_v9, %v1506_v32  ;;  %v3050_v26 = vrot.slane %v3024_v58, %v6705_v37 }
 0x222   : > { %1518 = vst [vmem:[#allocation3 + $0x58] sm:$0xc] %v1510_v52  ;;  %3052 = vrot.lane.b32.xlu0 %v3042_v38, %s6440_s28  ;;  %2870 = vrot.lane.b32.xlu1 %v2861_v40, %s6441_s12 }
 0x223   : > { %v3051_v7 = vcombine.low %v3050_v26, %v3050_v26 }
 0x224   : > { %v1601_v39 = vpop.permute.xlu1 %1600  ;;  %v1785_v51 = vpop.permute.xlu0 %1784 }
 0x225   : > { %v1605_v10 = vsel %vm420_vm0, %v7767_v62, %v1601_v39  ;;  %v1792_v3 = vsel %vm966_vm2, %v7588_v34, %v1785_v51  ;;  %v9454_v39 = vld [vmem:[#allocation17_spill] sm:$0xff] }
 0x226   : > { %1613 = vst [vmem:[#allocation3 + $0x58] sm:$0x30] %v1605_v10  ;;  %1800 = vst [vmem:[#allocation3 + $0x60] sm:$0x3] %v1792_v3  ;;  %2961 = vrot.lane.b32.xlu1 %v7714_v49, %s6439_s27  ;;  %v3306_v10 = vrot.slane %v3297_v33, %v9455_v18  ;;  %v9456_v3 = vld [vmem:[#allocation19_spill] sm:$0xff] }
 0x227   : > { %v3310_v58 = vrot.slane %v3297_v33, %v9456_v3 }
 0x228   : > { %v1693_v24 = vpop.permute.xlu1 %1692  ;;  %v7791_v9 = vpop.permute.xlu0 %1948 }
 0x229   : > { %9453 = vst [vmem:[#allocation26_spill] sm:$0xff] %v7791_v9  ;;  %v1699_v53 = vsel %vm868_vm3, %v7777_v1, %v1693_v24  ;;  %v1700_v4 = vsel %vm868_vm3, %v1693_v24, %v7534_v61  ;;  %v1955_v34 = vsel %vm922_vm6, %v7791_v9, %v7452_v13 }
 0x22a   : > { %1707 = vst [vmem:[#allocation3 + $0x48] sm:$0xc0] %v1699_v53  ;;  %1708 = vst [vmem:[#allocation3 + $0x50] sm:$0xc0] %v1700_v4  ;;  %2965 = vrot.lane.b32.xlu1 %v2956_v55, %s6439_s27 }
 0x22b   : > { %1963 = vst [vmem:[#allocation3 + $0x78] sm:$0x30] %v1955_v34  ;;  %v3390_v55 = vld [vmem:[#allocation8 + $0x1] ss:$8 sm:$0xf] }
 0x22c   : > { %v7803_v25 = vpop.permute.xlu1 %1786  ;;  %v7805_v49 = vpop.permute.xlu0 %2040  ;;  %v3484_v53 = vld [vmem:[#allocation8 + $0x2] ss:$8 sm:$0xf]  ;;  %v3395_v4 = vrot.slane %v3390_v55, %v9454_v39  ;;  %v3399_v34 = vrot.slane %v3390_v55, %v9455_v18  ;;  %v3403_v26 = vrot.slane %v3390_v55, %v9456_v3 }
 0x22d   : > { %v1793_v2 = vsel %vm966_vm2, %v1785_v51, %v7803_v25  ;;  %v3302_v51 = vrot.slane %v3297_v33, %v9454_v39  ;;  %v3497_v46 = vrot.slane %v3484_v53, %v9456_v3 }
 0x22e   : > { %1801 = vst [vmem:[#allocation3 + $0x68] sm:$0x3] %v1793_v2  ;;  %3056 = vrot.lane.b32.xlu1 %v3043_v22, %s6440_s28  ;;  %v3737_v2 = vld [vmem:[#allocation8 + $0x5] ss:$8 sm:$0xf] }
 0x230   : > { %v2043_v48 = vpop.permute.xlu1 %2042  ;;  %v1593_v13 = vpop.permute.xlu0 %1592 }
 0x231   : > { %v2049_v32 = vsel %vm825_vm4, %v7805_v49, %v2043_v48  ;;  %v2050_v38 = vsel %vm825_vm4, %v2043_v48, %v7565_v59  ;;  %v1602_v40 = vsel %vm420_vm0, %v1593_v13, %v7523_v47  ;;  %v9457_v59 = vld [vmem:[#allocation20_spill] sm:$0xff]  ;;  %v3315_v48 = vcombine.low %v3302_v51, %v3306_v10 }
 0x232   : > { %2057 = vst [vmem:[#allocation3 + $0x68] sm:$0xc0] %v2049_v32  ;;  %2058 = vst [vmem:[#allocation3 + $0x70] sm:$0xc0] %v2050_v38  ;;  %3060 = vrot.lane.b32.xlu1 %v3051_v7, %s6440_s28  ;;  %v3314_v24 = vrot.slane %v3297_v33, %v9457_v59  ;;  %v3407_v22 = vrot.slane %v3390_v55, %v9457_v59  ;;  %v3489_v7 = vrot.slane %v3484_v53, %v9454_v39  ;;  %v3103_v38 = vld [vmem:[%s9354_s4] sm:$0x3] }
 0x233   : > { %1610 = vst [vmem:[#allocation3 + $0x40] sm:$0x30] %v1602_v40  ;;  %v3493_v32 = vrot.slane %v3484_v53, %v9455_v18  ;;  %v3408_v40 = vcombine.low %v3395_v4, %v3399_v34  ;;  %v3501_v55 = vrot.slane %v3484_v53, %v9457_v59 }
 0x234   : > { %v7817_v52 = vpop.permute.xlu1 %1497  ;;  %v7819_v17 = vpop.permute.xlu0 %2136  ;;  %v3316_v13 = vcombine.low %v3310_v58, %v3314_v24  ;;  %v3409_v33 = vcombine.low %v3403_v26, %v3407_v22  ;;  %v3742_v58 = vrot.slane %v3737_v2, %v9454_v39  ;;  %v3831_v24 = vld [vmem:[#allocation8 + $0x6] ss:$8 sm:$0xf] }
 0x235   : > { %v3502_v10 = vcombine.low %v3489_v7, %v3493_v32  ;;  %v3416_v53 = vrot.slane %v3408_v40, %v6705_v37  ;;  %v3503_v22 = vcombine.low %v3497_v46, %v3501_v55  ;;  %v3754_v32 = vrot.slane %v3737_v2, %v9457_v59 }
 0x236   : > { %2957 = vrot.lane.b32.xlu1 %v7699_v43, %s6439_s27  ;;  %v3323_v43 = vrot.slane %v3315_v48, %v6705_v37  ;;  %v3330_v51 = vrot.slane %v3316_v13, %v6705_v37  ;;  %v3423_v34 = vrot.slane %v3409_v33, %v6705_v37  ;;  %v3746_v13 = vrot.slane %v3737_v2, %v9455_v18 }
 0x237   : > { %v3510_v48 = vrot.slane %v3502_v10, %v6705_v37  ;;  %v3844_v33 = vrot.slane %v3831_v24, %v9456_v3  ;;  %v3925_v10 = vld [vmem:[#allocation8 + $0x7] ss:$8 sm:$0xf] }
 0x238   : > { %v1943_v41 = vpop.permute.xlu1 %1942  ;;  %v7838_v1 = vpop.permute.xlu0 %2422  ;;  %v3331_v26 = vcombine.low %v3323_v43, %v3330_v51  ;;  %v3424_v7 = vcombine.low %v3416_v53, %v3423_v34  ;;  %v3755_v46 = vcombine.low %v3742_v58, %v3746_v13  ;;  %v3848_v51 = vrot.slane %v3831_v24, %v9457_v59 }
 0x239   : > { %v1952_v9 = vsel %vm922_vm6, %v1943_v41, %v7552_v36  ;;  %v2430_v4 = vsel %vm420_vm0, %v7838_v1, %v7600_v29  ;;  %v3750_v41 = vrot.slane %v3737_v2, %v9456_v3  ;;  %v3836_v29 = vrot.slane %v3831_v24, %v9454_v39  ;;  %v3578_v36 = vld [vmem:[#allocation8 + $0x3] ss:$8 sm:$0xf] }
 0x23a   : > { %1960 = vst [vmem:[#allocation3 + $0x60] sm:$0x30] %v1952_v9  ;;  %2438 = vst [vmem:[#allocation3 + $0x90] sm:$0xc0] %v2430_v4  ;;  %3106 = vperm.xlu1 %6301, %v3103_v38   ;;  %3332 = vrot.lane.b32.xlu0 %v3331_v26, %s6440_s28  ;;  %v3517_v9 = vrot.slane %v3503_v22, %v6705_v37  ;;  %v3840_v38 = vrot.slane %v3831_v24, %v9455_v18 }
 0x23b   : > { %v3756_v43 = vcombine.low %v3750_v41, %v3754_v32  ;;  %v3763_v58 = vrot.slane %v3755_v46, %v6705_v37  ;;  %v3583_v34 = vrot.slane %v3578_v36, %v9454_v39  ;;  %v3587_v22 = vrot.slane %v3578_v36, %v9455_v18 }
 0x23c   : > { %v2135_v40 = vpop.permute.xlu1 %2134  ;;  %v7855_v61 = vpop.permute.xlu0 %2516  ;;  %v3518_v4 = vcombine.low %v3510_v48, %v3517_v9  ;;  %v3849_v53 = vcombine.low %v3836_v29, %v3840_v38  ;;  %v3591_v13 = vrot.slane %v3578_v36, %v9456_v3  ;;  %v3595_v48 = vrot.slane %v3578_v36, %v9457_v59 }
 0x23d   : > { %v2142_v55 = vsel %vm729_vm5, %v7626_v28, %v2135_v40  ;;  %v2143_v2 = vsel %vm729_vm5, %v2135_v40, %v7819_v17  ;;  %v3770_v26 = vrot.slane %v3756_v43, %v6705_v37  ;;  %v3850_v28 = vcombine.low %v3844_v33, %v3848_v51  ;;  %v4020_v40 = vld [vmem:[#allocation8 + $0x20] ss:$8 sm:$0xf] }
 0x23e   : > { %2150 = vst [vmem:[#allocation3 + $0x80] sm:$0x3] %v2142_v55  ;;  %2151 = vst [vmem:[#allocation3 + $0x88] sm:$0x3] %v2143_v2  ;;  %3425 = vrot.lane.b32.xlu1 %v3424_v7, %s6439_s27  ;;  %3519 = vrot.lane.b32.xlu0 %v3518_v4, %s6441_s12  ;;  %v3857_v7 = vrot.slane %v3849_v53, %v6705_v37  ;;  %v3930_v32 = vrot.slane %v3925_v10, %v9454_v39 }
 0x23f   : > { %v3934_v29 = vrot.slane %v3925_v10, %v9455_v18  ;;  %v3771_v33 = vcombine.low %v3763_v58, %v3770_v26  ;;  %v3864_v36 = vrot.slane %v3850_v28, %v6705_v37  ;;  %v3596_v55 = vcombine.low %v3583_v34, %v3587_v22 }
 0x240   : > { %v2234_v41 = vpop.permute.xlu1 %2233  ;;  %v7872_v24 = vpop.permute.xlu0 %2772  ;;  %v3597_v2 = vcombine.low %v3591_v13, %v3595_v48  ;;  %v3938_v43 = vrot.slane %v3925_v10, %v9456_v3  ;;  %v3942_v51 = vrot.slane %v3925_v10, %v9457_v59  ;;  %v4029_v53 = vrot.slane %v4020_v40, %v9455_v18 }
 0x241   : > { %v2239_v9 = vsel %vm633_vm7, %v7598_v14, %v2234_v41  ;;  %v2240_v46 = vsel %vm633_vm7, %v2234_v41, %v7392_v63  ;;  %v2780_v38 = vsel %vm922_vm6, %v7872_v24, %v7613_v42  ;;  %v3943_v4 = vcombine.low %v3930_v32, %v3934_v29  ;;  %v4113_v42 = vld [vmem:[#allocation8 + $0x21] ss:$8 sm:$0xf]  ;;  %v4207_v29 = vld [vmem:[#allocation8 + $0x22] ss:$8 sm:$0xf] }
 0x242   : > { %2247 = vst [vmem:[#allocation3 + $0x90] sm:$0xc] %v2239_v9  ;;  %2248 = vst [vmem:[#allocation3 + $0x98] sm:$0xc] %v2240_v46  ;;  %3772 = vrot.lane.b32.xlu1 %v3771_v33, %s6442_s26  ;;  %v4025_v63 = vrot.slane %v4020_v40, %v9454_v39  ;;  %v3865_v41 = vcombine.low %v3857_v7, %v3864_v36  ;;  %v3604_v34 = vrot.slane %v3596_v55, %v6705_v37 }
 0x243   : > { %2788 = vst [vmem:[#allocation3 + $0xb0] sm:$0xc0] %v2780_v38  ;;  %v3611_v28 = vrot.slane %v3597_v2, %v6705_v37  ;;  %v4033_v22 = vrot.slane %v4020_v40, %v9456_v3  ;;  %v3944_v13 = vcombine.low %v3938_v43, %v3942_v51  ;;  %v3951_v48 = vrot.slane %v3943_v4, %v6705_v37 }
 0x244   : > { %v7892_v58 = vpop.permute.xlu1 %2328  ;;  %v7894_v26 = vpop.permute.xlu0 %2227  ;;  %v4037_v32 = vrot.slane %v4020_v40, %v9457_v59  ;;  %3866 = vrot.lane.b32.xlu0 %v3865_v41, %s6443_s23  ;;  %v4038_v9 = vcombine.low %v4025_v63, %v4029_v53  ;;  %v4118_v46 = vrot.slane %v4113_v42, %v9454_v39  ;;  %v4122_v38 = vrot.slane %v4113_v42, %v9455_v18  ;;  %v4396_v53 = vld [vmem:[#allocation8 + $0x24] ss:$8 sm:$0xf] }
 0x245   : > { %v2335_v10 = vsel %vm675_vm1, %v7892_v58, %v7413_v56  ;;  %v3612_v7 = vcombine.low %v3604_v34, %v3611_v28  ;;  %v3958_v33 = vrot.slane %v3944_v13, %v6705_v37  ;;  %v4126_v56 = vrot.slane %v4113_v42, %v9456_v3 }
 0x246   : > { %2343 = vst [vmem:[#allocation3 + $0x98] sm:$0x30] %v2335_v10  ;;  %v4039_v36 = vcombine.low %v4033_v22, %v4037_v32  ;;  %v4130_v55 = vrot.slane %v4113_v42, %v9457_v59  ;;  %v4046_v43 = vrot.slane %v4038_v9, %v6705_v37  ;;  %v4131_v51 = vcombine.low %v4118_v46, %v4122_v38 }
 0x247   : > { %3613 = vrot.lane.b32.xlu1 %v3612_v7, %s6444_s29  ;;  %v4212_v4 = vrot.slane %v4207_v29, %v9454_v39  ;;  %v4216_v63 = vrot.slane %v4207_v29, %v9455_v18  ;;  %v3959_v34 = vcombine.low %v3951_v48, %v3958_v33  ;;  %v4220_v10 = vrot.slane %v4207_v29, %v9456_v3 }
 0x248   : > { %v7910_v2 = vpop.permute.xlu1 %2420  ;;  %v7912_v40 = vpop.permute.xlu0 %2607  ;;  %v4053_v42 = vrot.slane %v4039_v36, %v6705_v37  ;;  %v4132_v28 = vcombine.low %v4126_v56, %v4130_v55  ;;  %v4139_v22 = vrot.slane %v4131_v51, %v6705_v37  ;;  %v4224_v13 = vrot.slane %v4207_v29, %v9457_v59  ;;  %v4553_v29 = vld [vmem:[#allocation8 + $0x26] ss:$8 sm:$0xf] }
 0x249   : > { %v2429_v41 = vsel %vm420_vm0, %v7910_v2, %v7838_v1  ;;  %v4225_v32 = vcombine.low %v4212_v4, %v4216_v63  ;;  %3960 = vrot.lane.b32.xlu0 %v3959_v34, %s6445_s24  ;;  %v4401_v46 = vrot.slane %v4396_v53, %v9454_v39  ;;  %v4405_v1 = vrot.slane %v4396_v53, %v9455_v18 }
 0x24a   : > { %2437 = vst [vmem:[#allocation3 + $0x88] sm:$0xc0] %v2429_v41  ;;  %v4054_v7 = vcombine.low %v4046_v43, %v4053_v42  ;;  %v4146_v9 = vrot.slane %v4132_v28, %v6705_v37  ;;  %v4226_v33 = vcombine.low %v4220_v10, %v4224_v13  ;;  %v4409_v56 = vrot.slane %v4396_v53, %v9456_v3  ;;  %v4301_v41 = vld [vmem:[#allocation8 + $0x23] ss:$8 sm:$0xf] }
 0x24b   : > { %v4233_v36 = vrot.slane %v4225_v32, %v6705_v37  ;;  %v4413_v55 = vrot.slane %v4396_v53, %v9457_v59  ;;  %v4558_v28 = vrot.slane %v4553_v29, %v9454_v39  ;;  %v4562_v10 = vrot.slane %v4553_v29, %v9455_v18 }
 0x24c   : > { %v2515_v48 = vpop.permute.xlu1 %2514  ;;  %v863_v38 = vpop.permute.xlu0 %862  ;;  %4055 = vrot.lane.b32.xlu1 %v4054_v7, %s6446_s25  ;;  %v4147_v53 = vcombine.low %v4139_v22, %v4146_v9  ;;  %v4240_v34 = vrot.slane %v4226_v33, %v6705_v37  ;;  %v4306_v9 = vrot.slane %v4301_v41, %v9454_v39 }
 0x24d   : > { %v2522_v51 = vsel %vm868_vm3, %v7636_v44, %v2515_v48  ;;  %v2523_v43 = vsel %vm868_vm3, %v2515_v48, %v7855_v61  ;;  %v870_v4 = vsel %vm868_vm3, %v7482_v54, %v863_v38  ;;  %v871_v63 = vsel %vm868_vm3, %v863_v38, %v7679_v8 }
 0x24e   : > { %2530 = vst [vmem:[#allocation3 + $0xa0] sm:$0x3] %v2522_v51  ;;  %2531 = vst [vmem:[#allocation3 + $0xa8] sm:$0x3] %v2523_v43  ;;  %v4414_v44 = vcombine.low %v4401_v46, %v4405_v1  ;;  %v4415_v42 = vcombine.low %v4409_v56, %v4413_v55  ;;  %v4566_v54 = vrot.slane %v4553_v29, %v9456_v3  ;;  %4148 = vrot.lane.b32.xlu0 %v4147_v53, %s6440_s28 }
 0x24f   : > { %878 = vst [vmem:[#allocation3 + $0x8] sm:$0x30] %v870_v4  ;;  %879 = vst [vmem:[#allocation3 + $0x10] sm:$0x30] %v871_v63  ;;  %v4570_v8 = vrot.slane %v4553_v29, %v9457_v59  ;;  %v4241_v7 = vcombine.low %v4233_v36, %v4240_v34  ;;  %v4571_v56 = vcombine.low %v4558_v28, %v4562_v10 }
 0x250   : > { %v2614_v13 = vpop.permute.xlu1 %2613  ;;  %v965_v32 = vpop.permute.xlu0 %964  ;;  %v4422_v48 = vrot.slane %v4414_v44, %v6705_v37  ;;  %v4429_v22 = vrot.slane %v4415_v42, %v6705_v37  ;;  %v4647_v46 = vld [vmem:[#allocation8 + $0x27] ss:$8 sm:$0xf]  ;;  %v4310_v29 = vrot.slane %v4301_v41, %v9455_v18  ;;  %v4314_v51 = vrot.slane %v4301_v41, %v9456_v3  ;;  %v4742_v10 = vld [vmem:[#allocation8 + $0x40] ss:$8 sm:$0xf] }
 0x251   : > { %v2619_v1 = vsel %vm966_vm2, %v7611_v12, %v2614_v13  ;;  %v2620_v38 = vsel %vm966_vm2, %v2614_v13, %v7424_v20  ;;  %v970_v33 = vsel %vm966_vm2, %v7488_v57, %v965_v32  ;;  %4242 = vrot.lane.b32.xlu1 %v4241_v7, %s6439_s27  ;;  %v4572_v55 = vcombine.low %v4566_v54, %v4570_v8  ;;  %v4835_v32 = vld [vmem:[#allocation8 + $0x41] ss:$8 sm:$0xf] }
 0x252   : > { %2627 = vst [vmem:[#allocation3 + $0xb0] sm:$0xc] %v2619_v1  ;;  %2628 = vst [vmem:[#allocation3 + $0xb8] sm:$0xc] %v2620_v38  ;;  %v4430_v36 = vcombine.low %v4422_v48, %v4429_v22  ;;  %v4579_v43 = vrot.slane %v4571_v56, %v6705_v37  ;;  %v4318_v4 = vrot.slane %v4301_v41, %v9457_v59 }
 0x253   : > { %978 = vst [vmem:[#allocation3 + $0x18] sm:$0xc0] %v970_v33  ;;  %v4652_v20 = vrot.slane %v4647_v46, %v9454_v39  ;;  %v4656_v57 = vrot.slane %v4647_v46, %v9455_v18  ;;  %v4586_v34 = vrot.slane %v4572_v55, %v6705_v37  ;;  %v4319_v44 = vcombine.low %v4306_v9, %v4310_v29  ;;  %v5118_v29 = vld [vmem:[#allocation8 + $0x44] ss:$8 sm:$0xf] }
 0x254   : > { %v7963_v63 = vpop.permute.xlu1 %2770  ;;  %v1217_v53 = vpop.permute.xlu0 %1216  ;;  %4431 = vrot.lane.b32.xlu0 %v4430_v36, %s6444_s29  ;;  %v4660_v42 = vrot.slane %v4647_v46, %v9456_v3  ;;  %v4664_v28 = vrot.slane %v4647_v46, %v9457_v59  ;;  %v4320_v13 = vcombine.low %v4314_v51, %v4318_v4  ;;  %v4751_v1 = vrot.slane %v4742_v10, %v9455_v18 }
 0x255   : > { %v2779_v41 = vsel %vm922_vm6, %v7963_v63, %v7872_v24  ;;  %v1223_v54 = vsel %vm825_vm4, %v7504_v0, %v1217_v53  ;;  %v1224_v8 = vsel %vm825_vm4, %v1217_v53, %v7716_v60  ;;  %v4587_v7 = vcombine.low %v4579_v43, %v4586_v34 }
 0x256   : > { %2787 = vst [vmem:[#allocation3 + $0xa8] sm:$0xc0] %v2779_v41  ;;  %1231 = vst [vmem:[#allocation3 + $0x28] sm:$0x30] %v1223_v54  ;;  %v4327_v48 = vrot.slane %v4319_v44, %v6705_v37  ;;  %v4665_v22 = vcombine.low %v4652_v20, %v4656_v57  ;;  %v4666_v9 = vcombine.low %v4660_v42, %v4664_v28 }
 0x257   : > { %1232 = vst [vmem:[#allocation3 + $0x30] sm:$0x30] %v1224_v8  ;;  %v4334_v46 = vrot.slane %v4320_v13, %v6705_v37  ;;  %v4747_v24 = vrot.slane %v4742_v10, %v9454_v39  ;;  %v4755_v0 = vrot.slane %v4742_v10, %v9456_v3  ;;  %4588 = vrot.lane.b32.xlu1 %v4587_v7, %s6442_s26 }
 0x258   : > { %v2323_v38 = vpop.permute.xlu1 %2322  ;;  %v1317_v60 = vpop.permute.xlu0 %1316  ;;  %v4673_v33 = vrot.slane %v4665_v22, %v6705_v37  ;;  %v4680_v56 = vrot.slane %v4666_v9, %v6705_v37  ;;  %v4759_v36 = vrot.slane %v4742_v10, %v9457_v59  ;;  %v4840_v55 = vrot.slane %v4835_v32, %v9454_v39  ;;  %v4929_v22 = vld [vmem:[#allocation8 + $0x42] ss:$8 sm:$0xf] }
 0x259   : > { %v2332_v51 = vsel %vm675_vm1, %v2323_v38, %v7590_v19  ;;  %v1321_v43 = vsel %vm729_vm5, %v7521_v30, %v1317_v60  ;;  %v4335_v4 = vcombine.low %v4327_v48, %v4334_v46  ;;  %v4760_v20 = vcombine.low %v4747_v24, %v4751_v1  ;;  %v5023_v1 = vld [vmem:[#allocation8 + $0x43] ss:$8 sm:$0xf] }
 0x25a   : > { %2340 = vst [vmem:[#allocation3 + $0x80] sm:$0x30] %v2332_v51  ;;  %1329 = vst [vmem:[#allocation3 + $0x38] sm:$0xc0] %v1321_v43  ;;  %v4681_v57 = vcombine.low %v4673_v33, %v4680_v56  ;;  %v4761_v53 = vcombine.low %v4755_v0, %v4759_v36  ;;  %v4844_v34 = vrot.slane %v4835_v32, %v9455_v18 }
 0x25b   : > { %v4848_v44 = vrot.slane %v4835_v32, %v9456_v3  ;;  %4336 = vrot.lane.b32.xlu0 %v4335_v4, %s6441_s12  ;;  %v4768_v42 = vrot.slane %v4760_v20, %v6705_v37  ;;  %v4852_v28 = vrot.slane %v4835_v32, %v9457_v59  ;;  %v5123_v10 = vrot.slane %v5118_v29, %v9454_v39  ;;  %v8017_v20 = vld [vmem:[#allocation8 + $0x45] ss:$8 sm:$0xf] }
 0x25c   : > { %v5127_v30 = vrot.slane %v5118_v29, %v9455_v18  ;;  %v957_v41 = vpop.permute.xlu0 %956  ;;  %v672_v54 = vpop.permute.xlu1 %671  ;;  %4682 = vrot.lane.b32.xlu1 %v4681_v57, %s6443_s23  ;;  %v4775_v8 = vrot.slane %v4761_v53, %v6705_v37  ;;  %v4853_v13 = vcombine.low %v4840_v55, %v4844_v34  ;;  %v5131_v7 = vrot.slane %v5118_v29, %v9456_v3 }
 0x25d   : > { %v5135_v48 = vrot.slane %v5118_v29, %v9457_v59  ;;  %v967_v9 = vsel %vm966_vm2, %v957_v41, %v7690_v35  ;;  %v678_v32 = vsel %vm675_vm1, %v7628_v45, %v672_v54  ;;  %v679_v46 = vsel %vm675_vm1, %v672_v54, %v7480_v21 }
 0x25e   : > { %v4854_v24 = vcombine.low %v4848_v44, %v4852_v28  ;;  %975 = vst [vmem:[#allocation3] sm:$0xc0] %v967_v9  ;;  %686 = vst [vmem:[#allocation3 + $0x10] sm:$0x3] %v678_v32  ;;  %v4776_v0 = vcombine.low %v4768_v42, %v4775_v8  ;;  %v4861_v38 = vrot.slane %v4853_v13, %v6705_v37 }
 0x25f   : > { %687 = vst [vmem:[#allocation3 + $0x18] sm:$0x3] %v679_v46  ;;  %v5136_v60 = vcombine.low %v5123_v10, %v5127_v30  ;;  %v5137_v33 = vcombine.low %v5131_v7, %v5135_v48  ;;  %v4934_v35 = vrot.slane %v4929_v22, %v9454_v39  ;;  %v4938_v36 = vrot.slane %v4929_v22, %v9455_v18  ;;  %v5369_v9 = vld [vmem:[#allocation8 + $0x47] ss:$8 sm:$0xf] }
 0x260   : > { %v4868_v56 = vrot.slane %v4854_v24, %v6705_v37  ;;  %v4942_v45 = vrot.slane %v4929_v22, %v9456_v3  ;;  %v1409_v55 = vpop.permute.xlu0 %1408  ;;  %v765_v21 = vpop.permute.xlu1 %764  ;;  %4777 = vrot.lane.b32.xlu0 %v4776_v0, %s6445_s24  ;;  %v4946_v43 = vrot.slane %v4929_v22, %v9457_v59  ;;  %v5028_v4 = vrot.slane %v5023_v1, %v9454_v39 }
 0x261   : > { %v5144_v29 = vrot.slane %v5136_v60, %v6705_v37  ;;  %v5151_v51 = vrot.slane %v5137_v33, %v6705_v37  ;;  %v1414_v57 = vsel %vm633_vm7, %v7765_v23, %v1409_v55  ;;  %v1415_v53 = vsel %vm633_vm7, %v1409_v55, %v7554_v16 }
 0x262   : > { %v772_v34 = vsel %vm420_vm0, %v7718_v50, %v765_v21  ;;  %v773_v44 = vsel %vm420_vm0, %v765_v21, %v7490_v31  ;;  %1422 = vst [vmem:[#allocation3 + $0x50] sm:$0x3] %v1414_v57  ;;  %1423 = vst [vmem:[#allocation3 + $0x58] sm:$0x3] %v1415_v53  ;;  %v4869_v42 = vcombine.low %v4861_v38, %v4868_v56  ;;  %v3081_v31 = vld [vmem:[#allocation3 + $0x30] sm:$0xff]  ;;  %v3082_v38 = vld [vmem:[#allocation3 + $0x38] sm:$0xff] }
 0x263   : > { %780 = vst [vmem:[#allocation3] sm:$0xc] %v772_v34  ;;  %781 = vst [vmem:[#allocation3 + $0x8] sm:$0xc] %v773_v44  ;;  %v5152_v28 = vcombine.low %v5144_v29, %v5151_v51  ;;  %v4947_v10 = vcombine.low %v4934_v35, %v4938_v36  ;;  %v4948_v30 = vcombine.low %v4942_v45, %v4946_v43 }
 0x264   : > { %v5032_v41 = vrot.slane %v5023_v1, %v9455_v18  ;;  %v5036_v23 = vrot.slane %v5023_v1, %v9456_v3  ;;  %v5040_v16 = vrot.slane %v5023_v1, %v9457_v59  ;;  %v5216_v50 = vrot.slane %v8017_v20, %v9454_v39  ;;  %v1500_v54 = vpop.permute.xlu0 %1499  ;;  %v1120_v8 = vpop.permute.xlu1 %1119  ;;  %4870 = vrot.lane.b32.xlu1 %v4869_v42, %s6446_s25  ;;  %v5464_v43 = vld [vmem:[#allocation8 + $0x60] ss:$8 sm:$0xf] }
 0x265   : > { %v4955_v13 = vrot.slane %v4947_v10, %v6705_v37  ;;  %v4962_v7 = vrot.slane %v4948_v30, %v6705_v37  ;;  %v5220_v48 = vrot.slane %v8017_v20, %v9455_v18  ;;  %v5224_v22 = vrot.slane %v8017_v20, %v9456_v3  ;;  %v3077_v60 = vld [vmem:[#allocation3 + $0x10] sm:$0xff] }
 0x266   : > { %v1507_v32 = vsel %vm675_vm1, %v7817_v52, %v1500_v54  ;;  %v1508_v46 = vsel %vm675_vm1, %v1500_v54, %v7567_v6  ;;  %v1127_v24 = vsel %vm922_vm6, %v7754_v27, %v1120_v8  ;;  %v1128_v1 = vsel %vm922_vm6, %v1120_v8, %v7506_v15  ;;  %v3078_v0 = vld [vmem:[#allocation3 + $0x18] sm:$0xff] }
 0x267   : > { %1515 = vst [vmem:[#allocation3 + $0x40] sm:$0xc] %v1507_v32  ;;  %1516 = vst [vmem:[#allocation3 + $0x48] sm:$0xc] %v1508_v46  ;;  %v6193_v33 = vpack.c.bf16 %v3082_v38, %v3078_v0  ;;  %v6195_v56 = vpack.c.bf16 %v3081_v31, %v3077_v60  ;;  %v4963_v35 = vcombine.low %v4955_v13, %v4962_v7 }
 0x268   : > { %1135 = vst [vmem:[#allocation3 + $0x20] sm:$0xc] %v1127_v24  ;;  %1136 = vst [vmem:[#allocation3 + $0x28] sm:$0xc] %v1128_v1  ;;  %v5041_v52 = vcombine.low %v5028_v4, %v5032_v41  ;;  %v5042_v36 = vcombine.low %v5036_v23, %v5040_v16  ;;  %v5228_v6 = vrot.slane %v8017_v20, %v9457_v59  ;;  %v1789_v55 = vpop.permute.xlu0 %1788  ;;  %v1309_v15 = vpop.permute.xlu1 %1308  ;;  %5153 = vrot.lane.b32.xlu1 %v5152_v28, %s6441_s12 }
 0x269   : > { %v5229_v45 = vcombine.low %v5216_v50, %v5220_v48  ;;  %v5374_v27 = vrot.slane %v5369_v9, %v9454_v39  ;;  %6194 = vmatprep.subr.bf16.mxu1 %v6193_v33  ;;  %v5378_v29 = vrot.slane %v5369_v9, %v9455_v18  ;;  %v5382_v51 = vrot.slane %v5369_v9, %v9456_v3  ;;  %v5557_v54 = vld [vmem:[#allocation8 + $0x61] ss:$8 sm:$0xf]  ;;  %v5651_v0 = vld [vmem:[#allocation8 + $0x62] ss:$8 sm:$0xf] }
 0x26a   : > { %v5049_v21 = vrot.slane %v5041_v52, %v6705_v37  ;;  %v1794_v4 = vsel %vm966_vm2, %v7803_v25, %v1789_v55  ;;  %v1795_v20 = vsel %vm966_vm2, %v1789_v55, %v7577_v5  ;;  %v1318_v57 = vsel %vm729_vm5, %v1309_v15, %v7733_v11  ;;  %6196 = vmatpush1.bf16.msra.mxu1 %v6195_v56  ;;  %v3076_v7 = vld [vmem:[#allocation3 + $0x8] sm:$0xff] }
 0x26b   : > { %4964 = vrot.lane.b32.xlu0 %v4963_v35, %s6440_s28  ;;  %1802 = vst [vmem:[#allocation3 + $0x70] sm:$0x3] %v1794_v4  ;;  %1803 = vst [vmem:[#allocation3 + $0x78] sm:$0x3] %v1795_v20  ;;  %v5056_v53 = vrot.slane %v5042_v36, %v6705_v37  ;;  %v5230_v34 = vcombine.low %v5224_v22, %v5228_v6  ;;  %v5237_v44 = vrot.slane %v5229_v45, %v6705_v37  ;;  %v9458_v6 = vld [vmem:[#allocation25_spill] sm:$0xff] }
 0x26c   : > { %1326 = vst [vmem:[#allocation3 + $0x20] sm:$0xc0] %v1318_v57  ;;  %v5386_v42 = vrot.slane %v5369_v9, %v9457_v59  ;;  %v5387_v25 = vcombine.low %v5374_v27, %v5378_v29  ;;  %v5469_v28 = vrot.slane %v5464_v43, %v9454_v39  ;;  %v5473_v5 = vrot.slane %v5464_v43, %v9455_v18  ;;  %v2039_v10 = vpop.permute.xlu0 %2038  ;;  %v1597_v30 = vpop.permute.xlu1 %1596  ;;  %v3075_v27 = vld [vmem:[#allocation3] sm:$0xff] }
 0x26d   : > { %v5477_v11 = vrot.slane %v5464_v43, %v9456_v3  ;;  %v5057_v41 = vcombine.low %v5049_v21, %v5056_v53  ;;  %v5244_v23 = vrot.slane %v5230_v34, %v6705_v37  ;;  %v5481_v50 = vrot.slane %v5464_v43, %v9457_v59 }
 0x26e   : > { %v5388_v16 = vcombine.low %v5382_v51, %v5386_v42  ;;  %v2048_v8 = vsel %vm825_vm4, %v2039_v10, %v7805_v49  ;;  %v1603_v31 = vsel %vm420_vm0, %v7523_v47, %v1597_v30  ;;  %v1604_v13 = vsel %vm420_vm0, %v1597_v30, %v7767_v62 }
 0x26f   : > { %v3080_v48 = vld [vmem:[#allocation3 + $0x28] sm:$0xff]  ;;  %v5395_v22 = vrot.slane %v5387_v25, %v6705_v37  ;;  %2056 = vst [vmem:[#allocation3 + $0x60] sm:$0xc0] %v2048_v8  ;;  %1611 = vst [vmem:[#allocation3 + $0x48] sm:$0x30] %v1603_v31  ;;  %5058 = vrot.lane.b32.xlu1 %v5057_v41, %s6439_s27  ;;  %v5245_v32 = vcombine.low %v5237_v44, %v5244_v23  ;;  %v5482_v49 = vcombine.low %v5469_v28, %v5473_v5  ;;  %v9459_v25 = vld [vmem:[#allocation21_spill] sm:$0xff] }
 0x270   : > { %1612 = vst [vmem:[#allocation3 + $0x50] sm:$0x30] %v1604_v13  ;;  %v6181_v9 = vpack.c.bf16 %v3080_v48, %v3076_v7  ;;  %v5402_v46 = vrot.slane %v5388_v16, %v6705_v37  ;;  %v5483_v24 = vcombine.low %v5477_v11, %v5481_v50  ;;  %v5562_v47 = vrot.slane %v5557_v54, %v9454_v39  ;;  %v2327_v38 = vpop.permute.xlu0 %2326  ;;  %v1697_v60 = vpop.permute.xlu1 %1696  ;;  %v9460_v5 = vld [vmem:[#allocation26_spill] sm:$0xff] }
 0x271   : > { %v5566_v1 = vrot.slane %v5557_v54, %v9455_v18  ;;  %v5570_v62 = vrot.slane %v5557_v54, %v9456_v3  ;;  %5246 = vrot.lane.b32.xlu0 %v5245_v32, %s6444_s29  ;;  %v5490_v56 = vrot.slane %v5482_v49, %v6705_v37  ;;  %v5574_v35 = vrot.slane %v5557_v54, %v9457_v59  ;;  %v9461_v54 = vld [vmem:[#allocation22_spill] sm:$0xff]  ;;  %v9462_v49 = vld [vmem:[#allocation23_spill] sm:$0xff] }
 0x272   : > { %6182 = vmatprep.subr.bf16.mxu0 %v6181_v9  ;;  %v5403_v33 = vcombine.low %v5395_v22, %v5402_v46  ;;  %v2333_v52 = vsel %vm675_vm1, %v7590_v19, %v2327_v38  ;;  %v2334_v36 = vsel %vm675_vm1, %v2327_v38, %v7892_v58  ;;  %v1701_v45 = vsel %vm868_vm3, %v9458_v6, %v1697_v60  ;;  %v3090_v13 = vld [vmem:[#allocation3 + $0x78] sm:$0xff] }
 0x273   : > { %v3079_v55 = vld [vmem:[#allocation3 + $0x20] sm:$0xff]  ;;  %v5497_v15 = vrot.slane %v5483_v24, %v6705_v37  ;;  %2341 = vst [vmem:[#allocation3 + $0x88] sm:$0x30] %v2333_v52  ;;  %2342 = vst [vmem:[#allocation3 + $0x90] sm:$0x30] %v2334_v36  ;;  %v5575_v29 = vcombine.low %v5562_v47, %v5566_v1  ;;  %v5576_v51 = vcombine.low %v5570_v62, %v5574_v35 }
 0x274   : > { %1709 = vst [vmem:[#allocation3 + $0x58] sm:$0xc0] %v1701_v45  ;;  %v6183_v21 = vpack.c.bf16 %v3079_v55, %v3075_v27  ;;  %v5656_v43 = vrot.slane %v5651_v0, %v9454_v39  ;;  %v5660_v19 = vrot.slane %v5651_v0, %v9455_v18  ;;  %v5664_v58 = vrot.slane %v5651_v0, %v9456_v3  ;;  %v2419_v57 = vpop.permute.xlu0 %2418  ;;  %v1947_v53 = vpop.permute.xlu1 %1946  ;;  %v9463_v55 = vld [vmem:[#allocation24_spill] sm:$0xff] }
 0x275   : > { %v5498_v4 = vcombine.low %v5490_v56, %v5497_v15  ;;  %v5668_v20 = vrot.slane %v5651_v0, %v9457_v59  ;;  %5404 = vrot.lane.b32.xlu0 %v5403_v33, %s6442_s26  ;;  %v5583_v34 = vrot.slane %v5575_v29, %v6705_v37  ;;  %v5590_v44 = vrot.slane %v5576_v51, %v6705_v37 }
 0x276   : > { %6184 = vmatpush1.bf16.msra.mxu0 %v6183_v21  ;;  %v2428_v42 = vsel %vm420_vm0, %v2419_v57, %v7910_v2  ;;  %v1953_v28 = vsel %vm922_vm6, %v9459_v25, %v1947_v53  ;;  %v1954_v11 = vsel %vm922_vm6, %v1947_v53, %v9460_v5  ;;  %v5669_v10 = vcombine.low %v5656_v43, %v5660_v19  ;;  %v3084_v32 = vld [vmem:[#allocation3 + $0x48] sm:$0xff]  ;;  %v3087_v52 = vld [vmem:[#allocation3 + $0x60] sm:$0xff] }
 0x277   : > { %5499 = vrot.lane.b32.xlu1 %v5498_v4, %s6443_s23  ;;  %2436 = vst [vmem:[#allocation3 + $0x80] sm:$0xc0] %v2428_v42  ;;  %1961 = vst [vmem:[#allocation3 + $0x68] sm:$0x30] %v1953_v28  ;;  %v5591_v30 = vcombine.low %v5583_v34, %v5590_v44  ;;  %v5670_v41 = vcombine.low %v5664_v58, %v5668_v20  ;;  %v3085_v1 = vld [vmem:[#allocation3 + $0x50] sm:$0xff] }
 0x278   : > { %1962 = vst [vmem:[#allocation3 + $0x70] sm:$0x30] %v1954_v11  ;;  %v5677_v23 = vrot.slane %v5669_v10, %v6705_v37  ;;  %v8106_v16 = vpop.permute.xlu0 %2864  ;;  %v1689_v50 = vpop.permute.xlu1 %1688 }
 0x279   : > { %5592 = vrot.lane.b32.xlu0 %v5591_v30, %s6445_s24  ;;  %v5684_v2 = vrot.slane %v5670_v41, %v6705_v37  ;;  %v1698_v8 = vsel %vm868_vm3, %v1689_v50, %v9461_v54 }
 0x27a   : > { %1706 = vst [vmem:[#allocation3 + $0x40] sm:$0xc0] %v1698_v8 }
 0x27b   : > { %v3086_v31 = vld [vmem:[#allocation3 + $0x58] sm:$0xff]  ;;  %v5685_v48 = vcombine.low %v5677_v23, %v5684_v2 }
 0x27c   : > { %v6197_v7 = vpack.c.bf16 %v3090_v13, %v3086_v31  ;;  %v8112_v22 = vpop.permute.xlu0 %2868  ;;  %v2139_v9 = vpop.permute.xlu1 %2138 }
 0x27d   : > { %5686 = vrot.lane.b32.xlu1 %v5685_v48, %s6446_s25  ;;  %v2144_v46 = vsel %vm729_vm5, %v7819_v17, %v2139_v9  ;;  %v2145_v24 = vsel %vm729_vm5, %v2139_v9, %v9462_v49 }
 0x27e   : > { %6198 = vmatprep.subr.bf16.mxu1 %v6197_v7  ;;  %v3088_v47 = vld [vmem:[#allocation3 + $0x68] sm:$0xff]  ;;  %2152 = vst [vmem:[#allocation3 + $0x90] sm:$0x3] %v2144_v46  ;;  %2153 = vst [vmem:[#allocation3 + $0x98] sm:$0x3] %v2145_v24 }
 0x27f   : > { %v3089_v62 = vld [vmem:[#allocation3 + $0x70] sm:$0xff]  ;;  %v6185_v0 = vpack.c.bf16 %v3088_v47, %v3084_v32  ;;  %v3074_v47 = vld [vmem:[%s9353_s3] sm:$0x3] }
 0x280   : > { %v6199_v38 = vpack.c.bf16 %v3089_v62, %v3085_v1  ;;  %v8119_v60 = vpop.permute.xlu0 %2959  ;;  %v2230_v33 = vpop.permute.xlu1 %2229 }
 0x281   : > { %6186 = vmatprep.subr.bf16.mxu0 %v6185_v0  ;;  %v2237_v56 = vsel %vm633_vm7, %v7894_v26, %v2230_v33  ;;  %v2238_v17 = vsel %vm633_vm7, %v2230_v33, %v7598_v14  ;;  %v3083_v35 = vld [vmem:[#allocation3 + $0x40] sm:$0xff] }
 0x282   : > { %6200 = vmatpush1.bf16.msra.mxu1 %v6199_v38  ;;  %2245 = vst [vmem:[#allocation3 + $0x80] sm:$0xc] %v2237_v56  ;;  %2246 = vst [vmem:[#allocation3 + $0x88] sm:$0xc] %v2238_v17  ;;  %v6187_v36 = vpack.c.bf16 %v3087_v52, %v3083_v35  ;;  %v9464_v38 = vmov 0.0  }
 0x284   : > { %v2964_v6 = vpop.permute.xlu0 %2963  ;;  %6188 = vmatpush1.bf16.msra.mxu0 %v6187_v36  ;;  %v2519_v45 = vpop.permute.xlu1 %2518 }
 0x285   : > { %v2524_v27 = vsel %vm868_vm3, %v7855_v61, %v2519_v45  ;;  %v2525_v15 = vsel %vm868_vm3, %v2519_v45, %v9463_v55  ;;  %v3094_v4 = vld [vmem:[#allocation3 + $0x98] sm:$0xff]  ;;  %v3093_v58 = vld [vmem:[#allocation3 + $0x90] sm:$0xff] }
 0x286   : > { %2532 = vst [vmem:[#allocation3 + $0xb0] sm:$0x3] %v2524_v27  ;;  %2533 = vst [vmem:[#allocation3 + $0xb8] sm:$0x3] %v2525_v15 }
 0x288   : > { %v3055_v26 = vpop.permute.xlu0 %3054  ;;  %v2610_v21 = vpop.permute.xlu1 %2609 }
 0x289   : > { %v2617_v14 = vsel %vm966_vm2, %v7912_v40, %v2610_v21  ;;  %v2618_v29 = vsel %vm966_vm2, %v2610_v21, %v7611_v12  ;;  %v3091_v41 = vld [vmem:[#allocation3 + $0x80] sm:$0xff] }
 0x28a   : > { %2625 = vst [vmem:[#allocation3 + $0xa0] sm:$0xc] %v2617_v14  ;;  %2626 = vst [vmem:[#allocation3 + $0xa8] sm:$0xc] %v2618_v29  ;;  %v4741_v29 = vld [vmem:[#allocation2 + $0xe] sm:$0x3] }
 0x28c   : > { %v3059_v51 = vpop.permute.xlu0 %3058  ;;  %v2769_v43 = vpop.permute.xlu1 %2768 }
 0x28d   : > { %v2778_v61 = vsel %vm922_vm6, %v2769_v43, %v7963_v63  ;;  %v3098_v19 = vld [vmem:[#allocation3 + $0xb8] sm:$0xff]  ;;  %v3097_v20 = vld [vmem:[#allocation3 + $0xb0] sm:$0xff]  ;;  %v3092_v63 = vld [vmem:[#allocation3 + $0x88] sm:$0xff] }
 0x28e   : > { %2786 = vst [vmem:[#allocation3 + $0xa0] sm:$0xc0] %v2778_v61  ;;  %v6201_v57 = vpack.c.bf16 %v3098_v19, %v3094_v4  ;;  %v6203_v53 = vpack.c.bf16 %v3097_v20, %v3093_v58 }
 0x290   : > { %v2863_v34 = vpop.permute.xlu0 %2862  ;;  %6202 = vmatprep.subr.bf16.mxu1 %v6201_v57  ;;  %v2867_v40 = vpop.permute.xlu1 %2866 }
 0x291   : > { %v2872_v12 = vsel %vm825_vm4, %v2863_v34, %v8106_v16  ;;  %v2873_v44 = vsel %vm825_vm4, %v8106_v16, %v2867_v40  ;;  %v2874_v42 = vsel %vm825_vm4, %v2867_v40, %v8112_v22  ;;  %6204 = vmatpush1.bf16.msra.mxu1 %v6203_v53  ;;  %v3096_v25 = vld [vmem:[#allocation3 + $0xa8] sm:$0xff]  ;;  %v4834_v53 = vld [vmem:[#allocation2 + $0xe] sm:$0x3] }
 0x292   : > { %2880 = vst [vmem:[#allocation3 + $0xc0] sm:$0x3] %v2872_v12  ;;  %2881 = vst [vmem:[#allocation3 + $0xc8] sm:$0x3] %v2873_v44  ;;  %v6189_v28 = vpack.c.bf16 %v3096_v25, %v3092_v63  ;;  %v4928_v12 = vld [vmem:[#allocation2 + $0x10] sm:$0x3] }
 0x293   : > { %2882 = vst [vmem:[#allocation3 + $0xd0] sm:$0x3] %v2874_v42 }
 0x294   : > { %v3053_v5 = vpop.permute.xlu0 %3052  ;;  %6190 = vmatprep.subr.bf16.mxu0 %v6189_v28  ;;  %v2871_v11 = vpop.permute.xlu1 %2870 }
 0x295   : > { %v3062_v10 = vsel %vm633_vm7, %v3053_v5, %v3055_v26  ;;  %v2875_v30 = vsel %vm825_vm4, %v8112_v22, %v2871_v11  ;;  %v3095_v23 = vld [vmem:[#allocation3 + $0xa0] sm:$0xff] }
 0x296   : > { %3070 = vst [vmem:[#allocation3 + $0xc0] sm:$0x30] %v3062_v10  ;;  %2883 = vst [vmem:[#allocation3 + $0xd8] sm:$0x3] %v2875_v30  ;;  %v6191_v16 = vpack.c.bf16 %v3095_v23, %v3091_v41 }
 0x298   : > { %6192 = vmatpush1.bf16.msra.mxu0 %v6191_v16  ;;  %v2962_v50 = vpop.permute.xlu1 %2961  ;;  %v4646_v16 = vld [vmem:[#allocation2 + $0xe] sm:$0x3] }
 0x299   : > { %v2968_v2 = vsel %vm729_vm5, %v8119_v60, %v2962_v50  ;;  %v2969_v54 = vsel %vm729_vm5, %v2962_v50, %v2964_v6  ;;  %v5022_v50 = vld [vmem:[#allocation2 + $0x10] sm:$0x3] }
 0x29a   : > { %2976 = vst [vmem:[#allocation3 + $0xc8] sm:$0xc] %v2968_v2  ;;  %2977 = vst [vmem:[#allocation3 + $0xd0] sm:$0xc] %v2969_v54 }
 0x29c   : > { %v2966_v8 = vpop.permute.xlu1 %2965 }
 0x29d   : > { %v2970_v31 = vsel %vm729_vm5, %v2964_v6, %v2966_v8 }
 0x29e   : > { %2978 = vst [vmem:[#allocation3 + $0xd8] sm:$0xc] %v2970_v31 }
 0x2a0   : > { %v3057_v13 = vpop.permute.xlu1 %3056 }
 0x2a1   : > { %v3063_v7 = vsel %vm633_vm7, %v3055_v26, %v3057_v13  ;;  %v3064_v48 = vsel %vm633_vm7, %v3057_v13, %v3059_v51  ;;  %v4552_v26 = vld [vmem:[#allocation2 + $0xe] sm:$0x3] }
 0x2a2   : > { %3071 = vst [vmem:[#allocation3 + $0xc8] sm:$0x30] %v3063_v7  ;;  %3072 = vst [vmem:[#allocation3 + $0xd0] sm:$0x30] %v3064_v48 }
 0x2a4   : > { %v3061_v22 = vpop.permute.xlu1 %3060 }
 0x2a5   : > { %v3065_v9 = vsel %vm633_vm7, %v3059_v51, %v3061_v22 }
 0x2a6   : > { %3073 = vst [vmem:[#allocation3 + $0xd8] sm:$0x30] %v3065_v9 }
 0x2a8   : > { %v2958_v32 = vpop.permute.xlu1 %2957 }
 0x2a9   : > { %v2967_v46 = vsel %vm729_vm5, %v2958_v32, %v8119_v60  ;;  %v3100_v49 = vld [vmem:[#allocation3 + $0xc8] sm:$0x3f]  ;;  %v3101_v1 = vld [vmem:[#allocation3 + $0xd0] sm:$0x3f]  ;;  %v5117_v32 = vld [vmem:[#allocation2 + $0x10] sm:$0x3] }
 0x2aa   : > { %2975 = vst [vmem:[#allocation3 + $0xc0] sm:$0xc] %v2967_v46  ;;  %6140 = vmatprep.subr.msk.mxu0 %vm3113_vm8, %v3100_v49 }
 0x2ac   : > { %v8158_v62 = vpop.permute.xlu0 %3332 }
 0x2ad   : > { %v3102_v24 = vld [vmem:[#allocation3 + $0xd8] sm:$0x3f] }
 0x2ae   : > { %6143 = vmatprep.subr.msk.mxu1 %vm3113_vm8, %v3102_v24 }
 0x2af   : > { %6144 = vmatpush1.msk.msra.mxu1 %vm3113_vm8, %v3101_v1 }
 0x2b0   : > { %6145 = vmatmul.mubr.msk.f32.vlgmr.msra.gmra.mrb[2].mxu1 %vm3109_vm9, %v3074_v47  ;;  %v8164_v60 = vpop.permute.xlu0 %3519 }
 0x2b1   : > { %v3099_v0 = vld [vmem:[#allocation3 + $0xc0] sm:$0x3f]  ;;  %5928 = vmatprep.mubr.f32.mxu1 %v9464_v38 }
 0x2b2   : > { %6141 = vmatpush1.msk.msra.mxu0 %vm3113_vm8, %v3099_v0  ;;  %v5210_v0 = vld [vmem:[#allocation2 + $0x10] sm:$0x3] }
 0x2b3   : > { %6142 = vmatmul.mubr.msk.f32.vlgmr.msra.gmra.mrb[2].mxu0 %vm3109_vm9, %v3074_v47 }
 0x2b4   : > { %5857 = vmatprep.mubr.f32.mxu0 %v9464_v38 }
 0x2b6   : > { %v8168_v33 = vpop.permute.xlu0 %3866 }
 0x2b9   : > { %v8170_v56 = vpop.permute.xlu1 %3106 }
 0x2bb   : > { %v8174_v35 = vpop.permute.xlu0 %3960 }
 0x2bd   : > { %v8172_v17 = vpop.permute.xlu1 %3425 }
 0x2c0   : > { %v8178_v36 = vpop.permute.xlu0 %4148 }
 0x2c1   : > { %v8176_v52 = vpop.permute.xlu1 %3772 }
 0x2c5   : > { %v8180_v6 = vpop.permute.xlu1 %3613 }
 0x2c6   : > { %v8182_v45 = vpop.permute.xlu0 %4431 }
 0x2c9   : > { %v8184_v27 = vpop.permute.xlu1 %4055 }
 0x2cd   : > { %v8186_v55 = vpop.permute.xlu1 %4242  ;;  %v8188_v15 = vpop.permute.xlu0 %4336 }
 0x2d1   : > { %v8190_v21 = vpop.permute.xlu1 %4588 }
 0x2d2   : > { %v4590_v14 = vrot.slane %v8190_v21, 6  ;;  %v8193_v51 = vpop.permute.xlu0 %4777 }
 0x2d3   : > { %v4779_v43 = vrot.slane %v8193_v51, 6 }
 0x2d4   : > { %v4595_v4 = vmul.f32 %v4590_v14, %v4552_v26 }
 0x2d5   : > { %v8198_v61 = vpop.permute.xlu1 %4682  ;;  %v4784_v19 = vmul.f32 %v4779_v43, %v4741_v29 }
 0x2d6   : > { %v4621_v58 = vrot.slane %v4595_v4, %v6705_v37  ;;  %v4684_v2 = vrot.slane %v8198_v61, 6  ;;  %v5368_v4 = vld [vmem:[#allocation2 + $0x12] sm:$0x3] }
 0x2d7   : > { %v4810_v20 = vrot.slane %v4784_v19, %v6705_v37 }
 0x2d8   : > { %v4622_v57 = vcombine.low %v4621_v58, %v4621_v58  ;;  %v4689_v54 = vmul.f32 %v4684_v2, %v4646_v16 }
 0x2d9   : > { %v8204_v34 = vpop.permute.xlu1 %4870  ;;  %4819 = vrot.lane.b32.xlu1 %v4810_v20, %s6439_s27  ;;  %v5556_v20 = vld [vmem:[#allocation2 + $0x12] sm:$0x3] }
 0x2da   : > { %v4872_v40 = vrot.slane %v8204_v34, 6  ;;  %4631 = vrot.lane.b32.xlu0 %v4622_v57, %s6444_s29  ;;  %v4709_v31 = vcombine.low %v4689_v54, %v4689_v54 }
 0x2dc   : > { %v4877_v42 = vmul.f32 %v4872_v40, %v4834_v53  ;;  %v4716_v7 = vrot.slane %v4709_v31, %v6705_v37 }
 0x2dd   : > { %v8209_v44 = vpop.permute.xlu0 %4964  ;;  %v8220_v30 = vpop.permute.xlu1 %5153 }
 0x2de   : > { %v4966_v63 = vrot.slane %v8209_v44, 6  ;;  %v4897_v25 = vcombine.low %v4877_v42, %v4877_v42  ;;  %v4717_v22 = vcombine.low %v4716_v7, %v4716_v7  ;;  %v5155_v46 = vrot.slane %v8220_v30, 6  ;;  %v5463_v42 = vld [vmem:[#allocation2 + $0x12] sm:$0x3] }
 0x2e0   : > { %v4971_v28 = vmul.f32 %v4966_v63, %v4928_v12  ;;  %v4904_v11 = vrot.slane %v4897_v25, %v6705_v37  ;;  %4726 = vrot.lane.b32.xlu0 %v4717_v22, %s6441_s12  ;;  %v5160_v49 = vmul.f32 %v5155_v46, %v5117_v32 }
 0x2e1   : > { %v8222_v41 = vpop.permute.xlu1 %5058 }
 0x2e2   : > { %v4997_v5 = vrot.slane %v4971_v28, %v6705_v37  ;;  %4913 = vrot.lane.b32.xlu1 %v4904_v11, %s6440_s28  ;;  %v5060_v23 = vrot.slane %v8222_v41, 6  ;;  %v5186_v47 = vrot.slane %v5160_v49, %v6705_v37  ;;  %v4488_v49 = vld [vmem:[#allocation8 + $0x25] ss:$8 sm:$0xf] }
 0x2e3   : > { %v8237_v24 = vpop.permute.xlu0 %5246 }
 0x2e4   : > { %v4998_v10 = vcombine.low %v4997_v5, %v4997_v5  ;;  %v5065_v8 = vmul.f32 %v5060_v23, %v5022_v50  ;;  %v5248_v38 = vrot.slane %v8237_v24, 6  ;;  %v5650_v50 = vld [vmem:[#allocation2 + $0x12] sm:$0x3] }
 0x2e6   : > { %5007 = vrot.lane.b32.xlu1 %v4998_v10, %s6446_s25  ;;  %v5085_v13 = vcombine.low %v5065_v8, %v5065_v8  ;;  %v5253_v26 = vmul.f32 %v5248_v38, %v5210_v0  ;;  %v4497_v0 = vrot.slane %v4488_v49, %v9455_v18 }
 0x2e7   : > { %v8241_v1 = vpop.permute.xlu0 %5404 }
 0x2e8   : > { %v5092_v48 = vrot.slane %v5085_v13, %v6705_v37  ;;  %v5406_v19 = vrot.slane %v8241_v1, 6  ;;  %v5273_v53 = vcombine.low %v5253_v26, %v5253_v26  ;;  %v4501_v26 = vrot.slane %v4488_v49, %v9456_v3 }
 0x2e9   : > { %v8249_v58 = vpop.permute.xlu1 %5499 }
 0x2ea   : > { %v5093_v9 = vcombine.low %v5092_v48, %v5092_v48  ;;  %v5411_v12 = vmul.f32 %v5406_v19, %v5368_v4  ;;  %v9408_v25 = vrot.slane %v8249_v58, 6  ;;  %v5280_v10 = vrot.slane %v5273_v53, %v6705_v37 }
 0x2eb   : > { %v8246_v29 = vpop.permute.xlu0 %5592  ;;  %v4505_v4 = vrot.slane %v4488_v49, %v9457_v59 }
 0x2ec   : > { %5102 = vrot.lane.b32.xlu1 %v5093_v9, %s6445_s24  ;;  %v5594_v57 = vrot.slane %v8246_v29, 6  ;;  %v5506_v5 = vmul.f32 %v9408_v25, %v5463_v42  ;;  %v5431_v11 = vcombine.low %v5411_v12, %v5411_v12 }
 0x2ee   : > { %v5599_v28 = vmul.f32 %v5594_v57, %v5556_v20  ;;  %v5532_v31 = vrot.slane %v5506_v5, %v6705_v37  ;;  %v5438_v7 = vrot.slane %v5431_v11, %v6705_v37  ;;  %v4507_v5 = vcombine.low %v4501_v26, %v4505_v4  ;;  %v5304_v4 = vld [vmem:[#allocation8 + $0x46] ss:$8 sm:$0xf] }
 0x2ef   : > { %v8260_v54 = vpop.permute.xlu1 %5686 }
 0x2f0   : > { %5195 = vrot.lane.b32.xlu1 %v5186_v47, %s6443_s23  ;;  %v5619_v16 = vcombine.low %v5599_v28, %v5599_v28  ;;  %v5688_v8 = vrot.slane %v8260_v54, 6  ;;  %5541 = vrot.lane.b32.xlu0 %v5532_v31, %s6441_s12  ;;  %v5439_v9 = vcombine.low %v5438_v7, %v5438_v7  ;;  %v4493_v47 = vrot.slane %v4488_v49, %v9454_v39 }
 0x2f2   : > { %v5693_v13 = vmul.f32 %v5688_v8, %v5650_v50  ;;  %v5626_v48 = vrot.slane %v5619_v16, %v6705_v37  ;;  %v4506_v28 = vcombine.low %v4493_v47, %v4497_v0 }
 0x2f4   : > { %5289 = vrot.lane.b32.xlu1 %v5280_v10, %s6442_s26  ;;  %v5719_v22 = vrot.slane %v5693_v13, %v6705_v37  ;;  %5635 = vrot.lane.b32.xlu0 %v5626_v48, %s6439_s27  ;;  %v3672_v13 = vld [vmem:[#allocation8 + $0x4] ss:$8 sm:$0xf] }
 0x2f5   : > { %v3681_v47 = vrot.slane %v3672_v13, %v9455_v18  ;;  %v3685_v0 = vrot.slane %v3672_v13, %v9456_v3  ;;  %v3689_v26 = vrot.slane %v3672_v13, %v9457_v59 }
 0x2f6   : > { %v5720_v32 = vcombine.low %v5719_v22, %v5719_v22 }
 0x2f8   : > { %5448 = vrot.lane.b32.xlu1 %v5439_v9, %s6444_s29  ;;  %5729 = vrot.lane.b32.xlu0 %v5720_v32, %s6440_s28  ;;  %v4514_v9 = vrot.slane %v4506_v28, %v6705_v37  ;;  %v4521_v32 = vrot.slane %v4507_v5, %v6705_v37  ;;  %v3691_v28 = vcombine.low %v3685_v0, %v3689_v26  ;;  %v9405_v26 = vrot.slane %v8164_v60, 6 }
 0x2f9   : > { %v5309_v5 = vrot.slane %v5304_v4, %v9454_v39 }
 0x383   : > { %v3263_v20 = vpop.f32.mrb[2].mxu1 }
 0x384   : > { %v3264_v53 = vadd.f32 %v3263_v20, %v8170_v56  ;;  %v3265_v12 = vpop.f32.mrb[3].mxu1  ;;  %v3677_v20 = vrot.slane %v3672_v13, %v9454_v39  ;;  %v4591_v13 = vsel %vm966_vm2, %v4590_v14, %v8190_v21  ;;  %v9468_v39 = vrot.slane %v8172_v17, 6 }
 0x385   : > { %v3266_v42 = vadd.f32 %v3265_v12, %v8170_v56  ;;  %v4522_v12 = vcombine.low %v4514_v9, %v4521_v32 }
 0x386   : > { %v3270_v11 = vmax.f32 %v3264_v53, 0.0  ;;  %v3192_v10 = vpop.f32.mrb[2].mxu0 }
 0x387   : > { %v3271_v16 = vmax.f32 %v3266_v42, 0.0  ;;  %v3193_v50 = vadd.f32 %v3192_v10, %v8170_v56  ;;  %v3194_v31 = vpop.f32.mrb[3].mxu0  ;;  %v5313_v10 = vrot.slane %v5304_v4, %v9455_v18  ;;  %v4780_v18 = vsel %vm420_vm0, %v4779_v43, %v8193_v51 }
 0x388   : > { %v3195_v7 = vadd.f32 %v3194_v31, %v8170_v56 }
 0x389   : > { %v3277_v48 = vcombine.low %v3270_v11, %v3271_v16  ;;  %v3268_v22 = vmax.f32 %v3193_v50, 0.0  ;;  %v3690_v11 = vcombine.low %v3677_v20, %v3681_v47  ;;  %v5317_v16 = vrot.slane %v5304_v4, %v9456_v3 }
 0x38a   : > { %v3269_v49 = vmax.f32 %v3195_v7, 0.0  ;;  %v5321_v50 = vrot.slane %v5304_v4, %v9457_v59  ;;  %v4685_v7 = vsel %vm868_vm3, %v4684_v2, %v8198_v61  ;;  %v4873_v3 = vsel %vm675_vm1, %v4872_v40, %v8204_v34 }
 0x38b   : > { %v3291_v56 = vrot.slane %v3277_v48, %v6705_v37  ;;  %v3698_v61 = vrot.slane %v3690_v11, %v6705_v37  ;;  %v3705_v2 = vrot.slane %v3691_v28, %v6705_v37  ;;  %v5322_v9 = vcombine.low %v5309_v5, %v5313_v10 }
 0x38c   : > { %v3276_v53 = vcombine.low %v3268_v22, %v3269_v49  ;;  %v5323_v34 = vcombine.low %v5317_v16, %v5321_v50  ;;  %v9400_v11 = vrot.slane %v8180_v6, 6  ;;  %v9401_v16 = vrot.slane %v8168_v33, 6 }
 0x38d   : > { %v3706_v49 = vcombine.low %v3698_v61, %v3705_v2  ;;  %v5330_v47 = vrot.slane %v5322_v9, %v6705_v37  ;;  %v3334_v2 = vrot.slane %v8158_v62, 6 }
 0x38e   : > { %v3284_v42 = vrot.slane %v3276_v53, %v6705_v37  ;;  %v5337_v0 = vrot.slane %v5323_v34, %v6705_v37  ;;  %v3616_v50 = vsel %vm922_vm6, %v9400_v11, %v8180_v6 }
 0x390   : > { %v3292_v31 = vcombine.low %v3284_v42, %v3291_v56  ;;  %v5338_v56 = vcombine.low %v5330_v47, %v5337_v0  ;;  %v3522_v42 = vsel %vm825_vm4, %v9405_v26, %v8164_v60  ;;  %v9404_v0 = vrot.slane %v8176_v52, 6 }
 0x392   : > { %3294 = vst [vmem:[#allocation2 + $0x6] sm:$0xff] %v3292_v31  ;;  %v4524_v59 = vmul.f32 %v4522_v12, %v3292_v31  ;;  %v8310_v48 = vmul.f32 %v4591_v13, %v3292_v31  ;;  %v8312_v21 = vmul.f32 %v4685_v7, %v3292_v31  ;;  %v8314_v14 = vmul.f32 %v4780_v18, %v3292_v31 }
 0x393   : > { %v8316_v22 = vmul.f32 %v4873_v3, %v3292_v31  ;;  %v3869_v18 = vsel %vm868_vm3, %v9401_v16, %v8168_v33  ;;  %v9399_v3 = vrot.slane %v8174_v35, 6 }
 0x394   : > { %v4526_v51 = vcombine.low %v4524_v59, %v4524_v59  ;;  %v4540_v43 = vrot.slane %v4524_v59, %v6705_v37  ;;  %6149 = vst.sshfl [vmem:[#allocation3 + $0x70] sm:$0x30 pattern:$0x76325410] %v4524_v59 }
 0x395   : > { %v3963_v9 = vsel %vm420_vm0, %v9399_v3, %v8174_v35 }
 0x396   : > { %v4533_v40 = vrot.slane %v4526_v51, %v6705_v37  ;;  %v4542_v32 = vcombine.high %v4540_v43, %v4540_v43  ;;  %6148 = vst.sshfl [vmem:[#allocation3 + $0x60] sm:$0x30 pattern:$0x76325410] %v4526_v51  ;;  %v9407_v43 = vrot.slane %v8172_v17, 6 }
 0x398   : > { %v4541_v20 = vcombine.high %v4533_v40, %v4533_v40  ;;  %4550 = vst [vmem:[#allocation3 + $0x78] sm:$0xc] %v4542_v32  ;;  %v3428_v47 = vsel %vm729_vm5, %v9407_v43, %v8172_v17  ;;  %v5061_v43 = vsel %vm729_vm5, %v5060_v23, %v8222_v41  ;;  %v5407_v41 = vsel %vm966_vm2, %v5406_v19, %v8241_v1 }
 0x399   : > { %v8325_v4 = vld [vmem:[#allocation2 + $0x2] sm:$0xff]  ;;  %v8333_v28 = vld [vmem:[#allocation2 + $0xa] sm:$0xff] }
 0x39a   : > { %4548 = vst [vmem:[#allocation3 + $0x68] sm:$0xc] %v4541_v20  ;;  %v3708_v53 = vmul.f32 %v3706_v49, %v8325_v4  ;;  %v3295_v12 = vld [vmem:[#allocation2] sm:$0xff]  ;;  %v5340_v10 = vmul.f32 %v8333_v28, %v5338_v56  ;;  %v8357_v59 = vmul.f32 %v3869_v18, %v8325_v4  ;;  %v3296_v51 = vld [vmem:[#allocation2 + $0x8] sm:$0x3]  ;;  %v8373_v32 = vmul.f32 %v3963_v9, %v8325_v4 }
 0x39b   : > { %v8335_v5 = vmul.f32 %v3522_v42, %v3295_v12  ;;  %v8343_v31 = vmul.f32 %v3616_v50, %v3295_v12  ;;  %v3339_v40 = vmul.f32 %v3334_v2, %v3296_v51  ;;  %v3335_v20 = vsel %vm633_vm7, %v3334_v2, %v8158_v62  ;;  %v4019_v3 = vld [vmem:[#allocation2 + $0xa] sm:$0x3]  ;;  %v4395_v16 = vld [vmem:[#allocation2 + $0xc] sm:$0x3] }
 0x39c   : > { %6146 = vst.sshfl [vmem:[#allocation3 + $0x20] sm:$0x3 pattern:$0x76325410] %v3708_v53  ;;  %v3710_v7 = vcombine.high %v3708_v53, %v3708_v53  ;;  %v3717_v34 = vrot.slane %v3708_v53, %v6705_v37  ;;  %v8377_v49 = vrot.slane %v8357_v59, %v6705_v37  ;;  %v5342_v56 = vcombine.high %v5340_v10, %v5340_v10  ;;  %v4927_v26 = vld [vmem:[#allocation2 + $0x8] sm:$0xff] }
 0x39d   : > { %v8347_v13 = vrot.slane %v8335_v5, %v6705_v37  ;;  %6150 = vst.sshfl [vmem:[#allocation3 + $0xa8] sm:$0xc pattern:$0x76325410] %v5340_v10  ;;  %v8361_v61 = vrot.slane %v8343_v31, %v6705_v37  ;;  %v5349_v53 = vrot.slane %v5340_v10, %v6705_v37  ;;  %v8389_v42 = vmul.f32 %v3335_v20, %v3295_v12 }
 0x39e   : > { %6147 = vst.sshfl [vmem:[#allocation3 + $0x30] sm:$0x3 pattern:$0x76325410] %v3710_v7  ;;  %v8391_v50 = vmul.f32 %v3428_v47, %v3295_v12  ;;  %v3724_v18 = vrot.slane %v3710_v7, %v6705_v37  ;;  %v3725_v62 = vcombine.high %v3717_v34, %v3717_v34  ;;  %v8396_v2 = vrot.slane %v8373_v32, %v6705_v37 }
 0x39f   : > { %3556 = vrot.lane.b32.xlu0 %v8347_v13, %s6443_s23  ;;  %v5356_v51 = vrot.slane %v5342_v56, %v6705_v37  ;;  %v5357_v9 = vcombine.low %v5349_v53, %v5349_v53  ;;  %6151 = vst.sshfl [vmem:[#allocation3 + $0xb8] sm:$0xc pattern:$0x76325410] %v5342_v56  ;;  %v3365_v10 = vrot.slane %v3339_v40, %v6705_v37  ;;  %v4057_v20 = vrot.slane %v8184_v27, 6 }
 0x3a0   : > { %v3726_v11 = vcombine.high %v3724_v18, %v3724_v18  ;;  %3732 = vst [vmem:[#allocation3 + $0x28] sm:$0x3] %v3725_v62  ;;  %v3775_v7 = vsel %vm966_vm2, %v9404_v0, %v8176_v52  ;;  %v9402_v34 = vrot.slane %v8178_v36, 6  ;;  %v9403_v40 = vrot.slane %v8186_v55, 6  ;;  %v4111_v62 = vld [vmem:[#allocation2 + $0x4] sm:$0xff] }
 0x3a1   : > { %v5358_v12 = vcombine.low %v5356_v51, %v5356_v51  ;;  %5363 = vst [vmem:[#allocation3 + $0xa0] sm:$0x30] %v5357_v9  ;;  %3374 = vrot.lane.b32.xlu1 %v3365_v10, %s6446_s25  ;;  %v8411_v47 = vmul.f32 %v3775_v7, %v8325_v4  ;;  %v4062_v56 = vmul.f32 %v4057_v20, %v4019_v3  ;;  %v9406_v51 = vrot.slane %v8188_v15, 6 }
 0x3a2   : > { %3734 = vst [vmem:[#allocation3 + $0x38] sm:$0x3] %v3726_v11  ;;  %v8415_v53 = vrot.slane %v8389_v42, %v6705_v37  ;;  %v8419_v18 = vrot.slane %v8391_v50, %v6705_v37  ;;  %v4151_v11 = vsel %vm633_vm7, %v9402_v34, %v8178_v36  ;;  %v4245_v3 = vsel %vm729_vm5, %v9403_v40, %v8186_v55 }
 0x3a3   : > { %3655 = vrot.lane.b32.xlu0 %v8361_v61, %s6442_s26  ;;  %5365 = vst [vmem:[#allocation3 + $0xb0] sm:$0x30] %v5358_v12  ;;  %v8434_v9 = vmul.f32 %v4151_v11, %v4111_v62  ;;  %v8436_v10 = vmul.f32 %v4245_v3, %v4111_v62  ;;  %v8440_v12 = vrot.slane %v8411_v47, %v6705_v37  ;;  %v4433_v34 = vrot.slane %v8182_v45, 6 }
 0x3a4   : > { %v4088_v7 = vrot.slane %v4062_v56, %v6705_v37  ;;  %v4339_v11 = vsel %vm825_vm4, %v9406_v51, %v8188_v15  ;;  %v8483_v25 = vmul.f32 %v5061_v43, %v4927_v26  ;;  %v8507_v43 = vmul.f32 %v8333_v28, %v5407_v41 }
 0x3a5   : > { %3464 = vrot.lane.b32.xlu1 %v8419_v18, %s6445_s24  ;;  %v8451_v3 = vmul.f32 %v4339_v11, %v4111_v62  ;;  %v4438_v40 = vmul.f32 %v4433_v34, %v4395_v16  ;;  %v8455_v0 = vrot.slane %v8434_v9, %v6705_v37  ;;  %v8459_v56 = vrot.slane %v8436_v10, %v6705_v37 }
 0x3a6   : > { %v4967_v16 = vsel %vm633_vm7, %v4966_v63, %v8209_v44  ;;  %v8487_v44 = vrot.slane %v8310_v48, %v6705_v37 }
 0x3a7   : > { %3903 = vrot.lane.b32.xlu0 %v8377_v49, %s6441_s12  ;;  %v8473_v11 = vrot.slane %v8451_v3, %v6705_v37  ;;  %v4464_v51 = vrot.slane %v4438_v40, %v6705_v37  ;;  %v4058_v40 = vsel %vm675_vm1, %v4057_v20, %v8184_v27  ;;  %v4434_v27 = vsel %vm922_vm6, %v4433_v34, %v8182_v45 }
 0x3a8   : > { %v8504_v23 = vmul.f32 %v4058_v40, %v8325_v4  ;;  %v8523_v1 = vmul.f32 %v4434_v27, %v4111_v62  ;;  %v8531_v4 = vrot.slane %v8507_v43, %v6705_v37  ;;  %v5156_v45 = vsel %vm825_vm4, %v5155_v46, %v8220_v30 }
 0x3a9   : > { %3811 = vrot.lane.b32.xlu1 %v8440_v12, %s6444_s29  ;;  %v8541_v20 = vmul.f32 %v5156_v45, %v4927_v26  ;;  %v8549_v62 = vrot.slane %v8314_v14, %v6705_v37  ;;  %v5249_v30 = vsel %vm922_vm6, %v5248_v38, %v8237_v24  ;;  %v5595_v46 = vsel %vm420_vm0, %v5594_v57, %v8246_v29 }
 0x3aa   : > { %v8527_v19 = vrot.slane %v8504_v23, %v6705_v37  ;;  %v8545_v34 = vrot.slane %v8523_v1, %v6705_v37  ;;  %v8563_v40 = vmul.f32 %v5249_v30, %v4927_v26  ;;  %v8566_v41 = vmul.f32 %v5595_v46, %v8333_v28  ;;  %v3389_v30 = vld [vmem:[#allocation2 + $0x8] sm:$0x3] }
 0x3ab   : > { %4002 = vrot.lane.b32.xlu0 %v8396_v2, %s6439_s27  ;;  %v8570_v27 = vrot.slane %v8316_v22, %v6705_v37  ;;  %v8574_v45 = vrot.slane %v8541_v20, %v6705_v37  ;;  %v5689_v24 = vsel %vm675_vm1, %v5688_v8, %v8260_v54  ;;  %v9466_v54 = vrot.slane %v8249_v58, 6 }
 0x3ac   : > { %9465 = vst [vmem:[#allocation18_spill] sm:$0xff] %v8566_v41  ;;  %v8586_v38 = vrot.slane %v8566_v41, %v6705_v37  ;;  %v8590_v29 = vrot.slane %v8563_v40, %v6705_v37  ;;  %v8593_v57 = vmul.f32 %v5689_v24, %v8333_v28  ;;  %v3357_v24 = vcombine.high %v8415_v53, %v8415_v53 }
 0x3ad   : > { %4279 = vrot.lane.b32.xlu1 %v8459_v56, %s6445_s24  ;;  %v5502_v8 = vsel %vm868_vm3, %v9466_v54, %v8249_v58  ;;  %v3432_v41 = vmul.f32 %v9468_v39, %v3389_v30  ;;  %v3342_v54 = vcombine.high %v8389_v42, %v8389_v42  ;;  %v9469_v39 = vrot.slane %v8164_v60, 6 }
 0x3ae   : > { %v8608_v46 = vrot.slane %v8593_v57, %v6705_v37 }
 0x3af   : > { %3366 = vrot.lane.b32.xlu0 %v8415_v53, %s6446_s25  ;;  %v3451_v53 = vcombine.high %v8419_v18, %v8419_v18  ;;  %v3452_v30 = vcombine.low %v3432_v41, %v3432_v41  ;;  %v8635_v42 = vrot.slane %v3342_v54, %v6705_v37  ;;  %v9470_v54 = vrot.slane %v8176_v52, 6 }
 0x3b0   : > { %9467 = vst [vmem:[#allocation19_spill] sm:$0xff] %v8608_v46  ;;  %v3639_v52 = vcombine.low %v8361_v61, %v8361_v61  ;;  %v4112_v61 = vld [vmem:[#allocation2 + $0xc] sm:$0x3] }
 0x3b1   : > { %4378 = vrot.lane.b32.xlu1 %v8473_v11, %s6443_s23  ;;  %v3459_v60 = vrot.slane %v3452_v30, %v6705_v37  ;;  %v9471_v30 = vrot.slane %v8168_v33, 6 }
 0x3b3   : > { %4097 = vrot.lane.b32.xlu0 %v4088_v7, %s6440_s28  ;;  %v8469_v7 = vmul.f32 %v4967_v16, %v4927_v26  ;;  %v8515_v16 = vrot.slane %v8483_v25, %v6705_v37  ;;  %v8604_v26 = vmul.f32 %v5502_v8, %v8333_v28  ;;  %v3483_v28 = vld [vmem:[#allocation2 + $0x8] sm:$0x3]  ;;  %v3529_v8 = vcombine.high %v8335_v5, %v8335_v5 }
 0x3b4   : > { %v3526_v17 = vmul.f32 %v9469_v39, %v3483_v28  ;;  %v3830_v28 = vld [vmem:[#allocation2 + $0xa] sm:$0x3] }
 0x3b5   : > { %v8491_v63 = vrot.slane %v8469_v7, %v6705_v37  ;;  %4625 = vrot.lane.b32.xlu1 %v8487_v44, %s6444_s29  ;;  %v8619_v58 = vrot.slane %v8604_v26, %v6705_v37  ;;  %v8638_v5 = vrot.slane %v3529_v8, %v6705_v37 }
 0x3b6   : > { %v3552_v18 = vrot.slane %v3526_v17, %v6705_v37  ;;  %v3798_v17 = vcombine.high %v8440_v12, %v8440_v12 }
 0x3b7   : > { %4187 = vrot.lane.b32.xlu0 %v8455_v0, %s6446_s25 }
 0x3b8   : > { %v3553_v39 = vcombine.low %v3552_v18, %v3552_v18 }
 0x3bb   : > { %4473 = vrot.lane.b32.xlu0 %v4464_v51, %s6442_s26  ;;  %v8511_v51 = vrot.slane %v8312_v21, %v6705_v37 }
 0x3bd   : > { %4724 = vrot.lane.b32.xlu1 %v8511_v51, %s6441_s12 }
 0x3bf   : > { %5001 = vrot.lane.b32.xlu0 %v8491_v63, %s6446_s25 }
 0x3c1   : > { %4089 = vrot.lane.b32.xlu1 %v8527_v19, %s6440_s28 }
 0x3c3   : > { %5100 = vrot.lane.b32.xlu0 %v8515_v16, %s6445_s24 }
 0x3c5   : > { %4465 = vrot.lane.b32.xlu1 %v8545_v34, %s6442_s26 }
 0x3c7   : > { %5446 = vrot.lane.b32.xlu0 %v8531_v4, %s6444_s29 }
 0x3c9   : > { %4909 = vrot.lane.b32.xlu1 %v8570_v27, %s6440_s28 }
 0x3cb   : > { %4811 = vrot.lane.b32.xlu0 %v8549_v62, %s6439_s27 }
 0x3cd   : > { %5285 = vrot.lane.b32.xlu1 %v8590_v29, %s6442_s26 }
 0x3cf   : > { %5187 = vrot.lane.b32.xlu0 %v8574_v45, %s6443_s23 }
 0x3d1   : > { %5723 = vrot.lane.b32.xlu1 %v8608_v46, %s6440_s28  ;;  %v3970_v46 = vcombine.low %v8373_v32, %v8373_v32  ;;  %v3782_v32 = vcombine.low %v8411_v47, %v8411_v47  ;;  %v3986_v47 = vcombine.low %v8396_v2, %v8396_v2 }
 0x3d3   : > { %5631 = vrot.lane.b32.xlu0 %v8586_v38, %s6439_s27  ;;  %v8675_v18 = vrot.slane %v3970_v46, %v6705_v37  ;;  %v9472_v46 = vrot.slane %v8178_v36, 6  ;;  %v9474_v36 = vrot.slane %v8186_v55, 6  ;;  %v3891_v55 = vcombine.low %v8377_v49, %v8377_v49 }
 0x3d4   : > { %v4252_v49 = vcombine.high %v8436_v10, %v8436_v10 }
 0x3d5   : > { %5533 = vrot.lane.b32.xlu1 %v8619_v58, %s6441_s12 }
 0x3d6   : > { %v8751_v10 = vrot.slane %v4252_v49, %v6705_v37  ;;  %v4802_v49 = vcombine.high %v8549_v62, %v8549_v62  ;;  %v4896_v62 = vcombine.high %v8570_v27, %v8570_v27  ;;  %v5163_v27 = vcombine.high %v8541_v20, %v8541_v20 }
 0x3d7   : > { %3368 = vrot.lane.b32.xlu0 %v3357_v24, %s6446_s25  ;;  %v3623_v24 = vcombine.low %v8343_v31, %v8343_v31  ;;  %v3736_v31 = vld [vmem:[#allocation2 + $0xa] sm:$0x3] }
 0x3d8   : > { %v3779_v8 = vmul.f32 %v9470_v54, %v3736_v31  ;;  %v4155_v54 = vmul.f32 %v9472_v46, %v4112_v61  ;;  %v4441_v46 = vcombine.high %v8523_v1, %v8523_v1 }
 0x3d9   : > { %3370 = vrot.lane.b32.xlu1 %v8635_v42, %s6446_s25  ;;  %v8647_v41 = vrot.slane %v3623_v24, %v6705_v37  ;;  %v3873_v24 = vmul.f32 %v9471_v30, %v3830_v28  ;;  %v3544_v28 = vcombine.low %v8347_v13, %v8347_v13  ;;  %v4206_v13 = vld [vmem:[#allocation2 + $0xc] sm:$0x3]  ;;  %v8700_v30 = vpop.permute.xlu0 %4631 }
 0x3da   : > { %v8754_v1 = vrot.slane %v4441_v46, %v6705_v37  ;;  %v4974_v46 = vcombine.high %v8469_v7, %v8469_v7 }
 0x3db   : > { %3466 = vrot.lane.b32.xlu0 %v3451_v53, %s6445_s24  ;;  %v3876_v53 = vcombine.high %v8357_v59, %v8357_v59  ;;  %v3899_v12 = vrot.slane %v3873_v24, %v6705_v37 }
 0x3dd   : > { %3468 = vrot.lane.b32.xlu1 %v3459_v60, %s6445_s24  ;;  %v3799_v60 = vcombine.low %v3779_v8, %v3779_v8  ;;  %v8667_v59 = vrot.slane %v3876_v53, %v6705_v37  ;;  %v3900_v31 = vcombine.low %v3899_v12, %v3899_v12  ;;  %v3435_v8 = vcombine.low %v8391_v50, %v8391_v50 }
 0x3de   : > { %v4065_v53 = vcombine.high %v8504_v23, %v8504_v23  ;;  %v4249_v50 = vmul.f32 %v9474_v36, %v4206_v13  ;;  %v4175_v23 = vcombine.low %v4155_v54, %v4155_v54  ;;  %v4174_v54 = vcombine.high %v8455_v0, %v8455_v0 }
 0x3df   : > { %3560 = vrot.lane.b32.xlu0 %v8638_v5, %s6443_s23  ;;  %v3806_v33 = vrot.slane %v3799_v60, %v6705_v37  ;;  %v8707_v24 = vrot.slane %v3435_v8, %v6705_v37  ;;  %v8714_v60 = vpop.permute.xlu0 %4726  ;;  %v4362_v8 = vcombine.low %v8473_v11, %v8473_v11  ;;  %v4158_v11 = vcombine.low %v8434_v9, %v8434_v9 }
 0x3e0   : > { %v8710_v2 = vrot.slane %v4065_v53, %v6705_v37  ;;  %v4346_v53 = vcombine.low %v8451_v3, %v8451_v3  ;;  %v4708_v13 = vcombine.low %v8511_v51, %v8511_v51  ;;  %v4692_v51 = vcombine.low %v8312_v21, %v8312_v21 }
 0x3e1   : > { %3562 = vrot.lane.b32.xlu1 %v3553_v39, %s6443_s23  ;;  %v8695_v39 = vrot.slane %v3782_v32, %v6705_v37  ;;  %v4080_v32 = vcombine.high %v8527_v19, %v8527_v19 }
 0x3e2   : > { %v8765_v3 = vrot.slane %v4346_v53, %v6705_v37 }
 0x3e3   : > { %3651 = vrot.lane.b32.xlu0 %v8647_v41, %s6442_s26  ;;  %v8726_v61 = vpop.permute.xlu0 %5541 }
 0x3e4   : > { %9475 = vst [vmem:[#allocation25_spill] sm:$0xff] %v8726_v61  ;;  %v3577_v61 = vld [vmem:[#allocation2 + $0x8] sm:$0x3] }
 0x3e5   : > { %3653 = vrot.lane.b32.xlu1 %v3639_v52, %s6442_s26  ;;  %v4275_v52 = vrot.slane %v4249_v50, %v6705_v37  ;;  %v4598_v50 = vcombine.high %v8310_v48, %v8310_v48 }
 0x3e7   : > { %3813 = vrot.lane.b32.xlu0 %v3798_v17, %s6444_s29  ;;  %v8698_v17 = vpop.permute.xlu1 %4819  ;;  %v8742_v19 = vpop.permute.xlu0 %5635  ;;  %v8791_v48 = vrot.slane %v4598_v50, %v6705_v37  ;;  %v5084_v50 = vcombine.low %v8515_v16, %v8515_v16  ;;  %v5178_v16 = vcombine.high %v8574_v45, %v8574_v45  ;;  %v5272_v45 = vcombine.high %v8590_v29, %v8590_v29 }
 0x3e8   : > { %9473 = vst [vmem:[#allocation20_spill] sm:$0xff] %v8698_v17  ;;  %v5509_v29 = vcombine.high %v8604_v26, %v8604_v26 }
 0x3e9   : > { %3815 = vrot.lane.b32.xlu1 %v3806_v33, %s6444_s29  ;;  %v4182_v33 = vrot.slane %v4175_v23, %v6705_v37  ;;  %v4456_v23 = vcombine.high %v8545_v34, %v8545_v34  ;;  %v4613_v34 = vcombine.low %v8487_v44, %v8487_v44  ;;  %v4787_v44 = vcombine.high %v8314_v14, %v8314_v14 }
 0x3ea   : > { %v5068_v14 = vcombine.low %v8483_v25, %v8483_v25 }
 0x3eb   : > { %3907 = vrot.lane.b32.xlu0 %v8667_v59, %s6441_s12  ;;  %v8719_v12 = vpop.permute.xlu1 %4913  ;;  %v8760_v0 = vpop.permute.xlu0 %5729  ;;  %v8831_v7 = vrot.slane %v4787_v44, %v6705_v37  ;;  %v4880_v44 = vcombine.low %v8316_v22, %v8316_v22  ;;  %v5256_v22 = vcombine.low %v8563_v40, %v8563_v40 }
 0x3ed   : > { %3909 = vrot.lane.b32.xlu1 %v3900_v31, %s6441_s12  ;;  %v4276_v31 = vcombine.low %v4275_v52, %v4275_v52  ;;  %v8781_v52 = vrot.slane %v4158_v11, %v6705_v37 }
 0x3ef   : > { %3998 = vrot.lane.b32.xlu0 %v8675_v18, %s6439_s27 }
 0x3f1   : > { %4000 = vrot.lane.b32.xlu1 %v3986_v47, %s6439_s27 }
 0x3f3   : > { %3554 = vrot.lane.b32.xlu0 %v3544_v28, %s6443_s23  ;;  %v8730_v28 = vpop.permute.xlu1 %5007 }
 0x3f5   : > { %3460 = vrot.lane.b32.xlu1 %v8707_v24, %s6445_s24 }
 0x3f7   : > { %3807 = vrot.lane.b32.xlu0 %v8695_v39, %s6444_s29  ;;  %v8748_v47 = vpop.permute.xlu1 %5102 }
 0x3f9   : > { %3901 = vrot.lane.b32.xlu1 %v3891_v55, %s6441_s12 }
 0x3fb   : > { %4093 = vrot.lane.b32.xlu0 %v8710_v2, %s6440_s28  ;;  %v8769_v36 = vpop.permute.xlu1 %5195 }
 0x3fc   : > { %9476 = vst [vmem:[#allocation21_spill] sm:$0xff] %v8769_v36 }
 0x3fd   : > { %4091 = vrot.lane.b32.xlu1 %v4080_v32, %s6440_s28 }
 0x3ff   : > { %4191 = vrot.lane.b32.xlu0 %v4182_v33, %s6446_s25  ;;  %v8788_v55 = vpop.permute.xlu1 %5289 }
 0x401   : > { %4189 = vrot.lane.b32.xlu1 %v4174_v54, %s6446_s25 }
 0x403   : > { %4285 = vrot.lane.b32.xlu0 %v4276_v31, %s6445_s24  ;;  %v8800_v32 = vpop.permute.xlu1 %5448  ;;  %v8803_v31 = vrot.slane %v4692_v51, %v6705_v37  ;;  %v8851_v51 = vrot.slane %v5068_v14, %v6705_v37 }
 0x405   : > { %4283 = vrot.lane.b32.xlu1 %v8751_v10, %s6445_s24 }
 0x407   : > { %4376 = vrot.lane.b32.xlu0 %v4362_v8, %s6443_s23  ;;  %v4267_v8 = vcombine.low %v8459_v56, %v8459_v56  ;;  %v8836_v56 = vrot.slane %v4974_v46, %v6705_v37  ;;  %v5414_v46 = vcombine.low %v8507_v43, %v8507_v43  ;;  %v8887_v43 = vrot.slane %v4880_v44, %v6705_v37 }
 0x409   : > { %4374 = vrot.lane.b32.xlu1 %v8765_v3, %s6443_s23 }
 0x40b   : > { %4469 = vrot.lane.b32.xlu0 %v8754_v1, %s6442_s26 }
 0x40d   : > { %4467 = vrot.lane.b32.xlu1 %v4456_v23, %s6442_s26 }
 0x40f   : > { %4722 = vrot.lane.b32.xlu0 %v4708_v13, %s6441_s12 }
 0x411   : > { %v8778_v9 = vpop.permute.xlu0 %3556  ;;  %4629 = vrot.lane.b32.xlu1 %v8791_v48, %s6444_s29 }
 0x413   : > { %4183 = vrot.lane.b32.xlu0 %v8781_v52, %s6446_s25  ;;  %v8816_v54 = vpop.permute.xlu1 %3374 }
 0x415   : > { %v8793_v33 = vpop.permute.xlu0 %3655  ;;  %4720 = vrot.lane.b32.xlu1 %v8803_v31, %s6441_s12 }
 0x417   : > { %4623 = vrot.lane.b32.xlu0 %v4613_v34, %s6444_s29  ;;  %v8828_v11 = vpop.permute.xlu1 %3464 }
 0x419   : > { %v8805_v21 = vpop.permute.xlu0 %3903  ;;  %4277 = vrot.lane.b32.xlu1 %v4267_v8, %s6445_s24 }
 0x41b   : > { %4813 = vrot.lane.b32.xlu0 %v4802_v49, %s6439_s27  ;;  %v8844_v25 = vpop.permute.xlu1 %3811  ;;  %v8859_v49 = vrot.slane %v5163_v27, %v6705_v37 }
 0x41d   : > { %v8820_v53 = vpop.permute.xlu0 %4002  ;;  %4815 = vrot.lane.b32.xlu1 %v8831_v7, %s6439_s27 }
 0x41f   : > { %4911 = vrot.lane.b32.xlu0 %v4896_v62, %s6440_s28  ;;  %v8856_v34 = vpop.permute.xlu1 %4279  ;;  %v5430_v62 = vcombine.low %v8531_v4, %v8531_v4  ;;  %v8892_v4 = vrot.slane %v5414_v46, %v6705_v37  ;;  %v4989_v46 = vcombine.low %v8491_v63, %v8491_v63  ;;  %v5524_v63 = vcombine.high %v8619_v58, %v8619_v58 }
 0x420   : > { %v5696_v58 = vcombine.high %v8593_v57, %v8593_v57 }
 0x421   : > { %v8833_v13 = vpop.permute.xlu0 %3366  ;;  %5098 = vrot.lane.b32.xlu1 %v5084_v50, %s6445_s24 }
 0x422   : > { %v8950_v57 = vrot.slane %v5696_v58, %v6705_v37  ;;  %v3545_v58 = vcombine.low %v8638_v5, %v8638_v5  ;;  %v3985_v5 = vcombine.low %v8675_v18, %v8675_v18 }
 0x423   : > { %5005 = vrot.lane.b32.xlu0 %v8836_v56, %s6446_s25  ;;  %v8872_v8 = vpop.permute.xlu1 %4378 }
 0x425   : > { %v8848_v23 = vpop.permute.xlu0 %4097  ;;  %5191 = vrot.lane.b32.xlu1 %v8859_v49, %s6443_s23 }
 0x426   : > { %9477 = vst [vmem:[#allocation26_spill] sm:$0xff] %v8848_v23  ;;  %v3797_v23 = vcombine.high %v8695_v39, %v8695_v39 }
 0x427   : > { %5096 = vrot.lane.b32.xlu0 %v8851_v51, %s6445_s24  ;;  %v8884_v27 = vpop.permute.xlu1 %4625 }
 0x429   : > { %v8861_v20 = vpop.permute.xlu0 %4187  ;;  %5444 = vrot.lane.b32.xlu1 %v5430_v62, %s6444_s29 }
 0x42b   : > { %5189 = vrot.lane.b32.xlu0 %v5178_v16, %s6443_s23  ;;  %v8903_v16 = vrot.slane %v5256_v22, %v6705_v37 }
 0x42d   : > { %v8876_v14 = vpop.permute.xlu0 %4473  ;;  %4905 = vrot.lane.b32.xlu1 %v8887_v43, %s6440_s28 }
 0x42e   : > { %9478 = vst [vmem:[#allocation22_spill] sm:$0xff] %v8876_v14 }
 0x42f   : > { %5287 = vrot.lane.b32.xlu0 %v5272_v45, %s6442_s26  ;;  %v8900_v40 = vpop.permute.xlu1 %4724 }
 0x430   : > { %v4731_v62 = vsel %vm825_vm4, %v8900_v40, %v8714_v60  ;;  %v8925_v60 = vrot.slane %v5509_v29, %v6705_v37  ;;  %v5618_v29 = vcombine.high %v8586_v38, %v8586_v38  ;;  %v3450_v38 = vcombine.high %v8707_v24, %v8707_v24 }
 0x431   : > { %v8889_v50 = vpop.permute.xlu0 %5001  ;;  %4739 = vst [vmem:[#allocation3 + $0x78] sm:$0xc0] %v4731_v62  ;;  %5281 = vrot.lane.b32.xlu1 %v8903_v16, %s6442_s26 }
 0x433   : > { %5442 = vrot.lane.b32.xlu0 %v8892_v4, %s6444_s29  ;;  %v8918_v26 = vpop.permute.xlu1 %4089 }
 0x435   : > { %v8905_v44 = vpop.permute.xlu0 %5100  ;;  %5535 = vrot.lane.b32.xlu1 %v5524_v63, %s6441_s12  ;;  %v3924_v63 = vld [vmem:[#allocation2 + $0xa] sm:$0x3] }
 0x436   : > { %v5107_v45 = vsel %vm420_vm0, %v8905_v44, %v8748_v47 }
 0x437   : > { %5115 = vst [vmem:[#allocation3 + $0x98] sm:$0xc0] %v5107_v45  ;;  %4999 = vrot.lane.b32.xlu0 %v4989_v46, %s6446_s25  ;;  %v9479_v46 = vrot.slane %v8180_v6, 6  ;;  %v8937_v45 = vpop.permute.xlu1 %4465 }
 0x439   : > { %v8922_v22 = vpop.permute.xlu0 %5446  ;;  %v3620_v62 = vmul.f32 %v9479_v46, %v3577_v61  ;;  %5633 = vrot.lane.b32.xlu1 %v5618_v29, %s6439_s27  ;;  %v4300_v46 = vld [vmem:[#allocation2 + $0xc] sm:$0x3] }
 0x43a   : > { %v5453_v47 = vsel %vm922_vm6, %v8922_v22, %v8800_v32  ;;  %v3358_v32 = vcombine.high %v8635_v42, %v8635_v42  ;;  %v9480_v42 = vrot.slane %v8174_v35, 6 }
 0x43b   : > { %5461 = vst [vmem:[#allocation3 + $0xb8] sm:$0xc0] %v5453_v47  ;;  %5537 = vrot.lane.b32.xlu0 %v8925_v60, %s6441_s12  ;;  %v3640_v6 = vcombine.low %v3620_v62, %v3620_v62  ;;  %v8947_v61 = vpop.permute.xlu1 %4909  ;;  %v9481_v62 = vrot.slane %v8188_v15, 6 }
 0x43c   : > { %v3967_v29 = vmul.f32 %v9480_v42, %v3924_v63 }
 0x43d   : > { %v8941_v36 = vpop.permute.xlu0 %4811  ;;  %5727 = vrot.lane.b32.xlu1 %v8950_v57, %s6440_s28  ;;  %v3647_v17 = vrot.slane %v3640_v6, %v6705_v37 }
 0x43e   : > { %v3987_v35 = vcombine.low %v3967_v29, %v3967_v29  ;;  %v4268_v29 = vcombine.low %v8751_v10, %v8751_v10 }
 0x43f   : > { %3372 = vrot.lane.b32.xlu0 %v3358_v32, %s6446_s25  ;;  %v4343_v32 = vmul.f32 %v9481_v62, %v4300_v46  ;;  %v8963_v14 = vpop.permute.xlu1 %5285 }
 0x440   : > { %v3994_v42 = vrot.slane %v3987_v35, %v6705_v37 }
 0x441   : > { %v8952_v47 = vpop.permute.xlu0 %5187  ;;  %3558 = vrot.lane.b32.xlu1 %v3545_v58, %s6443_s23  ;;  %v4363_v63 = vcombine.low %v4343_v32, %v4343_v32 }
 0x442   : > { %v3995_v32 = vcombine.low %v3994_v42, %v3994_v42 }
 0x443   : > { %3462 = vrot.lane.b32.xlu0 %v3450_v38, %s6445_s24  ;;  %v8974_v15 = vpop.permute.xlu1 %5723  ;;  %v3648_v38 = vcombine.low %v3647_v17, %v3647_v17  ;;  %v4370_v18 = vrot.slane %v4363_v63, %v6705_v37  ;;  %v3638_v63 = vcombine.low %v8647_v41, %v8647_v41  ;;  %v4361_v41 = vcombine.low %v8765_v3, %v8765_v3 }
 0x444   : > { %v4803_v3 = vcombine.high %v8831_v7, %v8831_v7  ;;  %v4895_v7 = vcombine.high %v8887_v43, %v8887_v43 }
 0x445   : > { %v8968_v24 = vpop.permute.xlu0 %5631  ;;  %3657 = vrot.lane.b32.xlu1 %v3648_v38, %s6442_s26  ;;  %v4371_v58 = vcombine.low %v4370_v18, %v4370_v18 }
 0x447   : > { %3809 = vrot.lane.b32.xlu0 %v3797_v23, %s6444_s29  ;;  %v8982_v39 = vpop.permute.xlu1 %5533  ;;  %v3892_v23 = vcombine.low %v8667_v59, %v8667_v59 }
 0x449   : > { %v3369_v46 = vpop.permute.xlu0 %3368  ;;  %3905 = vrot.lane.b32.xlu1 %v3892_v23, %s6441_s12  ;;  %v4081_v23 = vcombine.high %v8710_v2, %v8710_v2  ;;  %v4173_v2 = vcombine.high %v8781_v52, %v8781_v52  ;;  %v4457_v52 = vcombine.high %v8754_v1, %v8754_v1  ;;  %v5179_v1 = vcombine.high %v8859_v49, %v8859_v49 }
 0x44a   : > { %v3376_v6 = vsel %vm675_vm1, %v8833_v13, %v3369_v46  ;;  %v5271_v49 = vcombine.high %v8903_v16, %v8903_v16  ;;  %v5083_v16 = vcombine.low %v8851_v51, %v8851_v51 }
 0x44b   : > { %3384 = vst [vmem:[#allocation3] sm:$0x3] %v3376_v6  ;;  %3996 = vrot.lane.b32.xlu0 %v3985_v5, %s6439_s27  ;;  %v8994_v62 = vpop.permute.xlu1 %3370  ;;  %v4614_v5 = vcombine.low %v8791_v48, %v8791_v48 }
 0x44c   : > { %v3377_v35 = vsel %vm675_vm1, %v3369_v46, %v8994_v62 }
 0x44d   : > { %v3467_v17 = vpop.permute.xlu0 %3466  ;;  %4004 = vrot.lane.b32.xlu1 %v3995_v32, %s6439_s27  ;;  %3385 = vst [vmem:[#allocation3 + $0x8] sm:$0x3] %v3377_v35 }
 0x44e   : > { %v3472_v13 = vsel %vm420_vm0, %v8828_v11, %v3467_v17 }
 0x44f   : > { %3480 = vst [vmem:[#allocation3 + $0x10] sm:$0xc] %v3472_v13  ;;  %4281 = vrot.lane.b32.xlu0 %v4268_v29, %s6445_s24  ;;  %v3469_v10 = vpop.permute.xlu1 %3468 }
 0x450   : > { %v3473_v6 = vsel %vm420_vm0, %v3467_v17, %v3469_v10 }
 0x451   : > { %v8996_v59 = vpop.permute.xlu0 %3560  ;;  %3649 = vrot.lane.b32.xlu1 %v3638_v63, %s6442_s26  ;;  %3481 = vst [vmem:[#allocation3 + $0x18] sm:$0xc] %v3473_v6 }
 0x453   : > { %4380 = vrot.lane.b32.xlu0 %v4371_v58, %s6443_s23  ;;  %v3563_v46 = vpop.permute.xlu1 %3562 }
 0x454   : > { %v3567_v29 = vsel %vm868_vm3, %v8996_v59, %v3563_v46 }
 0x455   : > { %v9004_v38 = vpop.permute.xlu0 %3651  ;;  %4095 = vrot.lane.b32.xlu1 %v4081_v23, %s6440_s28  ;;  %3575 = vst [vmem:[#allocation3 + $0x18] sm:$0x30] %v3567_v29 }
 0x457   : > { %4627 = vrot.lane.b32.xlu0 %v4614_v5, %s6444_s29  ;;  %v3654_v17 = vpop.permute.xlu1 %3653  ;;  %v4707_v5 = vcombine.low %v8803_v31, %v8803_v31  ;;  %v4990_v31 = vcombine.low %v8836_v56, %v8836_v56 }
 0x458   : > { %v3661_v13 = vsel %vm966_vm2, %v3654_v17, %v8793_v33  ;;  %v3660_v32 = vsel %vm966_vm2, %v9004_v38, %v3654_v17 }
 0x459   : > { %v3814_v42 = vpop.permute.xlu0 %3813  ;;  %3669 = vst [vmem:[#allocation3 + $0x10] sm:$0xc0] %v3661_v13  ;;  %4185 = vrot.lane.b32.xlu1 %v4173_v2, %s6446_s25  ;;  %3668 = vst [vmem:[#allocation3 + $0x8] sm:$0xc0] %v3660_v32 }
 0x45a   : > { %v3819_v48 = vsel %vm922_vm6, %v8844_v25, %v3814_v42 }
 0x45b   : > { %3827 = vst [vmem:[#allocation3 + $0x30] sm:$0xc] %v3819_v48  ;;  %4372 = vrot.lane.b32.xlu0 %v4361_v41, %s6443_s23  ;;  %v3816_v58 = vpop.permute.xlu1 %3815  ;;  %v9482_v48 = vld [vmem:[#allocation18_spill] sm:$0xff] }
 0x45c   : > { %v3820_v10 = vsel %vm922_vm6, %v3814_v42, %v3816_v58  ;;  %v5602_v56 = vcombine.low %v9482_v48, %v9482_v48  ;;  %v5525_v58 = vcombine.high %v8925_v60, %v8925_v60 }
 0x45d   : > { %v9023_v18 = vpop.permute.xlu0 %3907  ;;  %4471 = vrot.lane.b32.xlu1 %v4457_v52, %s6442_s26  ;;  %3828 = vst [vmem:[#allocation3 + $0x38] sm:$0xc] %v3820_v10 }
 0x45e   : > { %v5609_v13 = vrot.slane %v5602_v56, %v6705_v37 }
 0x45f   : > { %4817 = vrot.lane.b32.xlu0 %v4803_v3, %s6439_s27  ;;  %v3910_v63 = vpop.permute.xlu1 %3909  ;;  %v5429_v3 = vcombine.low %v8892_v4, %v8892_v4 }
 0x460   : > { %v3914_v46 = vsel %vm825_vm4, %v9023_v18, %v3910_v63  ;;  %v5617_v10 = vcombine.high %v5609_v13, %v5609_v13 }
 0x461   : > { %v9035_v35 = vpop.permute.xlu0 %3998  ;;  %4718 = vrot.lane.b32.xlu1 %v4707_v5, %s6441_s12  ;;  %3922 = vst [vmem:[#allocation3 + $0x38] sm:$0x30] %v3914_v46 }
 0x463   : > { %4907 = vrot.lane.b32.xlu0 %v4895_v7, %s6440_s28  ;;  %v4001_v23 = vpop.permute.xlu1 %4000  ;;  %v5712_v7 = vcombine.low %v8950_v57, %v8950_v57  ;;  %v5772_v57 = vld [vmem:[%s9356_s6] sm:$0x3] }
 0x464   : > { %v4008_v41 = vsel %vm729_vm5, %v4001_v23, %v8820_v53  ;;  %v4007_v29 = vsel %vm729_vm5, %v9035_v35, %v4001_v23 }
 0x465   : > { %v3555_v6 = vpop.permute.xlu0 %3554  ;;  %4016 = vst [vmem:[#allocation3 + $0x30] sm:$0xc0] %v4008_v41  ;;  %5003 = vrot.lane.b32.xlu1 %v4990_v31, %s6446_s25  ;;  %4015 = vst [vmem:[#allocation3 + $0x28] sm:$0xc0] %v4007_v29  ;;  %v5939_v31 = vld [vmem:[%s9357_s7] sm:$0x3] }
 0x466   : > { %v3564_v43 = vsel %vm868_vm3, %v3555_v6, %v8778_v9  ;;  %v9483_v6 = vld [vmem:[#allocation19_spill] sm:$0xff] }
 0x467   : > { %3572 = vst [vmem:[#allocation3] sm:$0x30] %v3564_v43  ;;  %5193 = vrot.lane.b32.xlu0 %v5179_v1, %s6443_s23  ;;  %v9066_v17 = vpop.permute.xlu1 %3460  ;;  %v5711_v1 = vcombine.low %v9483_v6, %v9483_v6 }
 0x469   : > { %v9054_v42 = vpop.permute.xlu0 %3807  ;;  %5094 = vrot.lane.b32.xlu1 %v5083_v16, %s6445_s24  ;;  %s6164_s24 = sshll.u32 %s6528_s8, 6  ;;  %s6448_s8 = smov [#allocation10]  }
 0x46a   : > { %s9306_s30 = scalar_lea.hbm %s9360_s10, %s6164_s24 }
 0x46b   : > { %5283 = vrot.lane.b32.xlu0 %v5271_v49, %s6442_s26  ;;  %v3902_v32 = vpop.permute.xlu1 %3901  ;;  %v5978_v49 = vld [vmem:[#allocation4] sm:$0x1] }
 0x46c   : > { %v3911_v51 = vsel %vm825_vm4, %v3902_v32, %v8805_v21 }
 0x46d   : > { %v9070_v2 = vpop.permute.xlu0 %4093  ;;  %3919 = vst [vmem:[#allocation3 + $0x20] sm:$0x30] %v3911_v51  ;;  %5539 = vrot.lane.b32.xlu1 %v5525_v58, %s6441_s12 }
 0x46f   : > { %5440 = vrot.lane.b32.xlu0 %v5429_v3, %s6444_s29  ;;  %v4092_v4 = vpop.permute.xlu1 %4091  ;;  %s6131_s29 = sshll.u32 %s6652_s19, 2 }
 0x470   : > { %v4099_v37 = vsel %vm633_vm7, %v8918_v26, %v4092_v4  ;;  %v4100_v60 = vsel %vm633_vm7, %v4092_v4, %v9070_v2  ;;  %s394_s25 = scalar_lea.vmem [#allocation10], %s6131_s29 }
 0x471   : > { %v4192_v52 = vpop.permute.xlu0 %4191  ;;  %4107 = vst [vmem:[#allocation3 + $0x40] sm:$0x3] %v4099_v37  ;;  %5629 = vrot.lane.b32.xlu1 %v5617_v10, %s6439_s27  ;;  %4108 = vst [vmem:[#allocation3 + $0x48] sm:$0x3] %v4100_v60  ;;  %s6041_s21 = sshll.u32 %s394_s25, 4  ;;  %s9308_s21 = int_to_ptr.vmem [resolvable:$true] %s6041_s21 }
 0x472   : > { %s6360_s26 = scalar_lea.vmem %s9308_s21, 64 }
 0x473   : > { %5725 = vrot.lane.b32.xlu0 %v5712_v7, %s6440_s28  ;;  %v4190_v5 = vpop.permute.xlu1 %4189  ;;  %p6361_p4 = scmp.ne.s32.totalorder %s9308_s21, %s6360_s26 }
 0x474   : > { %v4195_v26 = vsel %vm675_vm1, %v8861_v20, %v4190_v5  ;;  %v4196_v43 = vsel %vm675_vm1, %v4190_v5, %v4192_v52 }
 0x475   : > { %v4286_v63 = vpop.permute.xlu0 %4285  ;;  %4203 = vst [vmem:[#allocation3 + $0x50] sm:$0xc] %v4195_v26  ;;  %5721 = vrot.lane.b32.xlu1 %v5711_v1, %s6440_s28  ;;  %4204 = vst [vmem:[#allocation3 + $0x58] sm:$0xc] %v4196_v43  ;;  %p6362_p6 = pnand %p6361_p4, %p6601_p12 }
 0x477   : > { %5627 = vrot.lane.b32.xlu0 %v5609_v13, %s6439_s27  ;;  %v9105_v41 = vpop.permute.xlu1 %4283  ;;  %p6363_p8 = pneg %p6362_p6  ;;  %s6364_s27 = sshll.u32 %s6448_s8, 4  ;;  %s6365_s27 = int_to_ptr.vmem [resolvable:$false] %s6364_s27 }
 0x478   : > { %v4290_v48 = vsel %vm420_vm0, %v9105_v41, %v4286_v63  ;;  %s6366_s12 = scalar_lea.vmem %s6365_s27, 128  ;;  %p6367_p10 = scmp.lt.s32.totalorder %s9308_s21, %s6365_s27 }
 0x479   : > { %v4377_v46 = vpop.permute.xlu0 %4376  ;;  %5942 = vperm.xlu1 %6301, %v5939_v31   ;;  %4298 = vst [vmem:[#allocation3 + $0x58] sm:$0x30] %v4290_v48  ;;  %p6368_p13 = scmp.lt.s32.totalorder %s6366_s12, %s6360_s26 }
 0x47a   : > { %v4384_v23 = vsel %vm868_vm3, %v4377_v46, %v8872_v8 }
 0x47b   : > { %4392 = vst [vmem:[#allocation3 + $0x50] sm:$0xc0] %v4384_v23  ;;  %5775 = vperm.xlu0 %6300, %v5772_v57   ;;  %v9111_v56 = vpop.permute.xlu1 %4374  ;;  %p6369_p3 = por %p6368_p13, %p6367_p10 }
 0x47c   : > { %v4383_v3 = vsel %vm868_vm3, %v9111_v56, %v4377_v46 }
 0x47d   : > { %v9107_v29 = vpop.permute.xlu0 %4469  ;;  %4391 = vst [vmem:[#allocation3 + $0x48] sm:$0xc0] %v4383_v3  ;;  %p6370_p7 = pnand %p6369_p3, %p6363_p8 }
 0x47f   : > { %5981 = vperm.xlu0 %6300, %v5978_v49   ;;  %v4468_v32 = vpop.permute.xlu1 %4467 }
 0x480   : > { %v4475_v52 = vsel %vm966_vm2, %v8937_v45, %v4468_v32  ;;  %v4476_v7 = vsel %vm966_vm2, %v4468_v32, %v9107_v29 }
 0x481   : > { %v4723_v16 = vpop.permute.xlu0 %4722  ;;  %4483 = vst [vmem:[#allocation3 + $0x60] sm:$0x3] %v4475_v52  ;;  %4484 = vst [vmem:[#allocation3 + $0x68] sm:$0x3] %v4476_v7 }
 0x482   : > { %v4730_v13 = vsel %vm825_vm4, %v4723_v16, %v8900_v40 }
 0x483   : > { %4738 = vst [vmem:[#allocation3 + $0x70] sm:$0xc0] %v4730_v13  ;;  %v9123_v51 = vpop.permute.xlu1 %4629 }
 0x484   : > { %v4636_v40 = vsel %vm922_vm6, %v9123_v51, %v8700_v30 }
 0x485   : > { %v9117_v58 = vpop.permute.xlu0 %4183  ;;  %4644 = vst [vmem:[#allocation3 + $0x78] sm:$0x30] %v4636_v40 }
 0x487   : > { %v9130_v63 = vpop.permute.xlu1 %4720 }
 0x488   : > { %v4729_v37 = vsel %vm825_vm4, %v9130_v63, %v4723_v16 }
 0x489   : > { %v4624_v4 = vpop.permute.xlu0 %4623  ;;  %4737 = vst [vmem:[#allocation3 + $0x68] sm:$0xc0] %v4729_v37 }
 0x48a   : > { %v4633_v10 = vsel %vm922_vm6, %v4624_v4, %v8884_v27 }
 0x48b   : > { %4641 = vst [vmem:[#allocation3 + $0x60] sm:$0x30] %v4633_v10  ;;  %v4278_v57 = vpop.permute.xlu1 %4277 }
 0x48c   : > { %v4287_v30 = vsel %vm420_vm0, %v4278_v57, %v8856_v34 }
 0x48d   : > { %v4814_v45 = vpop.permute.xlu0 %4813  ;;  %4295 = vst [vmem:[#allocation3 + $0x40] sm:$0x30] %v4287_v30 }
 0x48e   : > { %v4821_v60 = vsel %vm729_vm5, %v8941_v36, %v4814_v45 }
 0x48f   : > { %4829 = vst [vmem:[#allocation3 + $0x80] sm:$0x3] %v4821_v60  ;;  %v9142_v46 = vpop.permute.xlu1 %4815 }
 0x490   : > { %v4822_v36 = vsel %vm729_vm5, %v4814_v45, %v9142_v46 }
 0x491   : > { %v4912_v5 = vpop.permute.xlu0 %4911  ;;  %4830 = vst [vmem:[#allocation3 + $0x88] sm:$0x3] %v4822_v36 }
 0x492   : > { %v4917_v6 = vsel %vm633_vm7, %v8947_v61, %v4912_v5  ;;  %v4918_v1 = vsel %vm633_vm7, %v4912_v5, %v8719_v12 }
 0x493   : > { %4925 = vst [vmem:[#allocation3 + $0x90] sm:$0xc] %v4917_v6  ;;  %4926 = vst [vmem:[#allocation3 + $0x98] sm:$0xc] %v4918_v1  ;;  %v5099_v23 = vpop.permute.xlu1 %5098 }
 0x494   : > { %v5106_v12 = vsel %vm420_vm0, %v5099_v23, %v8905_v44 }
 0x495   : > { %v9144_v26 = vpop.permute.xlu0 %5005  ;;  %5114 = vst [vmem:[#allocation3 + $0x90] sm:$0xc0] %v5106_v12 }
 0x496   : > { %v5012_v43 = vsel %vm675_vm1, %v9144_v26, %v8730_v28 }
 0x497   : > { %5020 = vst [vmem:[#allocation3 + $0x98] sm:$0x30] %v5012_v43  ;;  %v9157_v48 = vpop.permute.xlu1 %5191 }
 0x499   : > { %v9151_v31 = vpop.permute.xlu0 %5096 }
 0x49a   : > { %v5105_v49 = vsel %vm420_vm0, %v9151_v31, %v5099_v23 }
 0x49b   : > { %5113 = vst [vmem:[#allocation3 + $0x88] sm:$0xc0] %v5105_v49  ;;  %v5445_v13 = vpop.permute.xlu1 %5444 }
 0x49c   : > { %v5452_v44 = vsel %vm922_vm6, %v5445_v13, %v8922_v22 }
 0x49d   : > { %v5190_v16 = vpop.permute.xlu0 %5189  ;;  %5460 = vst [vmem:[#allocation3 + $0xb0] sm:$0xc0] %v5452_v44 }
 0x49e   : > { %v5197_v3 = vsel %vm868_vm3, %v8952_v47, %v5190_v16  ;;  %v5198_v28 = vsel %vm868_vm3, %v5190_v16, %v9157_v48 }
 0x49f   : > { %5205 = vst [vmem:[#allocation3 + $0xa0] sm:$0x3] %v5197_v3  ;;  %5206 = vst [vmem:[#allocation3 + $0xa8] sm:$0x3] %v5198_v28  ;;  %v9169_v47 = vpop.permute.xlu1 %4905 }
 0x4a1   : > { %v5288_v32 = vpop.permute.xlu0 %5287 }
 0x4a2   : > { %v5293_v52 = vsel %vm966_vm2, %v8963_v14, %v5288_v32  ;;  %v5294_v7 = vsel %vm966_vm2, %v5288_v32, %v8788_v55 }
 0x4a3   : > { %5301 = vst [vmem:[#allocation3 + $0xb0] sm:$0xc] %v5293_v52  ;;  %5302 = vst [vmem:[#allocation3 + $0xb8] sm:$0xc] %v5294_v7  ;;  %v9175_v10 = vpop.permute.xlu1 %5281 }
 0x4a5   : > { %v9171_v4 = vpop.permute.xlu0 %5442 }
 0x4a6   : > { %v5451_v40 = vsel %vm922_vm6, %v9171_v4, %v5445_v13 }
 0x4a7   : > { %5459 = vst [vmem:[#allocation3 + $0xa8] sm:$0xc0] %v5451_v40  ;;  %v5536_v37 = vpop.permute.xlu1 %5535 }
 0x4a8   : > { %v5543_v60 = vsel %vm825_vm4, %v8982_v39, %v5536_v37 }
 0x4a9   : > { %v5000_v22 = vpop.permute.xlu0 %4999  ;;  %5551 = vst [vmem:[#allocation3 + $0xc0] sm:$0x3] %v5543_v60 }
 0x4aa   : > { %v5009_v45 = vsel %vm675_vm1, %v5000_v22, %v8889_v50 }
 0x4ab   : > { %5017 = vst [vmem:[#allocation3 + $0x80] sm:$0x30] %v5009_v45  ;;  %v5634_v5 = vpop.permute.xlu1 %5633 }
 0x4ac   : > { %v5639_v6 = vsel %vm729_vm5, %v8968_v24, %v5634_v5  ;;  %v5640_v1 = vsel %vm729_vm5, %v5634_v5, %v8742_v19 }
 0x4ad   : > { %v9179_v55 = vpop.permute.xlu0 %5537  ;;  %5647 = vst [vmem:[#allocation3 + $0xd0] sm:$0xc] %v5639_v6  ;;  %5648 = vst [vmem:[#allocation3 + $0xd8] sm:$0xc] %v5640_v1 }
 0x4ae   : > { %v5544_v57 = vsel %vm825_vm4, %v5536_v37, %v9179_v55 }
 0x4af   : > { %5552 = vst [vmem:[#allocation3 + $0xc8] sm:$0x3] %v5544_v57  ;;  %v9193_v39 = vpop.permute.xlu1 %5727 }
 0x4b0   : > { %v5734_v12 = vsel %vm633_vm7, %v9193_v39, %v8760_v0 }
 0x4b1   : > { %v3373_v30 = vpop.permute.xlu0 %3372  ;;  %5742 = vst [vmem:[#allocation3 + $0xd8] sm:$0x30] %v5734_v12 }
 0x4b2   : > { %v3378_v36 = vsel %vm675_vm1, %v8994_v62, %v3373_v30  ;;  %v3379_v43 = vsel %vm675_vm1, %v3373_v30, %v8816_v54 }
 0x4b3   : > { %3386 = vst [vmem:[#allocation3 + $0x10] sm:$0x3] %v3378_v36  ;;  %3387 = vst [vmem:[#allocation3 + $0x18] sm:$0x3] %v3379_v43  ;;  %v3559_v54 = vpop.permute.xlu1 %3558 }
 0x4b4   : > { %v3565_v16 = vsel %vm868_vm3, %v8778_v9, %v3559_v54  ;;  %v3566_v3 = vsel %vm868_vm3, %v3559_v54, %v8996_v59 }
 0x4b5   : > { %v3463_v23 = vpop.permute.xlu0 %3462  ;;  %3573 = vst [vmem:[#allocation3 + $0x8] sm:$0x30] %v3565_v16  ;;  %3574 = vst [vmem:[#allocation3 + $0x10] sm:$0x30] %v3566_v3 }
 0x4b6   : > { %v3470_v19 = vsel %vm420_vm0, %v9066_v17, %v3463_v23  ;;  %v3471_v62 = vsel %vm420_vm0, %v3463_v23, %v8828_v11 }
 0x4b7   : > { %3478 = vst [vmem:[#allocation3] sm:$0xc] %v3470_v19  ;;  %3479 = vst [vmem:[#allocation3 + $0x8] sm:$0xc] %v3471_v62  ;;  %v3658_v11 = vpop.permute.xlu1 %3657 }
 0x4b8   : > { %v3662_v13 = vsel %vm966_vm2, %v8793_v33, %v3658_v11 }
 0x4b9   : > { %v3810_v49 = vpop.permute.xlu0 %3809  ;;  %3670 = vst [vmem:[#allocation3 + $0x18] sm:$0xc0] %v3662_v13 }
 0x4ba   : > { %v3817_v0 = vsel %vm922_vm6, %v9054_v42, %v3810_v49  ;;  %v3818_v17 = vsel %vm922_vm6, %v3810_v49, %v8844_v25  ;;  %v9485_v49 = vld [vmem:[#allocation20_spill] sm:$0xff] }
 0x4bb   : > { %3825 = vst [vmem:[#allocation3 + $0x20] sm:$0xc] %v3817_v0  ;;  %3826 = vst [vmem:[#allocation3 + $0x28] sm:$0xc] %v3818_v17  ;;  %v3906_v59 = vpop.permute.xlu1 %3905 }
 0x4bc   : > { %v3912_v42 = vsel %vm825_vm4, %v8805_v21, %v3906_v59  ;;  %v3913_v25 = vsel %vm825_vm4, %v3906_v59, %v9023_v18  ;;  %v5746_v36 = vld [vmem:[#allocation3 + $0x10] sm:$0xff] }
 0x4bd   : > { %v3997_v28 = vpop.permute.xlu0 %3996  ;;  %3920 = vst [vmem:[#allocation3 + $0x28] sm:$0x30] %v3912_v42  ;;  %3921 = vst [vmem:[#allocation3 + $0x30] sm:$0x30] %v3913_v25  ;;  %v9487_v25 = vld [vmem:[#allocation21_spill] sm:$0xff] }
 0x4be   : > { %v4006_v9 = vsel %vm729_vm5, %v3997_v28, %v9035_v35 }
 0x4bf   : > { %4014 = vst [vmem:[#allocation3 + $0x20] sm:$0xc0] %v4006_v9  ;;  %v4005_v33 = vpop.permute.xlu1 %4004 }
 0x4c0   : > { %v4009_v7 = vsel %vm729_vm5, %v8820_v53, %v4005_v33  ;;  %v5747_v6 = vld [vmem:[#allocation3 + $0x18] sm:$0xff] }
 0x4c1   : > { %v4282_v32 = vpop.permute.xlu0 %4281  ;;  %4017 = vst [vmem:[#allocation3 + $0x38] sm:$0xc0] %v4009_v7 }
 0x4c2   : > { %v4288_v44 = vsel %vm420_vm0, %v8856_v34, %v4282_v32  ;;  %v4289_v52 = vsel %vm420_vm0, %v4282_v32, %v9105_v41  ;;  %v5745_v41 = vld [vmem:[#allocation3 + $0x8] sm:$0xff] }
 0x4c3   : > { %4296 = vst [vmem:[#allocation3 + $0x48] sm:$0x30] %v4288_v44  ;;  %4297 = vst [vmem:[#allocation3 + $0x50] sm:$0x30] %v4289_v52  ;;  %v3650_v18 = vpop.permute.xlu1 %3649 }
 0x4c4   : > { %v3659_v34 = vsel %vm966_vm2, %v3650_v18, %v9004_v38  ;;  %v5749_v22 = vld [vmem:[#allocation3 + $0x28] sm:$0xff]  ;;  %v5750_v60 = vld [vmem:[#allocation3 + $0x30] sm:$0xff]  ;;  %v9484_v38 = vld [vmem:[#allocation26_spill] sm:$0xff] }
 0x4c5   : > { %v4381_v35 = vpop.permute.xlu0 %4380  ;;  %3667 = vst [vmem:[#allocation3] sm:$0xc0] %v3659_v34  ;;  %v6205_v53 = vpack.c.bf16 %v5749_v22, %v5745_v41  ;;  %v6219_v43 = vpack.c.bf16 %v5750_v60, %v5746_v36 }
 0x4c6   : > { %v4385_v21 = vsel %vm868_vm3, %v8872_v8, %v4381_v35  ;;  %v5748_v23 = vld [vmem:[#allocation3 + $0x20] sm:$0xff] }
 0x4c7   : > { %4393 = vst [vmem:[#allocation3 + $0x58] sm:$0xc0] %v4385_v21  ;;  %v4096_v8 = vpop.permute.xlu1 %4095  ;;  %6206 = vmatprep.subr.bf16.mxu0 %v6205_v53 }
 0x4c8   : > { %v4101_v5 = vsel %vm633_vm7, %v9070_v2, %v4096_v8  ;;  %v4102_v30 = vsel %vm633_vm7, %v4096_v8, %v9484_v38  ;;  %v5751_v1 = vld [vmem:[#allocation3 + $0x38] sm:$0xff] }
 0x4c9   : > { %v4628_v40 = vpop.permute.xlu0 %4627  ;;  %4109 = vst [vmem:[#allocation3 + $0x50] sm:$0x3] %v4101_v5  ;;  %4110 = vst [vmem:[#allocation3 + $0x58] sm:$0x3] %v4102_v30 }
 0x4ca   : > { %v4634_v45 = vsel %vm922_vm6, %v8884_v27, %v4628_v40  ;;  %v4635_v37 = vsel %vm922_vm6, %v4628_v40, %v9123_v51  ;;  %v6217_v51 = vpack.c.bf16 %v5751_v1, %v5747_v6 }
 0x4cb   : > { %4642 = vst [vmem:[#allocation3 + $0x68] sm:$0x30] %v4634_v45  ;;  %4643 = vst [vmem:[#allocation3 + $0x70] sm:$0x30] %v4635_v37  ;;  %v4186_v12 = vpop.permute.xlu1 %4185 }
 0x4cc   : > { %6218 = vmatprep.subr.bf16.mxu1 %v6217_v51  ;;  %v4193_v2 = vsel %vm675_vm1, %v9117_v58, %v4186_v12  ;;  %v4194_v62 = vsel %vm675_vm1, %v4186_v12, %v8861_v20  ;;  %v5744_v54 = vld [vmem:[#allocation3] sm:$0xff] }
 0x4cd   : > { %v4373_v57 = vpop.permute.xlu0 %4372  ;;  %6220 = vmatpush1.bf16.msra.mxu1 %v6219_v43  ;;  %4201 = vst [vmem:[#allocation3 + $0x40] sm:$0xc] %v4193_v2  ;;  %4202 = vst [vmem:[#allocation3 + $0x48] sm:$0xc] %v4194_v62  ;;  %v6207_v3 = vpack.c.bf16 %v5748_v23, %v5744_v54  ;;  %v9486_v20 = vld [vmem:[#allocation22_spill] sm:$0xff] }
 0x4ce   : > { %v4382_v27 = vsel %vm868_vm3, %v4373_v57, %v9111_v56 }
 0x4cf   : > { %4390 = vst [vmem:[#allocation3 + $0x40] sm:$0xc0] %v4382_v27  ;;  %6208 = vmatpush1.bf16.msra.mxu0 %v6207_v3  ;;  %v4472_v0 = vpop.permute.xlu1 %4471 }
 0x4d0   : > { %v4477_v58 = vsel %vm966_vm2, %v9107_v29, %v4472_v0  ;;  %v4478_v11 = vsel %vm966_vm2, %v4472_v0, %v9486_v20  ;;  %v5755_v52 = vld [vmem:[#allocation3 + $0x58] sm:$0xff]  ;;  %v5754_v21 = vld [vmem:[#allocation3 + $0x50] sm:$0xff]  ;;  %v5743_v0 = vld [vmem:[%s9355_s5] sm:$0x3] }
 0x4d1   : > { %v4818_v19 = vpop.permute.xlu0 %4817  ;;  %4485 = vst [vmem:[#allocation3 + $0x70] sm:$0x3] %v4477_v58  ;;  %4486 = vst [vmem:[#allocation3 + $0x78] sm:$0x3] %v4478_v11 }
 0x4d2   : > { %v4823_v56 = vsel %vm729_vm5, %v9142_v46, %v4818_v19  ;;  %v4824_v16 = vsel %vm729_vm5, %v4818_v19, %v9485_v49  ;;  %v5757_v13 = vld [vmem:[#allocation3 + $0x68] sm:$0xff] }
 0x4d3   : > { %4831 = vst [vmem:[#allocation3 + $0x90] sm:$0x3] %v4823_v56  ;;  %4832 = vst [vmem:[#allocation3 + $0x98] sm:$0x3] %v4824_v16  ;;  %v4719_v9 = vpop.permute.xlu1 %4718 }
 0x4d4   : > { %v4728_v32 = vsel %vm825_vm4, %v4719_v9, %v9130_v63  ;;  %v5753_v29 = vld [vmem:[#allocation3 + $0x48] sm:$0xff] }
 0x4d5   : > { %v4908_v17 = vpop.permute.xlu0 %4907  ;;  %4736 = vst [vmem:[#allocation3 + $0x60] sm:$0xc0] %v4728_v32  ;;  %v6209_v44 = vpack.c.bf16 %v5757_v13, %v5753_v29 }
 0x4d6   : > { %v4915_v46 = vsel %vm633_vm7, %v9169_v47, %v4908_v17  ;;  %v4916_v28 = vsel %vm633_vm7, %v4908_v17, %v8947_v61  ;;  %v5752_v22 = vld [vmem:[#allocation3 + $0x40] sm:$0xff] }
 0x4d7   : > { %4923 = vst [vmem:[#allocation3 + $0x80] sm:$0xc] %v4915_v46  ;;  %4924 = vst [vmem:[#allocation3 + $0x88] sm:$0xc] %v4916_v28  ;;  %v5004_v61 = vpop.permute.xlu1 %5003  ;;  %6210 = vmatprep.subr.bf16.mxu0 %v6209_v44 }
 0x4d8   : > { %v5010_v35 = vsel %vm675_vm1, %v8889_v50, %v5004_v61  ;;  %v5011_v63 = vsel %vm675_vm1, %v5004_v61, %v9144_v26  ;;  %v5759_v7 = vld [vmem:[#allocation3 + $0x78] sm:$0xff] }
 0x4d9   : > { %v5194_v59 = vpop.permute.xlu0 %5193  ;;  %5018 = vst [vmem:[#allocation3 + $0x88] sm:$0x30] %v5010_v35  ;;  %5019 = vst [vmem:[#allocation3 + $0x90] sm:$0x30] %v5011_v63  ;;  %v6221_v34 = vpack.c.bf16 %v5759_v7, %v5755_v52 }
 0x4da   : > { %v5199_v42 = vsel %vm868_vm3, %v9157_v48, %v5194_v59  ;;  %v5200_v47 = vsel %vm868_vm3, %v5194_v59, %v9487_v25  ;;  %v5758_v48 = vld [vmem:[#allocation3 + $0x70] sm:$0xff]  ;;  %v5763_v53 = vld [vmem:[#allocation3 + $0x98] sm:$0xff] }
 0x4db   : > { %5207 = vst [vmem:[#allocation3 + $0xb0] sm:$0x3] %v5199_v42  ;;  %5208 = vst [vmem:[#allocation3 + $0xb8] sm:$0x3] %v5200_v47  ;;  %v6223_v41 = vpack.c.bf16 %v5758_v48, %v5754_v21  ;;  %6222 = vmatprep.subr.bf16.mxu1 %v6221_v34  ;;  %v5095_v50 = vpop.permute.xlu1 %5094 }
 0x4dc   : > { %v5104_v26 = vsel %vm420_vm0, %v5095_v50, %v9151_v31  ;;  %v5756_v37 = vld [vmem:[#allocation3 + $0x60] sm:$0xff]  ;;  %v9488_v31 = vld [vmem:[#allocation25_spill] sm:$0xff] }
 0x4dd   : > { %v5284_v33 = vpop.permute.xlu0 %5283  ;;  %6224 = vmatpush1.bf16.msra.mxu1 %v6223_v41  ;;  %5112 = vst [vmem:[#allocation3 + $0x80] sm:$0xc0] %v5104_v26  ;;  %v6211_v8 = vpack.c.bf16 %v5756_v37, %v5752_v22 }
 0x4de   : > { %v5291_v18 = vsel %vm966_vm2, %v9175_v10, %v5284_v33  ;;  %v5292_v40 = vsel %vm966_vm2, %v5284_v33, %v8963_v14 }
 0x4df   : > { %5299 = vst [vmem:[#allocation3 + $0xa0] sm:$0xc] %v5291_v18  ;;  %5300 = vst [vmem:[#allocation3 + $0xa8] sm:$0xc] %v5292_v40  ;;  %6212 = vmatpush1.bf16.msra.mxu0 %v6211_v8  ;;  %v5540_v5 = vpop.permute.xlu1 %5539 }
 0x4e0   : > { %v5545_v30 = vsel %vm825_vm4, %v9179_v55, %v5540_v5  ;;  %v5546_v6 = vsel %vm825_vm4, %v5540_v5, %v9488_v31  ;;  %v5762_v27 = vld [vmem:[#allocation3 + $0x90] sm:$0xff]  ;;  %v5761_v51 = vld [vmem:[#allocation3 + $0x88] sm:$0xff] }
 0x4e1   : > { %v5441_v45 = vpop.permute.xlu0 %5440  ;;  %5553 = vst [vmem:[#allocation3 + $0xd0] sm:$0x3] %v5545_v30  ;;  %5554 = vst [vmem:[#allocation3 + $0xd8] sm:$0x3] %v5546_v6 }
 0x4e2   : > { %v5450_v10 = vsel %vm922_vm6, %v5441_v45, %v9171_v4  ;;  %v5767_v14 = vld [vmem:[#allocation3 + $0xb8] sm:$0xff]  ;;  %v5766_v57 = vld [vmem:[#allocation3 + $0xb0] sm:$0xff] }
 0x4e3   : > { %5458 = vst [vmem:[#allocation3 + $0xa0] sm:$0xc0] %v5450_v10  ;;  %v6225_v60 = vpack.c.bf16 %v5767_v14, %v5763_v53  ;;  %v6227_v43 = vpack.c.bf16 %v5766_v57, %v5762_v27  ;;  %v5630_v12 = vpop.permute.xlu1 %5629 }
 0x4e4   : > { %v5638_v19 = vsel %vm729_vm5, %v5630_v12, %v8968_v24  ;;  %v5760_v62 = vld [vmem:[#allocation3 + $0x80] sm:$0xff] }
 0x4e5   : > { %v5726_v38 = vpop.permute.xlu0 %5725  ;;  %6226 = vmatprep.subr.bf16.mxu1 %v6225_v60  ;;  %5646 = vst [vmem:[#allocation3 + $0xc8] sm:$0xc] %v5638_v19  ;;  %v9489_v60 = vld [vmem:[#allocation17_spill] sm:$0xff] }
 0x4e6   : > { %v5732_v4 = vsel %vm633_vm7, %v8974_v15, %v5726_v38  ;;  %v5733_v1 = vsel %vm633_vm7, %v5726_v38, %v9193_v39  ;;  %v5765_v36 = vld [vmem:[#allocation3 + $0xa8] sm:$0xff]  ;;  %6228 = vmatpush1.bf16.msra.mxu1 %v6227_v43 }
 0x4e7   : > { %5740 = vst [vmem:[#allocation3 + $0xc8] sm:$0x30] %v5732_v4  ;;  %5741 = vst [vmem:[#allocation3 + $0xd0] sm:$0x30] %v5733_v1  ;;  %v6213_v23 = vpack.c.bf16 %v5765_v36, %v5761_v51  ;;  %v5722_v56 = vpop.permute.xlu1 %5721  ;;  %v6447_v4 = vmov 1966171168  }
 0x4e8   : > { %v5731_v49 = vsel %vm633_vm7, %v5722_v56, %v8974_v15  ;;  %v5771_v16 = vld [vmem:[#allocation3 + $0xd8] sm:$0x3f]  ;;  %v5999_v1 = vunpack.c.l.s4 %v6447_v4 }
 0x4e9   : > { %v5628_v55 = vpop.permute.xlu0 %5627  ;;  %6214 = vmatprep.subr.bf16.mxu0 %v6213_v23  ;;  %5739 = vst [vmem:[#allocation3 + $0xc0] sm:$0x30] %v5731_v49  ;;  %6155 = vmatprep.subr.msk.mxu1 %vm3113_vm8, %v5771_v16 }
 0x4ea   : > { %v5637_v2 = vsel %vm729_vm5, %v5628_v55, %v5630_v12  ;;  %v5764_v39 = vld [vmem:[#allocation3 + $0xa0] sm:$0xff]  ;;  %v6000_v55 = vunpack.c.0.s8 %v5999_v1 }
 0x4eb   : > { %5645 = vst [vmem:[#allocation3 + $0xc0] sm:$0xc] %v5637_v2  ;;  %v6215_v54 = vpack.c.bf16 %v5764_v39, %v5760_v62 }
 0x4ed   : > { %6216 = vmatpush1.bf16.msra.mxu0 %v6215_v54  ;;  %v9490_v54 = vld [vmem:[#allocation16_spill] sm:$0xff] }
 0x4ee   : > { %v5770_v3 = vld [vmem:[#allocation3 + $0xd0] sm:$0x3f]  ;;  %v5769_v24 = vld [vmem:[#allocation3 + $0xc8] sm:$0x3f]  ;;  %v6003_v56 = vsub.s32 %v6000_v55, %v9490_v54 }
 0x4ef   : > { %6156 = vmatpush1.msk.msra.mxu1 %vm3113_vm8, %v5770_v3  ;;  %6152 = vmatprep.subr.msk.mxu0 %vm3113_vm8, %v5769_v24 }
 0x4f0   : > { %6157 = vmatmul.mubr.msk.f32.vlgmr.msra.gmra.mrb[4].mxu1 %vm3109_vm9, %v5743_v0 }
 0x4f2   : > { %v5768_v17 = vld [vmem:[#allocation3 + $0xc0] sm:$0x3f] }
 0x4f3   : > { %6153 = vmatpush1.msk.msra.mxu0 %vm3113_vm8, %v5768_v17  ;;  %v9491_v17 = vlaneseq }
 0x4f4   : > { %6154 = vmatmul.mubr.msk.f32.vlgmr.msra.gmra.mrb[4].mxu0 %vm3109_vm9, %v5743_v0 }
 0x4f5   : > { %vm6023_vm11 = vcmp.lt.s32.totalorder %v9491_v17, 512 }
 0x4f8   : > { %v5943_v13 = vpop.permute.xlu1 %5942 }
 0x4fa   : > { %v5776_v15 = vpop.permute.xlu0 %5775 }
 0x4fe   : > { %v5982_v50 = vpop.permute.xlu0 %5981 }
 0x4ff   : > { %v5987_v57 = vrot.slane %v5982_v50, %v9489_v60 }
 0x5c3   : > { %v5930_v58 = vpop.f32.mrb[4].mxu1 }
 0x5c4   : > { %v5931_v20 = vadd.f32 %v5930_v58, %v5776_v15  ;;  %v5932_v11 = vpop.f32.mrb[5].mxu1 }
 0x5c5   : > { %v5933_v46 = vadd.f32 %v5932_v11, %v5776_v15 }
 0x5c6   : > { %v5937_v28 = vmax.f32 %v5931_v20, 0.0 }
 0x5c7   : > { %v5938_v9 = vmax.f32 %v5933_v46, 0.0  ;;  %v5859_v42 = vpop.f32.mrb[4].mxu0 }
 0x5c8   : > { %v5947_v59 = vmul.f32 %v5943_v13, %v5937_v28  ;;  %v5860_v44 = vadd.f32 %v5859_v42, %v5776_v15  ;;  %v5861_v61 = vpop.f32.mrb[5].mxu0 }
 0x5c9   : > { %v5948_v32 = vmul.f32 %v5943_v13, %v5938_v9  ;;  %v5862_v33 = vadd.f32 %v5861_v61, %v5776_v15 }
 0x5ca   : > { %v5964_v29 = vsel %vm5949_vm10, %v5947_v59, 0.0  ;;  %v5935_v63 = vmax.f32 %v5860_v44, 0.0 }
 0x5cb   : > { %v5965_v25 = vrot.slane %v5964_v29, 4  ;;  %v5971_v47 = vsel %vm5949_vm10, %v5948_v32, 0.0  ;;  %v5936_v21 = vmax.f32 %v5862_v33, 0.0 }
 0x5cc   : > { %v5972_v52 = vrot.slane %v5971_v47, 4  ;;  %v5945_v18 = vmul.f32 %v5943_v13, %v5935_v63 }
 0x5cd   : > { %v5966_v35 = vadd.f32 %v5965_v25, %v5964_v29  ;;  %v5946_v34 = vmul.f32 %v5943_v13, %v5936_v21 }
 0x5ce   : > { %v5973_v7 = vadd.f32 %v5972_v52, %v5971_v47  ;;  %v5950_v22 = vsel %vm5949_vm10, %v5945_v18, 0.0 }
 0x5cf   : > { %v5967_v48 = vrot.slane %v5966_v35, 2  ;;  %v5951_v26 = vrot.slane %v5950_v22, 4  ;;  %v5957_v37 = vsel %vm5949_vm10, %v5946_v34, 0.0 }
 0x5d0   : > { %v5974_v40 = vrot.slane %v5973_v7, 2  ;;  %v5958_v53 = vrot.slane %v5957_v37, 4 }
 0x5d1   : > { %v5968_v41 = vadd.f32 %v5967_v48, %v5966_v35  ;;  %v5952_v8 = vadd.f32 %v5951_v26, %v5950_v22 }
 0x5d2   : > { %v5975_v45 = vadd.f32 %v5974_v40, %v5973_v7  ;;  %v5959_v38 = vadd.f32 %v5958_v53, %v5957_v37 }
 0x5d3   : > { %v5969_v10 = vrot.slane %v5968_v41, 1  ;;  %v5953_v31 = vrot.slane %v5952_v8, 2 }
 0x5d4   : > { %v5976_v14 = vrot.slane %v5975_v45, 1  ;;  %v5960_v27 = vrot.slane %v5959_v38, 2 }
 0x5d5   : > { %v5970_v5 = vadd.f32 %v5969_v10, %v5968_v41  ;;  %v5954_v36 = vadd.f32 %v5953_v31, %v5952_v8 }
 0x5d6   : > { %v5977_v30 = vadd.f32 %v5976_v14, %v5975_v45  ;;  %v5961_v43 = vadd.f32 %v5960_v27, %v5959_v38 }
 0x5d7   : > { %v5990_v6 = vadd.f32 %v5987_v57, %v5970_v5  ;;  %v5955_v12 = vrot.slane %v5954_v36, 1 }
 0x5d8   : > { %v5991_v51 = vadd.f32 %v5987_v57, %v5977_v30  ;;  %v5962_v19 = vrot.slane %v5961_v43, 1 }
 0x5d9   : > { %v5956_v2 = vadd.f32 %v5955_v12, %v5954_v36 }
 0x5da   : > { %v5997_v23 = vcombine.low %v5990_v6, %v5991_v51  ;;  %v5963_v62 = vadd.f32 %v5962_v19, %v5961_v43 }
 0x5db   : > { %v5988_v39 = vadd.f32 %v5987_v57, %v5956_v2 }
 0x5dc   : > { %v5989_v49 = vadd.f32 %v5987_v57, %v5963_v62  ;;  %v6011_v3 = vrot.slane %v5997_v23, %v6003_v56 }
 0x5de   : > { %v5996_v16 = vcombine.low %v5988_v39, %v5989_v49 }
 0x5e0   : > { %v6004_v0 = vrot.slane %v5996_v16, %v6003_v56 }
 0x5e2   : > { %v6012_v24 = vcombine.low %v6004_v0, %v6011_v3 }
 0x5e4   : > { %v6019_v15 = vrot.slane %v6012_v24, %v6003_v56 }
 0x5e6   : > { %6025 = vst.msk [vmem:[%s394_s25] sm:$0xf] %vm6023_vm11, %v6019_v15 }
 0x5e7   : > { %6373 = shalt.err (!%p6370_p7)
}
 0x5e8   : > { %s6374_s19 = scalar_lea.hbm %s9306_s30, 64  ;;  %s6378_s29 = scalar_lea.hbm %s9360_s10, 128 }
 0x5e9   : > { %p6375_p9 = scmp.ne.s32.totalorder %s9306_s30, %s6374_s19  ;;  %p6379_p5 = scmp.lt.u32.totalorder %s9306_s30, %s9360_s10 }
 0x5ea   : > { %p6380_p11 = scmp.lt.u32.totalorder %s6378_s29, %s6374_s19  ;;  %p6382_p4 = scmp.lt.u32.totalorder %s6374_s19, %s9306_s30 }
 0x5eb   : > { %p6376_p1 = pnand %p6375_p9, %p6601_p12 }
 0x5ec   : > { %p6381_p2 = por %p6380_p11, %p6379_p5 }
 0x5ed   : > { %p6377_p0 = pneg %p6376_p1 }
 0x5ee   : > { %p6383_p6 = por %p6382_p4, %p6381_p2 }
 0x5f0   : > { %p6384_p8 = pnand %p6383_p6, %p6377_p0 }
 0x5f2   : > { %6387 = shalt.err (!%p6384_p8)
}
 0x5f3   : > { %6235 = dma.vmem_to_hbm [thread:$0]  (%p6601_p12), %s9308_s21, 64, %s9306_s30, %s6027_s11  }
 0x5f4 PF: > { %s9492_s20 = sld [smem:[#allocation14_spill]]  ;;  %s6053_s22 = sand.u32 1, %s6418_s15  }
 0x5f5   : > { %p9494_p13 = scmp.ge.s32.totalorder %s6430_s18, 2  ;;  %s6054_s26 = scalar_lea.sflag [#allocation7], %s6053_s22 }
 0x5fa   : > { %p9493_p10 = scmp.ne.s32.totalorder %s9492_s20, 0 }
 0x5fc   : > { %p6246_p3 = pnand %p9494_p13, %p9493_p10 }
 0x5fe   : > { %6413 = dma.done.wait (!%p6246_p3), %s6054_s26, 64  }
 0x5ff   : > { %6415 = vsyncadd (!%p6246_p3), %s6054_s26, 4294967232  ;;  %s9495_s18 = sld [smem:[#allocation15_spill]]  ;;  %s9496_s15 = smov %s6422_s16 }
 0x600   : > { %s9497_s16 = smov %s6426_s17  ;;  %s9498_s17 = smov %s6597_s13 }
 0x605   : > { %p26_p7 = scmp.ge.s32.totalorder %s9495_s18, 4  }
 0x607   :  { %28 = sbr.rel (!%p26_p7) target bundleno = 9 (0x9), region = 135 }
 0x60e   :  { %6059 = vsyncpa [#allocation6], 1 }
 0x60f   :  { %6061 = vsyncpa [#allocation6 + $0x1], 1 }
 0x610   :  { %6062 = vsyncpa [#allocation9], 1 }
 0x611   :  { %6063 = vsyncpa [#allocation7], 1 }
 0x612   :  { %6065 = vsyncpa [#allocation7 + $0x1], 1 }

</bundles_post_ra>
